<compile_context>
chip_gen: v7x
topology: tpu7x:2x2x1
jax: 0.10.0
libtpu: 0.0.40
codegen_flags: <defaults>
</compile_context>

<pallas_src>
import math
from functools import partial

import jax
import jax.numpy as jnp
from jax.experimental import pallas as pl
from jax.experimental.pallas import tpu as pltpu

_LN_EPS = 1e-5                      # PyTorch nn.LayerNorm default
_VMEM_LIMIT = 32 * 1024 * 1024      # explicit scoped-VMEM cap (safe on v5e/v6e/v7x)


# ----------------------------- BlockSpec helpers -----------------------------

def _const_spec(a):
    """Whole-array block, constant index_map -> fetched once, VMEM-resident
    across all grid steps (weights / LayerNorm params / biases)."""
    nd = a.ndim
    return pl.BlockSpec(a.shape, lambda n, _nd=nd: (0,) * _nd)


def _batch_spec(shape):
    """Per-batch-element (1, L, E) block over an (N, L, E) array."""
    return pl.BlockSpec((1,) + tuple(shape[1:]), lambda n: (n, 0, 0))


def _mosaic_params():
    return pltpu.CompilerParams(
        dimension_semantics=("parallel",),
        vmem_limit_bytes=_VMEM_LIMIT,
    )


# ------------------------- in-kernel building blocks -------------------------

def _mha(x_q, x_kv, wqkv_ref, bqkv_ref, wo_ref, bo_ref, num_heads):
    """Multi-head attention for one batch element.

    x_q:(Lq,E) f32, x_kv:(Lk,E) f32.
    wqkv_ref:(3,E,E) bf16 packed (in,out) per q/k/v, bqkv_ref:(3,1,E) f32,
    wo_ref:(H,dh,E) bf16 (output projection rows pre-split per head),
    bo_ref:(1,E) f32.
    """
    _, E = x_q.shape
    H = num_heads
    dh = E // H
    scale = 1.0 / math.sqrt(dh)

    qb = x_q.astype(jnp.bfloat16)
    kvb = qb if x_kv is x_q else x_kv.astype(jnp.bfloat16)   # CSE cast for self-attn
    q = jnp.dot(qb, wqkv_ref[0], preferred_element_type=jnp.float32) + bqkv_ref[0]
    k = jnp.dot(kvb, wqkv_ref[1], preferred_element_type=jnp.float32) + bqkv_ref[1]
    v = jnp.dot(kvb, wqkv_ref[2], preferred_element_type=jnp.float32) + bqkv_ref[2]

    acc = None
    for h in range(H):                      # static unroll; true head slices
        sl = slice(h * dh, (h + 1) * dh)
        q_h = (q[:, sl] * scale).astype(jnp.bfloat16)        # (Lq, dh)
        k_h = k[:, sl].astype(jnp.bfloat16)                  # (Lk, dh)
        v_h = v[:, sl].astype(jnp.bfloat16)                  # (Lk, dh)
        # q_h @ k_h^T without materializing the transpose (contract dim 1 of both)
        s = jax.lax.dot_general(q_h, k_h, (((1,), (1,)), ((), ())),
                                preferred_element_type=jnp.float32)   # (Lq, Lk)
        s = s - jnp.max(s, axis=-1, keepdims=True)
        p = jnp.exp(s)
        p = p * pl.reciprocal(jnp.sum(p, axis=-1, keepdims=True), approx=True)
        pv = jnp.dot(p.astype(jnp.bfloat16), v_h,
                     preferred_element_type=jnp.float32)              # (Lq, dh)
        contrib = jnp.dot(pv.astype(jnp.bfloat16), wo_ref[h],
                          preferred_element_type=jnp.float32)         # (Lq, E)
        acc = contrib if acc is None else acc + contrib
    return acc + bo_ref[...]


def _add_layernorm(x, y, g, b):
    z = x + y
    mu = jnp.mean(z, axis=-1, keepdims=True)
    c = z - mu
    var = jnp.mean(c * c, axis=-1, keepdims=True)
    return c * jax.lax.rsqrt(var + _LN_EPS) * g + b


def _ffn(x, w1_ref, b1_ref, w2_ref, b2_ref):
    h = jnp.dot(x.astype(jnp.bfloat16), w1_ref[...],
                preferred_element_type=jnp.float32) + b1_ref[...]
    h = jnp.maximum(h, 0.0)
    return (jnp.dot(h.astype(jnp.bfloat16), w2_ref[...],
                    preferred_element_type=jnp.float32) + b2_ref[...])


# ----------------------------- fused layer kernels ---------------------------

def _encoder_layer_kernel(x_ref, wqkv_ref, bqkv_ref, wo_ref, bo_ref,
                          g1_ref, be1_ref, w1_ref, bf1_ref, w2_ref, bf2_ref,
                          g2_ref, be2_ref, o_ref, *, num_heads):
    x = x_ref[0]                                             # (L, E)
    a = _mha(x, x, wqkv_ref, bqkv_ref, wo_ref, bo_ref, num_heads)
    g1 = g1_ref[...]
    b1 = be1_ref[...]
    x = _add_layernorm(x, a, g1, b1)
    # Reference quirk: attn output is added to the post-norm x a second time and
    # re-normalised with norm1 (the first feed_forward result is dead -> skipped).
    x = _add_layernorm(x, a, g1, b1)
    ff = _ffn(x, w1_ref, bf1_ref, w2_ref, bf2_ref)
    o_ref[0] = _add_layernorm(x, ff, g2_ref[...], be2_ref[...])


def _decoder_layer_kernel(x_ref, enc_ref,
                          swqkv_ref, sbqkv_ref, swo_ref, sbo_ref, g1_ref, be1_ref,
                          cwqkv_ref, cbqkv_ref, cwo_ref, cbo_ref, g2_ref, be2_ref,
                          w1_ref, bf1_ref, w2_ref, bf2_ref, g3_ref, be3_ref,
                          o_ref, *, num_heads):
    x = x_ref[0]                                             # (Lt, E)
    enc = enc_ref[0]                                         # (Ls, E)
    a = _mha(x, x, swqkv_ref, sbqkv_ref, swo_ref, sbo_ref, num_heads)
    x = _add_layernorm(x, a, g1_ref[...], be1_ref[...])
    a = _mha(x, enc, cwqkv_ref, cbqkv_ref, cwo_ref, cbo_ref, num_heads)
    x = _add_layernorm(x, a, g2_ref[...], be2_ref[...])
    ff = _ffn(x, w1_ref, bf1_ref, w2_ref, bf2_ref)
    o_ref[0] = _add_layernorm(x, ff, g3_ref[...], be3_ref[...])


def _linear_kernel(x_ref, w_ref, b_ref, o_ref):
    o_ref[0] = (jnp.dot(x_ref[0].astype(jnp.bfloat16), w_ref[...],
                        preferred_element_type=jnp.float32) + b_ref[...])


# ----------------------------- wrappers ---------------------------------------

def encoder_layer(x, p, num_heads):
    N, L, E = x.shape
    sa, ff = p["self_attn"], p["ff"]
    weights = (sa["wqkv"], sa["bqkv"], sa["wo"], sa["bo"],
               p["norm1_g"], p["norm1_b"],
               ff["w1"], ff["b1"], ff["w2"], ff["b2"],
               p["norm2_g"], p["norm2_b"])
    return pl.pallas_call(
        partial(_encoder_layer_kernel, num_heads=num_heads),
        out_shape=jax.ShapeDtypeStruct((N, L, E), jnp.float32),
        grid=(N,),
        in_specs=[_batch_spec(x.shape)] + [_const_spec(w) for w in weights],
        out_specs=_batch_spec((N, L, E)),
        compiler_params=_mosaic_params(),
    )(x, *weights)


def decoder_layer(x, enc, p, num_heads):
    N, Lt, E = x.shape
    sa, ca, ff = p["self_attn"], p["cross_attn"], p["ff"]
    weights = (sa["wqkv"], sa["bqkv"], sa["wo"], sa["bo"], p["norm1_g"], p["norm1_b"],
               ca["wqkv"], ca["bqkv"], ca["wo"], ca["bo"], p["norm2_g"], p["norm2_b"],
               ff["w1"], ff["b1"], ff["w2"], ff["b2"], p["norm3_g"], p["norm3_b"])
    return pl.pallas_call(
        partial(_decoder_layer_kernel, num_heads=num_heads),
        out_shape=jax.ShapeDtypeStruct((N, Lt, E), jnp.float32),
        grid=(N,),
        in_specs=[_batch_spec(x.shape), _batch_spec(enc.shape)]
                 + [_const_spec(w) for w in weights],
        out_specs=_batch_spec((N, Lt, E)),
        compiler_params=_mosaic_params(),
    )(x, enc, *weights)


def final_linear(x, w, b):
    N, L, E = x.shape
    V = w.shape[1]
    return pl.pallas_call(
        _linear_kernel,
        out_shape=jax.ShapeDtypeStruct((N, L, V), jnp.float32),
        grid=(N,),
        in_specs=[_batch_spec(x.shape), _const_spec(w), _const_spec(b)],
        out_specs=_batch_spec((N, L, V)),
        compiler_params=_mosaic_params(),
    )(x, w, b)


# ----------------------------- model -------------------------------------------

def _embed_batch_major(tokens, emb, pe):
    """Embedding + positional encoding; returns batch-major (N, L, E)."""
    L, N = tokens.shape
    x = jnp.take(emb, tokens, axis=0)          # (L, N, E)  (gather stays in XLA)
    x = x + pe[:, :N, :]                       # PE added along dim 1, as reference
    return x.transpose(1, 0, 2)                # (N, L, E)


def transformer_forward(src, tgt, params, num_heads):
    enc_x = _embed_batch_major(src, params["encoder"]["embedding"],
                               params["encoder"]["pe"])
    for lp in params["encoder"]["layers"]:
        enc_x = encoder_layer(enc_x, lp, num_heads)

    dec_x = _embed_batch_major(tgt, params["decoder"]["embedding"],
                               params["decoder"]["pe"])
    for lp in params["decoder"]["layers"]:
        dec_x = decoder_layer(dec_x, enc_x, lp, num_heads)

    out = final_linear(dec_x, params["final_w"], params["final_b"])   # (N, Lt, V)
    return out.transpose(1, 0, 2)                                     # (Lt, N, V)


# ----------------------------- params -------------------------------------------

def positional_encoding(max_len, d_model):
    position = jnp.arange(max_len, dtype=jnp.float32)[:, None]
    div_term = jnp.exp(jnp.arange(0, d_model, 2, dtype=jnp.float32)
                       * (-math.log(10000.0) / d_model))
    pe = jnp.zeros((max_len, d_model), dtype=jnp.float32)
    pe = pe.at[:, 0::2].set(jnp.sin(position * div_term))
    pe = pe.at[:, 1::2].set(jnp.cos(position * div_term))
    return pe[None]                                      # (1, max_len, d_model)


def _normal(key, shape, scale=0.05):
    return scale * jax.random.normal(key, shape, dtype=jnp.float32)


def init_mha(key, d_model, num_heads):
    k = jax.random.split(key, 4)
    dh = d_model // num_heads
    return dict(
        # projection is x @ wqkv[i] (pre-transposed once)
        wqkv=_normal(k[0], (3, d_model, d_model)).astype(jnp.bfloat16),
        bqkv=_normal(k[1], (3, 1, d_model)),
        # output projection pre-split per head: wo[h] == Wo_rows[h*dh:(h+1)*dh, :]
        wo=_normal(k[2], (d_model, d_model))
            .reshape(num_heads, dh, d_model).astype(jnp.bfloat16),
        bo=_normal(k[3], (1, d_model)),
    )


def init_ffn(key, d_model, d_ff):
    k = jax.random.split(key, 4)
    return dict(
        w1=_normal(k[0], (d_model, d_ff)).astype(jnp.bfloat16),
        b1=_normal(k[1], (1, d_ff)),
        w2=_normal(k[2], (d_ff, d_model)).astype(jnp.bfloat16),
        b2=_normal(k[3], (1, d_model)),
    )


def _ln_params(d_model):
    return jnp.ones((1, d_model), jnp.float32), jnp.zeros((1, d_model), jnp.float32)


def init_encoder_layer(key, d_model, num_heads, d_ff):
    k = jax.random.split(key, 2)
    g1, b1 = _ln_params(d_model)
    g2, b2 = _ln_params(d_model)
    return dict(self_attn=init_mha(k[0], d_model, num_heads),
                ff=init_ffn(k[1], d_model, d_ff),
                norm1_g=g1, norm1_b=b1, norm2_g=g2, norm2_b=b2)


def init_decoder_layer(key, d_model, num_heads, d_ff):
    k = jax.random.split(key, 3)
    g1, b1 = _ln_params(d_model)
    g2, b2 = _ln_params(d_model)
    g3, b3 = _ln_params(d_model)
    return dict(self_attn=init_mha(k[0], d_model, num_heads),
                cross_attn=init_mha(k[1], d_model, num_heads),
                ff=init_ffn(k[2], d_model, d_ff),
                norm1_g=g1, norm1_b=b1, norm2_g=g2, norm2_b=b2,
                norm3_g=g3, norm3_b=b3)


def init_transformer(key, num_layers, d_model, num_heads, d_ff,
                     input_vocab, target_vocab, max_seq_len):
    keys = jax.random.split(key, 4 + 2 * num_layers)
    enc = dict(
        embedding=_normal(keys[0], (input_vocab, d_model), scale=1.0),
        pe=positional_encoding(max_seq_len, d_model),
        layers=[init_encoder_layer(keys[4 + i], d_model, num_heads, d_ff)
                for i in range(num_layers)],
    )
    dec = dict(
        embedding=_normal(keys[1], (target_vocab, d_model), scale=1.0),
        pe=positional_encoding(max_seq_len, d_model),
        layers=[init_decoder_layer(keys[4 + num_layers + i], d_model, num_heads, d_ff)
                for i in range(num_layers)],
    )
    return dict(
        encoder=enc,
        decoder=dec,
        final_w=_normal(keys[2], (d_model, target_vocab)).astype(jnp.bfloat16),
        final_b=_normal(keys[3], (1, target_vocab)),
    )


# ----------------------------- main ---------------------------------------------

if __name__ == "__main__":
    num_layers = 2
    d_model = 32
    num_heads = 4
    d_ff = 64
    input_vocab = 48
    target_vocab = 40
    max_seq_len = 16

    root = jax.random.PRNGKey(0)
    kp, ks, kt = jax.random.split(root, 3)

    params = init_transformer(kp, num_layers, d_model, num_heads, d_ff,
                              input_vocab, target_vocab, max_seq_len)

    # token ids: (L, N) — L = attention sequence axis, N = dim the PE runs over
    src = jax.random.randint(ks, (10, 4), 0, input_vocab, dtype=jnp.int32)
    tgt = jax.random.randint(kt, (8, 4), 0, target_vocab, dtype=jnp.int32)

    forward = jax.jit(transformer_forward, static_argnames="num_heads")
    out = forward(src, tgt, params, num_heads=num_heads)
    out = jax.block_until_ready(out)

    assert out.shape == (8, 4, target_vocab), out.shape
    assert bool(jnp.all(jnp.isfinite(out)))
    print("KERNEL_OK")
</pallas_src>

<mosaic_0001>
module attributes {stable_mosaic.version = 11 : i64} {
  func.func @_encoder_layer_kernel(%arg0: i32, %arg1: memref<1x10x32xf32, #tpu.memory_space<vmem>>, %arg2: memref<3x32x32xbf16, #tpu.memory_space<vmem>>, %arg3: memref<3x1x32xf32, #tpu.memory_space<vmem>>, %arg4: memref<4x8x32xbf16, #tpu.memory_space<vmem>>, %arg5: memref<1x32xf32, #tpu.memory_space<vmem>>, %arg6: memref<1x32xf32, #tpu.memory_space<vmem>>, %arg7: memref<1x32xf32, #tpu.memory_space<vmem>>, %arg8: memref<32x64xbf16, #tpu.memory_space<vmem>>, %arg9: memref<1x64xf32, #tpu.memory_space<vmem>>, %arg10: memref<64x32xbf16, #tpu.memory_space<vmem>>, %arg11: memref<1x32xf32, #tpu.memory_space<vmem>>, %arg12: memref<1x32xf32, #tpu.memory_space<vmem>>, %arg13: memref<1x32xf32, #tpu.memory_space<vmem>>, %arg14: memref<1x10x32xf32, #tpu.memory_space<vmem>>) attributes {dimension_semantics = [#tpu.dimension_semantics<parallel>], iteration_bounds = array<i64: 4>, scalar_prefetch = 0 : i64, scratch_operands = 0 : i64, tpu.core_type = #tpu.core_type<tc>, window_params = [{transform_indices = @transform_0, window_bounds = array<i64: 1, 10, 32>}, {pipeline_mode = #tpu.pipeline_mode<synchronous>, transform_indices = @transform_1, window_bounds = array<i64: 3, 32, 32>}, {pipeline_mode = #tpu.pipeline_mode<synchronous>, transform_indices = @transform_2, window_bounds = array<i64: 3, 1, 32>}, {pipeline_mode = #tpu.pipeline_mode<synchronous>, transform_indices = @transform_3, window_bounds = array<i64: 4, 8, 32>}, {pipeline_mode = #tpu.pipeline_mode<synchronous>, transform_indices = @transform_4, window_bounds = array<i64: 1, 32>}, {pipeline_mode = #tpu.pipeline_mode<synchronous>, transform_indices = @transform_5, window_bounds = array<i64: 1, 32>}, {pipeline_mode = #tpu.pipeline_mode<synchronous>, transform_indices = @transform_6, window_bounds = array<i64: 1, 32>}, {pipeline_mode = #tpu.pipeline_mode<synchronous>, transform_indices = @transform_7, window_bounds = array<i64: 32, 64>}, {pipeline_mode = #tpu.pipeline_mode<synchronous>, transform_indices = @transform_8, window_bounds = array<i64: 1, 64>}, {pipeline_mode = #tpu.pipeline_mode<synchronous>, transform_indices = @transform_9, window_bounds = array<i64: 64, 32>}, {pipeline_mode = #tpu.pipeline_mode<synchronous>, transform_indices = @transform_10, window_bounds = array<i64: 1, 32>}, {pipeline_mode = #tpu.pipeline_mode<synchronous>, transform_indices = @transform_11, window_bounds = array<i64: 1, 32>}, {pipeline_mode = #tpu.pipeline_mode<synchronous>, transform_indices = @transform_12, window_bounds = array<i64: 1, 32>}, {transform_indices = @transform_13, window_bounds = array<i64: 1, 10, 32>}]} {
    %c0 = arith.constant 0 : index
    %c0_0 = arith.constant 0 : index
    %c0_1 = arith.constant 0 : index
    %0 = vector.load %arg1[%c0, %c0_0, %c0_1] : memref<1x10x32xf32, #tpu.memory_space<vmem>>, vector<1x10x32xf32>
    %1 = vector.shape_cast %0 : vector<1x10x32xf32> to vector<10x32xf32>
    %2 = arith.truncf %1 : vector<10x32xf32> to vector<10x32xbf16>
    %c0_2 = arith.constant 0 : index
    %c0_3 = arith.constant 0 : index
    %c0_4 = arith.constant 0 : index
    %3 = vector.load %arg2[%c0_2, %c0_3, %c0_4] : memref<3x32x32xbf16, #tpu.memory_space<vmem>>, vector<1x32x32xbf16>
    %4 = vector.shape_cast %3 : vector<1x32x32xbf16> to vector<32x32xbf16>
    %cst = arith.constant dense<0.000000e+00> : vector<10x32xf32>
    %5 = tpu.matmul %2, %4, %cst {dimension_numbers = #tpu.dot_dimension_numbers<[1], [0], [0], [1], [0, 0, 1, 1], [], []>} : vector<10x32xbf16>, vector<32x32xbf16>, vector<10x32xf32> -> vector<10x32xf32>
    %c0_5 = arith.constant 0 : index
    %c0_6 = arith.constant 0 : index
    %c0_7 = arith.constant 0 : index
    %6 = vector.load %arg3[%c0_5, %c0_6, %c0_7] : memref<3x1x32xf32, #tpu.memory_space<vmem>>, vector<1x1x32xf32>
    %7 = vector.shape_cast %6 : vector<1x1x32xf32> to vector<1x32xf32>
    %8 = vector.broadcast %7 : vector<1x32xf32> to vector<10x32xf32>
    %9 = arith.addf %5, %8 : vector<10x32xf32>
    %c1 = arith.constant 1 : index
    %c0_8 = arith.constant 0 : index
    %c0_9 = arith.constant 0 : index
    %10 = vector.load %arg2[%c1, %c0_8, %c0_9] : memref<3x32x32xbf16, #tpu.memory_space<vmem>>, vector<1x32x32xbf16>
    %11 = vector.shape_cast %10 : vector<1x32x32xbf16> to vector<32x32xbf16>
    %cst_10 = arith.constant dense<0.000000e+00> : vector<10x32xf32>
    %12 = tpu.matmul %2, %11, %cst_10 {dimension_numbers = #tpu.dot_dimension_numbers<[1], [0], [0], [1], [0, 0, 1, 1], [], []>} : vector<10x32xbf16>, vector<32x32xbf16>, vector<10x32xf32> -> vector<10x32xf32>
    %c1_11 = arith.constant 1 : index
    %c0_12 = arith.constant 0 : index
    %c0_13 = arith.constant 0 : index
    %13 = vector.load %arg3[%c1_11, %c0_12, %c0_13] : memref<3x1x32xf32, #tpu.memory_space<vmem>>, vector<1x1x32xf32>
    %14 = vector.shape_cast %13 : vector<1x1x32xf32> to vector<1x32xf32>
    %15 = vector.broadcast %14 : vector<1x32xf32> to vector<10x32xf32>
    %16 = arith.addf %12, %15 : vector<10x32xf32>
    %c2 = arith.constant 2 : index
    %c0_14 = arith.constant 0 : index
    %c0_15 = arith.constant 0 : index
    %17 = vector.load %arg2[%c2, %c0_14, %c0_15] : memref<3x32x32xbf16, #tpu.memory_space<vmem>>, vector<1x32x32xbf16>
    %18 = vector.shape_cast %17 : vector<1x32x32xbf16> to vector<32x32xbf16>
    %cst_16 = arith.constant dense<0.000000e+00> : vector<10x32xf32>
    %19 = tpu.matmul %2, %18, %cst_16 {dimension_numbers = #tpu.dot_dimension_numbers<[1], [0], [0], [1], [0, 0, 1, 1], [], []>} : vector<10x32xbf16>, vector<32x32xbf16>, vector<10x32xf32> -> vector<10x32xf32>
    %c2_17 = arith.constant 2 : index
    %c0_18 = arith.constant 0 : index
    %c0_19 = arith.constant 0 : index
    %20 = vector.load %arg3[%c2_17, %c0_18, %c0_19] : memref<3x1x32xf32, #tpu.memory_space<vmem>>, vector<1x1x32xf32>
    %21 = vector.shape_cast %20 : vector<1x1x32xf32> to vector<1x32xf32>
    %22 = vector.broadcast %21 : vector<1x32xf32> to vector<10x32xf32>
    %23 = arith.addf %19, %22 : vector<10x32xf32>
    %24 = vector.extract_strided_slice %9 {offsets = [0, 0], sizes = [10, 8], strides = [1, 1]} : vector<10x32xf32> to vector<10x8xf32>
    %cst_20 = arith.constant 0.353553385 : f32
    %25 = vector.broadcast %cst_20 : f32 to vector<10x8xf32>
    %26 = arith.mulf %24, %25 : vector<10x8xf32>
    %27 = arith.truncf %26 : vector<10x8xf32> to vector<10x8xbf16>
    %28 = vector.extract_strided_slice %16 {offsets = [0, 0], sizes = [10, 8], strides = [1, 1]} : vector<10x32xf32> to vector<10x8xf32>
    %29 = arith.truncf %28 : vector<10x8xf32> to vector<10x8xbf16>
    %30 = vector.extract_strided_slice %23 {offsets = [0, 0], sizes = [10, 8], strides = [1, 1]} : vector<10x32xf32> to vector<10x8xf32>
    %31 = arith.truncf %30 : vector<10x8xf32> to vector<10x8xbf16>
    %cst_21 = arith.constant dense<0.000000e+00> : vector<10x10xf32>
    %32 = tpu.matmul %27, %29, %cst_21 {dimension_numbers = #tpu.dot_dimension_numbers<[1], [1], [0], [0], [0, 0, 1, 0], [], []>} : vector<10x8xbf16>, vector<10x8xbf16>, vector<10x10xf32> -> vector<10x10xf32>
    %cst_22 = arith.constant dense<0xFF800000> : vector<10xf32>
    %33 = vector.multi_reduction <maximumf>, %32, %cst_22 [1] : vector<10x10xf32> to vector<10xf32>
    %34 = vector.shape_cast %33 : vector<10xf32> to vector<10x1xf32>
    %35 = vector.broadcast %34 : vector<10x1xf32> to vector<10x10xf32>
    %36 = arith.subf %32, %35 : vector<10x10xf32>
    %37 = math.exp %36 : vector<10x10xf32>
    %cst_23 = arith.constant dense<0.000000e+00> : vector<10xf32>
    %38 = vector.multi_reduction <add>, %37, %cst_23 [1] : vector<10x10xf32> to vector<10xf32>
    %39 = vector.shape_cast %38 : vector<10xf32> to vector<10x1xf32>
    %40 = tpu.reciprocal %39 {approx = true} : vector<10x1xf32> -> vector<10x1xf32>
    %41 = vector.broadcast %40 : vector<10x1xf32> to vector<10x10xf32>
    %42 = arith.mulf %37, %41 : vector<10x10xf32>
    %43 = arith.truncf %42 : vector<10x10xf32> to vector<10x10xbf16>
    %cst_24 = arith.constant dense<0.000000e+00> : vector<10x8xf32>
    %44 = tpu.matmul %43, %31, %cst_24 {dimension_numbers = #tpu.dot_dimension_numbers<[1], [0], [0], [1], [0, 0, 1, 1], [], []>} : vector<10x10xbf16>, vector<10x8xbf16>, vector<10x8xf32> -> vector<10x8xf32>
    %45 = arith.truncf %44 : vector<10x8xf32> to vector<10x8xbf16>
    %c0_25 = arith.constant 0 : index
    %c0_26 = arith.constant 0 : index
    %c0_27 = arith.constant 0 : index
    %46 = vector.load %arg4[%c0_25, %c0_26, %c0_27] : memref<4x8x32xbf16, #tpu.memory_space<vmem>>, vector<1x8x32xbf16>
    %47 = vector.shape_cast %46 : vector<1x8x32xbf16> to vector<8x32xbf16>
    %cst_28 = arith.constant dense<0.000000e+00> : vector<10x32xf32>
    %48 = tpu.matmul %45, %47, %cst_28 {dimension_numbers = #tpu.dot_dimension_numbers<[1], [0], [0], [1], [0, 0, 1, 1], [], []>} : vector<10x8xbf16>, vector<8x32xbf16>, vector<10x32xf32> -> vector<10x32xf32>
    %49 = vector.extract_strided_slice %9 {offsets = [0, 8], sizes = [10, 8], strides = [1, 1]} : vector<10x32xf32> to vector<10x8xf32>
    %cst_29 = arith.constant 0.353553385 : f32
    %50 = vector.broadcast %cst_29 : f32 to vector<10x8xf32>
    %51 = arith.mulf %49, %50 : vector<10x8xf32>
    %52 = arith.truncf %51 : vector<10x8xf32> to vector<10x8xbf16>
    %53 = vector.extract_strided_slice %16 {offsets = [0, 8], sizes = [10, 8], strides = [1, 1]} : vector<10x32xf32> to vector<10x8xf32>
    %54 = arith.truncf %53 : vector<10x8xf32> to vector<10x8xbf16>
    %55 = vector.extract_strided_slice %23 {offsets = [0, 8], sizes = [10, 8], strides = [1, 1]} : vector<10x32xf32> to vector<10x8xf32>
    %56 = arith.truncf %55 : vector<10x8xf32> to vector<10x8xbf16>
    %cst_30 = arith.constant dense<0.000000e+00> : vector<10x10xf32>
    %57 = tpu.matmul %52, %54, %cst_30 {dimension_numbers = #tpu.dot_dimension_numbers<[1], [1], [0], [0], [0, 0, 1, 0], [], []>} : vector<10x8xbf16>, vector<10x8xbf16>, vector<10x10xf32> -> vector<10x10xf32>
    %cst_31 = arith.constant dense<0xFF800000> : vector<10xf32>
    %58 = vector.multi_reduction <maximumf>, %57, %cst_31 [1] : vector<10x10xf32> to vector<10xf32>
    %59 = vector.shape_cast %58 : vector<10xf32> to vector<10x1xf32>
    %60 = vector.broadcast %59 : vector<10x1xf32> to vector<10x10xf32>
    %61 = arith.subf %57, %60 : vector<10x10xf32>
    %62 = math.exp %61 : vector<10x10xf32>
    %cst_32 = arith.constant dense<0.000000e+00> : vector<10xf32>
    %63 = vector.multi_reduction <add>, %62, %cst_32 [1] : vector<10x10xf32> to vector<10xf32>
    %64 = vector.shape_cast %63 : vector<10xf32> to vector<10x1xf32>
    %65 = tpu.reciprocal %64 {approx = true} : vector<10x1xf32> -> vector<10x1xf32>
    %66 = vector.broadcast %65 : vector<10x1xf32> to vector<10x10xf32>
    %67 = arith.mulf %62, %66 : vector<10x10xf32>
    %68 = arith.truncf %67 : vector<10x10xf32> to vector<10x10xbf16>
    %cst_33 = arith.constant dense<0.000000e+00> : vector<10x8xf32>
    %69 = tpu.matmul %68, %56, %cst_33 {dimension_numbers = #tpu.dot_dimension_numbers<[1], [0], [0], [1], [0, 0, 1, 1], [], []>} : vector<10x10xbf16>, vector<10x8xbf16>, vector<10x8xf32> -> vector<10x8xf32>
    %70 = arith.truncf %69 : vector<10x8xf32> to vector<10x8xbf16>
    %c1_34 = arith.constant 1 : index
    %c0_35 = arith.constant 0 : index
    %c0_36 = arith.constant 0 : index
    %71 = vector.load %arg4[%c1_34, %c0_35, %c0_36] : memref<4x8x32xbf16, #tpu.memory_space<vmem>>, vector<1x8x32xbf16>
    %72 = vector.shape_cast %71 : vector<1x8x32xbf16> to vector<8x32xbf16>
    %cst_37 = arith.constant dense<0.000000e+00> : vector<10x32xf32>
    %73 = tpu.matmul %70, %72, %cst_37 {dimension_numbers = #tpu.dot_dimension_numbers<[1], [0], [0], [1], [0, 0, 1, 1], [], []>} : vector<10x8xbf16>, vector<8x32xbf16>, vector<10x32xf32> -> vector<10x32xf32>
    %74 = arith.addf %48, %73 : vector<10x32xf32>
    %75 = vector.extract_strided_slice %9 {offsets = [0, 16], sizes = [10, 8], strides = [1, 1]} : vector<10x32xf32> to vector<10x8xf32>
    %cst_38 = arith.constant 0.353553385 : f32
    %76 = vector.broadcast %cst_38 : f32 to vector<10x8xf32>
    %77 = arith.mulf %75, %76 : vector<10x8xf32>
    %78 = arith.truncf %77 : vector<10x8xf32> to vector<10x8xbf16>
    %79 = vector.extract_strided_slice %16 {offsets = [0, 16], sizes = [10, 8], strides = [1, 1]} : vector<10x32xf32> to vector<10x8xf32>
    %80 = arith.truncf %79 : vector<10x8xf32> to vector<10x8xbf16>
    %81 = vector.extract_strided_slice %23 {offsets = [0, 16], sizes = [10, 8], strides = [1, 1]} : vector<10x32xf32> to vector<10x8xf32>
    %82 = arith.truncf %81 : vector<10x8xf32> to vector<10x8xbf16>
    %cst_39 = arith.constant dense<0.000000e+00> : vector<10x10xf32>
    %83 = tpu.matmul %78, %80, %cst_39 {dimension_numbers = #tpu.dot_dimension_numbers<[1], [1], [0], [0], [0, 0, 1, 0], [], []>} : vector<10x8xbf16>, vector<10x8xbf16>, vector<10x10xf32> -> vector<10x10xf32>
    %cst_40 = arith.constant dense<0xFF800000> : vector<10xf32>
    %84 = vector.multi_reduction <maximumf>, %83, %cst_40 [1] : vector<10x10xf32> to vector<10xf32>
    %85 = vector.shape_cast %84 : vector<10xf32> to vector<10x1xf32>
    %86 = vector.broadcast %85 : vector<10x1xf32> to vector<10x10xf32>
    %87 = arith.subf %83, %86 : vector<10x10xf32>
    %88 = math.exp %87 : vector<10x10xf32>
    %cst_41 = arith.constant dense<0.000000e+00> : vector<10xf32>
    %89 = vector.multi_reduction <add>, %88, %cst_41 [1] : vector<10x10xf32> to vector<10xf32>
    %90 = vector.shape_cast %89 : vector<10xf32> to vector<10x1xf32>
    %91 = tpu.reciprocal %90 {approx = true} : vector<10x1xf32> -> vector<10x1xf32>
    %92 = vector.broadcast %91 : vector<10x1xf32> to vector<10x10xf32>
    %93 = arith.mulf %88, %92 : vector<10x10xf32>
    %94 = arith.truncf %93 : vector<10x10xf32> to vector<10x10xbf16>
    %cst_42 = arith.constant dense<0.000000e+00> : vector<10x8xf32>
    %95 = tpu.matmul %94, %82, %cst_42 {dimension_numbers = #tpu.dot_dimension_numbers<[1], [0], [0], [1], [0, 0, 1, 1], [], []>} : vector<10x10xbf16>, vector<10x8xbf16>, vector<10x8xf32> -> vector<10x8xf32>
    %96 = arith.truncf %95 : vector<10x8xf32> to vector<10x8xbf16>
    %c2_43 = arith.constant 2 : index
    %c0_44 = arith.constant 0 : index
    %c0_45 = arith.constant 0 : index
    %97 = vector.load %arg4[%c2_43, %c0_44, %c0_45] : memref<4x8x32xbf16, #tpu.memory_space<vmem>>, vector<1x8x32xbf16>
    %98 = vector.shape_cast %97 : vector<1x8x32xbf16> to vector<8x32xbf16>
    %cst_46 = arith.constant dense<0.000000e+00> : vector<10x32xf32>
    %99 = tpu.matmul %96, %98, %cst_46 {dimension_numbers = #tpu.dot_dimension_numbers<[1], [0], [0], [1], [0, 0, 1, 1], [], []>} : vector<10x8xbf16>, vector<8x32xbf16>, vector<10x32xf32> -> vector<10x32xf32>
    %100 = arith.addf %74, %99 : vector<10x32xf32>
    %101 = vector.extract_strided_slice %9 {offsets = [0, 24], sizes = [10, 8], strides = [1, 1]} : vector<10x32xf32> to vector<10x8xf32>
    %cst_47 = arith.constant 0.353553385 : f32
    %102 = vector.broadcast %cst_47 : f32 to vector<10x8xf32>
    %103 = arith.mulf %101, %102 : vector<10x8xf32>
    %104 = arith.truncf %103 : vector<10x8xf32> to vector<10x8xbf16>
    %105 = vector.extract_strided_slice %16 {offsets = [0, 24], sizes = [10, 8], strides = [1, 1]} : vector<10x32xf32> to vector<10x8xf32>
    %106 = arith.truncf %105 : vector<10x8xf32> to vector<10x8xbf16>
    %107 = vector.extract_strided_slice %23 {offsets = [0, 24], sizes = [10, 8], strides = [1, 1]} : vector<10x32xf32> to vector<10x8xf32>
    %108 = arith.truncf %107 : vector<10x8xf32> to vector<10x8xbf16>
    %cst_48 = arith.constant dense<0.000000e+00> : vector<10x10xf32>
    %109 = tpu.matmul %104, %106, %cst_48 {dimension_numbers = #tpu.dot_dimension_numbers<[1], [1], [0], [0], [0, 0, 1, 0], [], []>} : vector<10x8xbf16>, vector<10x8xbf16>, vector<10x10xf32> -> vector<10x10xf32>
    %cst_49 = arith.constant dense<0xFF800000> : vector<10xf32>
    %110 = vector.multi_reduction <maximumf>, %109, %cst_49 [1] : vector<10x10xf32> to vector<10xf32>
    %111 = vector.shape_cast %110 : vector<10xf32> to vector<10x1xf32>
    %112 = vector.broadcast %111 : vector<10x1xf32> to vector<10x10xf32>
    %113 = arith.subf %109, %112 : vector<10x10xf32>
    %114 = math.exp %113 : vector<10x10xf32>
    %cst_50 = arith.constant dense<0.000000e+00> : vector<10xf32>
    %115 = vector.multi_reduction <add>, %114, %cst_50 [1] : vector<10x10xf32> to vector<10xf32>
    %116 = vector.shape_cast %115 : vector<10xf32> to vector<10x1xf32>
    %117 = tpu.reciprocal %116 {approx = true} : vector<10x1xf32> -> vector<10x1xf32>
    %118 = vector.broadcast %117 : vector<10x1xf32> to vector<10x10xf32>
    %119 = arith.mulf %114, %118 : vector<10x10xf32>
    %120 = arith.truncf %119 : vector<10x10xf32> to vector<10x10xbf16>
    %cst_51 = arith.constant dense<0.000000e+00> : vector<10x8xf32>
    %121 = tpu.matmul %120, %108, %cst_51 {dimension_numbers = #tpu.dot_dimension_numbers<[1], [0], [0], [1], [0, 0, 1, 1], [], []>} : vector<10x10xbf16>, vector<10x8xbf16>, vector<10x8xf32> -> vector<10x8xf32>
    %122 = arith.truncf %121 : vector<10x8xf32> to vector<10x8xbf16>
    %c3 = arith.constant 3 : index
    %c0_52 = arith.constant 0 : index
    %c0_53 = arith.constant 0 : index
    %123 = vector.load %arg4[%c3, %c0_52, %c0_53] : memref<4x8x32xbf16, #tpu.memory_space<vmem>>, vector<1x8x32xbf16>
    %124 = vector.shape_cast %123 : vector<1x8x32xbf16> to vector<8x32xbf16>
    %cst_54 = arith.constant dense<0.000000e+00> : vector<10x32xf32>
    %125 = tpu.matmul %122, %124, %cst_54 {dimension_numbers = #tpu.dot_dimension_numbers<[1], [0], [0], [1], [0, 0, 1, 1], [], []>} : vector<10x8xbf16>, vector<8x32xbf16>, vector<10x32xf32> -> vector<10x32xf32>
    %126 = arith.addf %100, %125 : vector<10x32xf32>
    %c0_55 = arith.constant 0 : index
    %c0_56 = arith.constant 0 : index
    %127 = vector.load %arg5[%c0_55, %c0_56] : memref<1x32xf32, #tpu.memory_space<vmem>>, vector<1x32xf32>
    %128 = vector.broadcast %127 : vector<1x32xf32> to vector<10x32xf32>
    %129 = arith.addf %126, %128 : vector<10x32xf32>
    %c0_57 = arith.constant 0 : index
    %c0_58 = arith.constant 0 : index
    %130 = vector.load %arg6[%c0_57, %c0_58] : memref<1x32xf32, #tpu.memory_space<vmem>>, vector<1x32xf32>
    %c0_59 = arith.constant 0 : index
    %c0_60 = arith.constant 0 : index
    %131 = vector.load %arg7[%c0_59, %c0_60] : memref<1x32xf32, #tpu.memory_space<vmem>>, vector<1x32xf32>
    %132 = arith.addf %1, %129 : vector<10x32xf32>
    %cst_61 = arith.constant dense<0.000000e+00> : vector<10xf32>
    %133 = vector.multi_reduction <add>, %132, %cst_61 [1] : vector<10x32xf32> to vector<10xf32>
    %134 = vector.shape_cast %133 : vector<10xf32> to vector<10x1xf32>
    %cst_62 = arith.constant 3.200000e+01 : f32
    %135 = vector.broadcast %cst_62 : f32 to vector<10x1xf32>
    %136 = arith.divf %134, %135 : vector<10x1xf32>
    %137 = vector.broadcast %136 : vector<10x1xf32> to vector<10x32xf32>
    %138 = arith.subf %132, %137 : vector<10x32xf32>
    %139 = arith.mulf %138, %138 : vector<10x32xf32>
    %cst_63 = arith.constant dense<0.000000e+00> : vector<10xf32>
    %140 = vector.multi_reduction <add>, %139, %cst_63 [1] : vector<10x32xf32> to vector<10xf32>
    %141 = vector.shape_cast %140 : vector<10xf32> to vector<10x1xf32>
    %cst_64 = arith.constant 3.200000e+01 : f32
    %142 = vector.broadcast %cst_64 : f32 to vector<10x1xf32>
    %143 = arith.divf %141, %142 : vector<10x1xf32>
    %cst_65 = arith.constant 9.99999974E-6 : f32
    %144 = vector.broadcast %cst_65 : f32 to vector<10x1xf32>
    %145 = arith.addf %143, %144 : vector<10x1xf32>
    %146 = math.rsqrt %145 : vector<10x1xf32>
    %147 = vector.broadcast %146 : vector<10x1xf32> to vector<10x32xf32>
    %148 = arith.mulf %138, %147 : vector<10x32xf32>
    %149 = vector.broadcast %130 : vector<1x32xf32> to vector<10x32xf32>
    %150 = arith.mulf %148, %149 : vector<10x32xf32>
    %151 = vector.broadcast %131 : vector<1x32xf32> to vector<10x32xf32>
    %152 = arith.addf %150, %151 : vector<10x32xf32>
    %153 = arith.addf %152, %129 : vector<10x32xf32>
    %cst_66 = arith.constant dense<0.000000e+00> : vector<10xf32>
    %154 = vector.multi_reduction <add>, %153, %cst_66 [1] : vector<10x32xf32> to vector<10xf32>
    %155 = vector.shape_cast %154 : vector<10xf32> to vector<10x1xf32>
    %cst_67 = arith.constant 3.200000e+01 : f32
    %156 = vector.broadcast %cst_67 : f32 to vector<10x1xf32>
    %157 = arith.divf %155, %156 : vector<10x1xf32>
    %158 = vector.broadcast %157 : vector<10x1xf32> to vector<10x32xf32>
    %159 = arith.subf %153, %158 : vector<10x32xf32>
    %160 = arith.mulf %159, %159 : vector<10x32xf32>
    %cst_68 = arith.constant dense<0.000000e+00> : vector<10xf32>
    %161 = vector.multi_reduction <add>, %160, %cst_68 [1] : vector<10x32xf32> to vector<10xf32>
    %162 = vector.shape_cast %161 : vector<10xf32> to vector<10x1xf32>
    %cst_69 = arith.constant 3.200000e+01 : f32
    %163 = vector.broadcast %cst_69 : f32 to vector<10x1xf32>
    %164 = arith.divf %162, %163 : vector<10x1xf32>
    %cst_70 = arith.constant 9.99999974E-6 : f32
    %165 = vector.broadcast %cst_70 : f32 to vector<10x1xf32>
    %166 = arith.addf %164, %165 : vector<10x1xf32>
    %167 = math.rsqrt %166 : vector<10x1xf32>
    %168 = vector.broadcast %167 : vector<10x1xf32> to vector<10x32xf32>
    %169 = arith.mulf %159, %168 : vector<10x32xf32>
    %170 = vector.broadcast %130 : vector<1x32xf32> to vector<10x32xf32>
    %171 = arith.mulf %169, %170 : vector<10x32xf32>
    %172 = vector.broadcast %131 : vector<1x32xf32> to vector<10x32xf32>
    %173 = arith.addf %171, %172 : vector<10x32xf32>
    %174 = arith.truncf %173 : vector<10x32xf32> to vector<10x32xbf16>
    %c0_71 = arith.constant 0 : index
    %c0_72 = arith.constant 0 : index
    %175 = vector.load %arg8[%c0_71, %c0_72] : memref<32x64xbf16, #tpu.memory_space<vmem>>, vector<32x64xbf16>
    %cst_73 = arith.constant dense<0.000000e+00> : vector<10x64xf32>
    %176 = tpu.matmul %174, %175, %cst_73 {dimension_numbers = #tpu.dot_dimension_numbers<[1], [0], [0], [1], [0, 0, 1, 1], [], []>} : vector<10x32xbf16>, vector<32x64xbf16>, vector<10x64xf32> -> vector<10x64xf32>
    %c0_74 = arith.constant 0 : index
    %c0_75 = arith.constant 0 : index
    %177 = vector.load %arg9[%c0_74, %c0_75] : memref<1x64xf32, #tpu.memory_space<vmem>>, vector<1x64xf32>
    %178 = vector.broadcast %177 : vector<1x64xf32> to vector<10x64xf32>
    %179 = arith.addf %176, %178 : vector<10x64xf32>
    %cst_76 = arith.constant 0.000000e+00 : f32
    %180 = vector.broadcast %cst_76 : f32 to vector<10x64xf32>
    %181 = arith.maximumf %179, %180 : vector<10x64xf32>
    %182 = arith.truncf %181 : vector<10x64xf32> to vector<10x64xbf16>
    %c0_77 = arith.constant 0 : index
    %c0_78 = arith.constant 0 : index
    %183 = vector.load %arg10[%c0_77, %c0_78] : memref<64x32xbf16, #tpu.memory_space<vmem>>, vector<64x32xbf16>
    %cst_79 = arith.constant dense<0.000000e+00> : vector<10x32xf32>
    %184 = tpu.matmul %182, %183, %cst_79 {dimension_numbers = #tpu.dot_dimension_numbers<[1], [0], [0], [1], [0, 0, 1, 1], [], []>} : vector<10x64xbf16>, vector<64x32xbf16>, vector<10x32xf32> -> vector<10x32xf32>
    %c0_80 = arith.constant 0 : index
    %c0_81 = arith.constant 0 : index
    %185 = vector.load %arg11[%c0_80, %c0_81] : memref<1x32xf32, #tpu.memory_space<vmem>>, vector<1x32xf32>
    %186 = vector.broadcast %185 : vector<1x32xf32> to vector<10x32xf32>
    %187 = arith.addf %184, %186 : vector<10x32xf32>
    %c0_82 = arith.constant 0 : index
    %c0_83 = arith.constant 0 : index
    %188 = vector.load %arg12[%c0_82, %c0_83] : memref<1x32xf32, #tpu.memory_space<vmem>>, vector<1x32xf32>
    %c0_84 = arith.constant 0 : index
    %c0_85 = arith.constant 0 : index
    %189 = vector.load %arg13[%c0_84, %c0_85] : memref<1x32xf32, #tpu.memory_space<vmem>>, vector<1x32xf32>
    %190 = arith.addf %173, %187 : vector<10x32xf32>
    %cst_86 = arith.constant dense<0.000000e+00> : vector<10xf32>
    %191 = vector.multi_reduction <add>, %190, %cst_86 [1] : vector<10x32xf32> to vector<10xf32>
    %192 = vector.shape_cast %191 : vector<10xf32> to vector<10x1xf32>
    %cst_87 = arith.constant 3.200000e+01 : f32
    %193 = vector.broadcast %cst_87 : f32 to vector<10x1xf32>
    %194 = arith.divf %192, %193 : vector<10x1xf32>
    %195 = vector.broadcast %194 : vector<10x1xf32> to vector<10x32xf32>
    %196 = arith.subf %190, %195 : vector<10x32xf32>
    %197 = arith.mulf %196, %196 : vector<10x32xf32>
    %cst_88 = arith.constant dense<0.000000e+00> : vector<10xf32>
    %198 = vector.multi_reduction <add>, %197, %cst_88 [1] : vector<10x32xf32> to vector<10xf32>
    %199 = vector.shape_cast %198 : vector<10xf32> to vector<10x1xf32>
    %cst_89 = arith.constant 3.200000e+01 : f32
    %200 = vector.broadcast %cst_89 : f32 to vector<10x1xf32>
    %201 = arith.divf %199, %200 : vector<10x1xf32>
    %cst_90 = arith.constant 9.99999974E-6 : f32
    %202 = vector.broadcast %cst_90 : f32 to vector<10x1xf32>
    %203 = arith.addf %201, %202 : vector<10x1xf32>
    %204 = math.rsqrt %203 : vector<10x1xf32>
    %205 = vector.broadcast %204 : vector<10x1xf32> to vector<10x32xf32>
    %206 = arith.mulf %196, %205 : vector<10x32xf32>
    %207 = vector.broadcast %188 : vector<1x32xf32> to vector<10x32xf32>
    %208 = arith.mulf %206, %207 : vector<10x32xf32>
    %209 = vector.broadcast %189 : vector<1x32xf32> to vector<10x32xf32>
    %210 = arith.addf %208, %209 : vector<10x32xf32>
    %c0_91 = arith.constant 0 : index
    %c0_92 = arith.constant 0 : index
    %c0_93 = arith.constant 0 : index
    %211 = vector.load %arg14[%c0_91, %c0_92, %c0_93] : memref<1x10x32xf32, #tpu.memory_space<vmem>>, vector<1x10x32xf32>
    %212 = vector.shape_cast %211 : vector<1x10x32xf32> to vector<10x32xf32>
    %213 = vector.shape_cast %210 : vector<10x32xf32> to vector<1x10x32xf32>
    tpu.vector_store %arg14[%c0_91, %c0_92, %c0_93], %213 {strides = array<i32>} : memref<1x10x32xf32, #tpu.memory_space<vmem>>, vector<1x10x32xf32>,
    return
  }
  func.func @transform_0(%arg0: i32) -> (i32, i32, i32) {
    %c0_i32 = arith.constant 0 : i32
    %c0_i32_0 = arith.constant 0 : i32
    %c0_i32_1 = arith.constant 0 : i32
    return %arg0, %c0_i32, %c0_i32_0 : i32, i32, i32
  }
  func.func @transform_1(%arg0: i32) -> (i32, i32, i32) {
    %c0_i32 = arith.constant 0 : i32
    %c0_i32_0 = arith.constant 0 : i32
    %c0_i32_1 = arith.constant 0 : i32
    %c0_i32_2 = arith.constant 0 : i32
    return %c0_i32, %c0_i32_0, %c0_i32_1 : i32, i32, i32
  }
  func.func @transform_2(%arg0: i32) -> (i32, i32, i32) {
    %c0_i32 = arith.constant 0 : i32
    %c0_i32_0 = arith.constant 0 : i32
    %c0_i32_1 = arith.constant 0 : i32
    %c0_i32_2 = arith.constant 0 : i32
    return %c0_i32, %c0_i32_0, %c0_i32_1 : i32, i32, i32
  }
  func.func @transform_3(%arg0: i32) -> (i32, i32, i32) {
    %c0_i32 = arith.constant 0 : i32
    %c0_i32_0 = arith.constant 0 : i32
    %c0_i32_1 = arith.constant 0 : i32
    %c0_i32_2 = arith.constant 0 : i32
    return %c0_i32, %c0_i32_0, %c0_i32_1 : i32, i32, i32
  }
  func.func @transform_4(%arg0: i32) -> (i32, i32) {
    %c0_i32 = arith.constant 0 : i32
    %c0_i32_0 = arith.constant 0 : i32
    %c0_i32_1 = arith.constant 0 : i32
    return %c0_i32, %c0_i32_0 : i32, i32
  }
  func.func @transform_5(%arg0: i32) -> (i32, i32) {
    %c0_i32 = arith.constant 0 : i32
    %c0_i32_0 = arith.constant 0 : i32
    %c0_i32_1 = arith.constant 0 : i32
    return %c0_i32, %c0_i32_0 : i32, i32
  }
  func.func @transform_6(%arg0: i32) -> (i32, i32) {
    %c0_i32 = arith.constant 0 : i32
    %c0_i32_0 = arith.constant 0 : i32
    %c0_i32_1 = arith.constant 0 : i32
    return %c0_i32, %c0_i32_0 : i32, i32
  }
  func.func @transform_7(%arg0: i32) -> (i32, i32) {
    %c0_i32 = arith.constant 0 : i32
    %c0_i32_0 = arith.constant 0 : i32
    %c0_i32_1 = arith.constant 0 : i32
    return %c0_i32, %c0_i32_0 : i32, i32
  }
  func.func @transform_8(%arg0: i32) -> (i32, i32) {
    %c0_i32 = arith.constant 0 : i32
    %c0_i32_0 = arith.constant 0 : i32
    %c0_i32_1 = arith.constant 0 : i32
    return %c0_i32, %c0_i32_0 : i32, i32
  }
  func.func @transform_9(%arg0: i32) -> (i32, i32) {
    %c0_i32 = arith.constant 0 : i32
    %c0_i32_0 = arith.constant 0 : i32
    %c0_i32_1 = arith.constant 0 : i32
    return %c0_i32, %c0_i32_0 : i32, i32
  }
  func.func @transform_10(%arg0: i32) -> (i32, i32) {
    %c0_i32 = arith.constant 0 : i32
    %c0_i32_0 = arith.constant 0 : i32
    %c0_i32_1 = arith.constant 0 : i32
    return %c0_i32, %c0_i32_0 : i32, i32
  }
  func.func @transform_11(%arg0: i32) -> (i32, i32) {
    %c0_i32 = arith.constant 0 : i32
    %c0_i32_0 = arith.constant 0 : i32
    %c0_i32_1 = arith.constant 0 : i32
    return %c0_i32, %c0_i32_0 : i32, i32
  }
  func.func @transform_12(%arg0: i32) -> (i32, i32) {
    %c0_i32 = arith.constant 0 : i32
    %c0_i32_0 = arith.constant 0 : i32
    %c0_i32_1 = arith.constant 0 : i32
    return %c0_i32, %c0_i32_0 : i32, i32
  }
  func.func @transform_13(%arg0: i32) -> (i32, i32, i32) {
    %c0_i32 = arith.constant 0 : i32
    %c0_i32_0 = arith.constant 0 : i32
    %c0_i32_1 = arith.constant 0 : i32
    return %arg0, %c0_i32, %c0_i32_0 : i32, i32, i32
  }
}

module attributes {stable_mosaic.version = 11 : i64} {
  func.func @_linear_kernel(%arg0: i32, %arg1: memref<1x8x32xf32, #tpu.memory_space<vmem>>, %arg2: memref<32x40xbf16, #tpu.memory_space<vmem>>, %arg3: memref<1x40xf32, #tpu.memory_space<vmem>>, %arg4: memref<1x8x40xf32, #tpu.memory_space<vmem>>) attributes {dimension_semantics = [#tpu.dimension_semantics<parallel>], iteration_bounds = array<i64: 4>, scalar_prefetch = 0 : i64, scratch_operands = 0 : i64, tpu.core_type = #tpu.core_type<tc>, window_params = [{transform_indices = @transform_0, window_bounds = array<i64: 1, 8, 32>}, {pipeline_mode = #tpu.pipeline_mode<synchronous>, transform_indices = @transform_1, window_bounds = array<i64: 32, 40>}, {pipeline_mode = #tpu.pipeline_mode<synchronous>, transform_indices = @transform_2, window_bounds = array<i64: 1, 40>}, {transform_indices = @transform_3, window_bounds = array<i64: 1, 8, 40>}]} {
    %c0 = arith.constant 0 : index
    %c0_0 = arith.constant 0 : index
    %c0_1 = arith.constant 0 : index
    %0 = vector.load %arg1[%c0, %c0_0, %c0_1] : memref<1x8x32xf32, #tpu.memory_space<vmem>>, vector<1x8x32xf32>
    %1 = vector.shape_cast %0 : vector<1x8x32xf32> to vector<8x32xf32>
    %2 = arith.truncf %1 : vector<8x32xf32> to vector<8x32xbf16>
    %c0_2 = arith.constant 0 : index
    %c0_3 = arith.constant 0 : index
    %3 = vector.load %arg2[%c0_2, %c0_3] : memref<32x40xbf16, #tpu.memory_space<vmem>>, vector<32x40xbf16>
    %cst = arith.constant dense<0.000000e+00> : vector<8x40xf32>
    %4 = tpu.matmul %2, %3, %cst {dimension_numbers = #tpu.dot_dimension_numbers<[1], [0], [0], [1], [0, 0, 1, 1], [], []>} : vector<8x32xbf16>, vector<32x40xbf16>, vector<8x40xf32> -> vector<8x40xf32>
    %c0_4 = arith.constant 0 : index
    %c0_5 = arith.constant 0 : index
    %5 = vector.load %arg3[%c0_4, %c0_5] : memref<1x40xf32, #tpu.memory_space<vmem>>, vector<1x40xf32>
    %6 = vector.broadcast %5 : vector<1x40xf32> to vector<8x40xf32>
    %7 = arith.addf %4, %6 : vector<8x40xf32>
    %c0_6 = arith.constant 0 : index
    %c0_7 = arith.constant 0 : index
    %c0_8 = arith.constant 0 : index
    %8 = vector.load %arg4[%c0_6, %c0_7, %c0_8] : memref<1x8x40xf32, #tpu.memory_space<vmem>>, vector<1x8x40xf32>
    %9 = vector.shape_cast %8 : vector<1x8x40xf32> to vector<8x40xf32>
    %10 = vector.shape_cast %7 : vector<8x40xf32> to vector<1x8x40xf32>
    tpu.vector_store %arg4[%c0_6, %c0_7, %c0_8], %10 {strides = array<i32>} : memref<1x8x40xf32, #tpu.memory_space<vmem>>, vector<1x8x40xf32>,
    return
  }
  func.func @transform_0(%arg0: i32) -> (i32, i32, i32) {
    %c0_i32 = arith.constant 0 : i32
    %c0_i32_0 = arith.constant 0 : i32
    %c0_i32_1 = arith.constant 0 : i32
    return %arg0, %c0_i32, %c0_i32_0 : i32, i32, i32
  }
  func.func @transform_1(%arg0: i32) -> (i32, i32) {
    %c0_i32 = arith.constant 0 : i32
    %c0_i32_0 = arith.constant 0 : i32
    %c0_i32_1 = arith.constant 0 : i32
    return %c0_i32, %c0_i32_0 : i32, i32
  }
  func.func @transform_2(%arg0: i32) -> (i32, i32) {
    %c0_i32 = arith.constant 0 : i32
    %c0_i32_0 = arith.constant 0 : i32
    %c0_i32_1 = arith.constant 0 : i32
    return %c0_i32, %c0_i32_0 : i32, i32
  }
  func.func @transform_3(%arg0: i32) -> (i32, i32, i32) {
    %c0_i32 = arith.constant 0 : i32
    %c0_i32_0 = arith.constant 0 : i32
    %c0_i32_1 = arith.constant 0 : i32
    return %arg0, %c0_i32, %c0_i32_0 : i32, i32, i32
  }
}

module attributes {stable_mosaic.version = 11 : i64} {
  func.func @_decoder_layer_kernel(%arg0: i32, %arg1: memref<1x8x32xf32, #tpu.memory_space<vmem>>, %arg2: memref<1x10x32xf32, #tpu.memory_space<vmem>>, %arg3: memref<3x32x32xbf16, #tpu.memory_space<vmem>>, %arg4: memref<3x1x32xf32, #tpu.memory_space<vmem>>, %arg5: memref<4x8x32xbf16, #tpu.memory_space<vmem>>, %arg6: memref<1x32xf32, #tpu.memory_space<vmem>>, %arg7: memref<1x32xf32, #tpu.memory_space<vmem>>, %arg8: memref<1x32xf32, #tpu.memory_space<vmem>>, %arg9: memref<3x32x32xbf16, #tpu.memory_space<vmem>>, %arg10: memref<3x1x32xf32, #tpu.memory_space<vmem>>, %arg11: memref<4x8x32xbf16, #tpu.memory_space<vmem>>, %arg12: memref<1x32xf32, #tpu.memory_space<vmem>>, %arg13: memref<1x32xf32, #tpu.memory_space<vmem>>, %arg14: memref<1x32xf32, #tpu.memory_space<vmem>>, %arg15: memref<32x64xbf16, #tpu.memory_space<vmem>>, %arg16: memref<1x64xf32, #tpu.memory_space<vmem>>, %arg17: memref<64x32xbf16, #tpu.memory_space<vmem>>, %arg18: memref<1x32xf32, #tpu.memory_space<vmem>>, %arg19: memref<1x32xf32, #tpu.memory_space<vmem>>, %arg20: memref<1x32xf32, #tpu.memory_space<vmem>>, %arg21: memref<1x8x32xf32, #tpu.memory_space<vmem>>) attributes {dimension_semantics = [#tpu.dimension_semantics<parallel>], iteration_bounds = array<i64: 4>, scalar_prefetch = 0 : i64, scratch_operands = 0 : i64, tpu.core_type = #tpu.core_type<tc>, window_params = [{transform_indices = @transform_0, window_bounds = array<i64: 1, 8, 32>}, {transform_indices = @transform_1, window_bounds = array<i64: 1, 10, 32>}, {pipeline_mode = #tpu.pipeline_mode<synchronous>, transform_indices = @transform_2, window_bounds = array<i64: 3, 32, 32>}, {pipeline_mode = #tpu.pipeline_mode<synchronous>, transform_indices = @transform_3, window_bounds = array<i64: 3, 1, 32>}, {pipeline_mode = #tpu.pipeline_mode<synchronous>, transform_indices = @transform_4, window_bounds = array<i64: 4, 8, 32>}, {pipeline_mode = #tpu.pipeline_mode<synchronous>, transform_indices = @transform_5, window_bounds = array<i64: 1, 32>}, {pipeline_mode = #tpu.pipeline_mode<synchronous>, transform_indices = @transform_6, window_bounds = array<i64: 1, 32>}, {pipeline_mode = #tpu.pipeline_mode<synchronous>, transform_indices = @transform_7, window_bounds = array<i64: 1, 32>}, {pipeline_mode = #tpu.pipeline_mode<synchronous>, transform_indices = @transform_8, window_bounds = array<i64: 3, 32, 32>}, {pipeline_mode = #tpu.pipeline_mode<synchronous>, transform_indices = @transform_9, window_bounds = array<i64: 3, 1, 32>}, {pipeline_mode = #tpu.pipeline_mode<synchronous>, transform_indices = @transform_10, window_bounds = array<i64: 4, 8, 32>}, {pipeline_mode = #tpu.pipeline_mode<synchronous>, transform_indices = @transform_11, window_bounds = array<i64: 1, 32>}, {pipeline_mode = #tpu.pipeline_mode<synchronous>, transform_indices = @transform_12, window_bounds = array<i64: 1, 32>}, {pipeline_mode = #tpu.pipeline_mode<synchronous>, transform_indices = @transform_13, window_bounds = array<i64: 1, 32>}, {pipeline_mode = #tpu.pipeline_mode<synchronous>, transform_indices = @transform_14, window_bounds = array<i64: 32, 64>}, {pipeline_mode = #tpu.pipeline_mode<synchronous>, transform_indices = @transform_15, window_bounds = array<i64: 1, 64>}, {pipeline_mode = #tpu.pipeline_mode<synchronous>, transform_indices = @transform_16, window_bounds = array<i64: 64, 32>}, {pipeline_mode = #tpu.pipeline_mode<synchronous>, transform_indices = @transform_17, window_bounds = array<i64: 1, 32>}, {pipeline_mode = #tpu.pipeline_mode<synchronous>, transform_indices = @transform_18, window_bounds = array<i64: 1, 32>}, {pipeline_mode = #tpu.pipeline_mode<synchronous>, transform_indices = @transform_19, window_bounds = array<i64: 1, 32>}, {transform_indices = @transform_20, window_bounds = array<i64: 1, 8, 32>}]} {
    %c0 = arith.constant 0 : index
    %c0_0 = arith.constant 0 : index
    %c0_1 = arith.constant 0 : index
    %0 = vector.load %arg1[%c0, %c0_0, %c0_1] : memref<1x8x32xf32, #tpu.memory_space<vmem>>, vector<1x8x32xf32>
    %1 = vector.shape_cast %0 : vector<1x8x32xf32> to vector<8x32xf32>
    %c0_2 = arith.constant 0 : index
    %c0_3 = arith.constant 0 : index
    %c0_4 = arith.constant 0 : index
    %2 = vector.load %arg2[%c0_2, %c0_3, %c0_4] : memref<1x10x32xf32, #tpu.memory_space<vmem>>, vector<1x10x32xf32>
    %3 = vector.shape_cast %2 : vector<1x10x32xf32> to vector<10x32xf32>
    %4 = arith.truncf %1 : vector<8x32xf32> to vector<8x32xbf16>
    %c0_5 = arith.constant 0 : index
    %c0_6 = arith.constant 0 : index
    %c0_7 = arith.constant 0 : index
    %5 = vector.load %arg3[%c0_5, %c0_6, %c0_7] : memref<3x32x32xbf16, #tpu.memory_space<vmem>>, vector<1x32x32xbf16>
    %6 = vector.shape_cast %5 : vector<1x32x32xbf16> to vector<32x32xbf16>
    %cst = arith.constant dense<0.000000e+00> : vector<8x32xf32>
    %7 = tpu.matmul %4, %6, %cst {dimension_numbers = #tpu.dot_dimension_numbers<[1], [0], [0], [1], [0, 0, 1, 1], [], []>} : vector<8x32xbf16>, vector<32x32xbf16>, vector<8x32xf32> -> vector<8x32xf32>
    %c0_8 = arith.constant 0 : index
    %c0_9 = arith.constant 0 : index
    %c0_10 = arith.constant 0 : index
    %8 = vector.load %arg4[%c0_8, %c0_9, %c0_10] : memref<3x1x32xf32, #tpu.memory_space<vmem>>, vector<1x1x32xf32>
    %9 = vector.shape_cast %8 : vector<1x1x32xf32> to vector<1x32xf32>
    %10 = vector.broadcast %9 : vector<1x32xf32> to vector<8x32xf32>
    %11 = arith.addf %7, %10 : vector<8x32xf32>
    %c1 = arith.constant 1 : index
    %c0_11 = arith.constant 0 : index
    %c0_12 = arith.constant 0 : index
    %12 = vector.load %arg3[%c1, %c0_11, %c0_12] : memref<3x32x32xbf16, #tpu.memory_space<vmem>>, vector<1x32x32xbf16>
    %13 = vector.shape_cast %12 : vector<1x32x32xbf16> to vector<32x32xbf16>
    %cst_13 = arith.constant dense<0.000000e+00> : vector<8x32xf32>
    %14 = tpu.matmul %4, %13, %cst_13 {dimension_numbers = #tpu.dot_dimension_numbers<[1], [0], [0], [1], [0, 0, 1, 1], [], []>} : vector<8x32xbf16>, vector<32x32xbf16>, vector<8x32xf32> -> vector<8x32xf32>
    %c1_14 = arith.constant 1 : index
    %c0_15 = arith.constant 0 : index
    %c0_16 = arith.constant 0 : index
    %15 = vector.load %arg4[%c1_14, %c0_15, %c0_16] : memref<3x1x32xf32, #tpu.memory_space<vmem>>, vector<1x1x32xf32>
    %16 = vector.shape_cast %15 : vector<1x1x32xf32> to vector<1x32xf32>
    %17 = vector.broadcast %16 : vector<1x32xf32> to vector<8x32xf32>
    %18 = arith.addf %14, %17 : vector<8x32xf32>
    %c2 = arith.constant 2 : index
    %c0_17 = arith.constant 0 : index
    %c0_18 = arith.constant 0 : index
    %19 = vector.load %arg3[%c2, %c0_17, %c0_18] : memref<3x32x32xbf16, #tpu.memory_space<vmem>>, vector<1x32x32xbf16>
    %20 = vector.shape_cast %19 : vector<1x32x32xbf16> to vector<32x32xbf16>
    %cst_19 = arith.constant dense<0.000000e+00> : vector<8x32xf32>
    %21 = tpu.matmul %4, %20, %cst_19 {dimension_numbers = #tpu.dot_dimension_numbers<[1], [0], [0], [1], [0, 0, 1, 1], [], []>} : vector<8x32xbf16>, vector<32x32xbf16>, vector<8x32xf32> -> vector<8x32xf32>
    %c2_20 = arith.constant 2 : index
    %c0_21 = arith.constant 0 : index
    %c0_22 = arith.constant 0 : index
    %22 = vector.load %arg4[%c2_20, %c0_21, %c0_22] : memref<3x1x32xf32, #tpu.memory_space<vmem>>, vector<1x1x32xf32>
    %23 = vector.shape_cast %22 : vector<1x1x32xf32> to vector<1x32xf32>
    %24 = vector.broadcast %23 : vector<1x32xf32> to vector<8x32xf32>
    %25 = arith.addf %21, %24 : vector<8x32xf32>
    %26 = vector.extract_strided_slice %11 {offsets = [0, 0], sizes = [8, 8], strides = [1, 1]} : vector<8x32xf32> to vector<8x8xf32>
    %cst_23 = arith.constant 0.353553385 : f32
    %27 = vector.broadcast %cst_23 : f32 to vector<8x8xf32>
    %28 = arith.mulf %26, %27 : vector<8x8xf32>
    %29 = arith.truncf %28 : vector<8x8xf32> to vector<8x8xbf16>
    %30 = vector.extract_strided_slice %18 {offsets = [0, 0], sizes = [8, 8], strides = [1, 1]} : vector<8x32xf32> to vector<8x8xf32>
    %31 = arith.truncf %30 : vector<8x8xf32> to vector<8x8xbf16>
    %32 = vector.extract_strided_slice %25 {offsets = [0, 0], sizes = [8, 8], strides = [1, 1]} : vector<8x32xf32> to vector<8x8xf32>
    %33 = arith.truncf %32 : vector<8x8xf32> to vector<8x8xbf16>
    %cst_24 = arith.constant dense<0.000000e+00> : vector<8x8xf32>
    %34 = tpu.matmul %29, %31, %cst_24 {dimension_numbers = #tpu.dot_dimension_numbers<[1], [1], [0], [0], [0, 0, 1, 0], [], []>} : vector<8x8xbf16>, vector<8x8xbf16>, vector<8x8xf32> -> vector<8x8xf32>
    %cst_25 = arith.constant dense<0xFF800000> : vector<8xf32>
    %35 = vector.multi_reduction <maximumf>, %34, %cst_25 [1] : vector<8x8xf32> to vector<8xf32>
    %36 = vector.shape_cast %35 : vector<8xf32> to vector<8x1xf32>
    %37 = vector.broadcast %36 : vector<8x1xf32> to vector<8x8xf32>
    %38 = arith.subf %34, %37 : vector<8x8xf32>
    %39 = math.exp %38 : vector<8x8xf32>
    %cst_26 = arith.constant dense<0.000000e+00> : vector<8xf32>
    %40 = vector.multi_reduction <add>, %39, %cst_26 [1] : vector<8x8xf32> to vector<8xf32>
    %41 = vector.shape_cast %40 : vector<8xf32> to vector<8x1xf32>
    %42 = tpu.reciprocal %41 {approx = true} : vector<8x1xf32> -> vector<8x1xf32>
    %43 = vector.broadcast %42 : vector<8x1xf32> to vector<8x8xf32>
    %44 = arith.mulf %39, %43 : vector<8x8xf32>
    %45 = arith.truncf %44 : vector<8x8xf32> to vector<8x8xbf16>
    %cst_27 = arith.constant dense<0.000000e+00> : vector<8x8xf32>
    %46 = tpu.matmul %45, %33, %cst_27 {dimension_numbers = #tpu.dot_dimension_numbers<[1], [0], [0], [1], [0, 0, 1, 1], [], []>} : vector<8x8xbf16>, vector<8x8xbf16>, vector<8x8xf32> -> vector<8x8xf32>
    %47 = arith.truncf %46 : vector<8x8xf32> to vector<8x8xbf16>
    %c0_28 = arith.constant 0 : index
    %c0_29 = arith.constant 0 : index
    %c0_30 = arith.constant 0 : index
    %48 = vector.load %arg5[%c0_28, %c0_29, %c0_30] : memref<4x8x32xbf16, #tpu.memory_space<vmem>>, vector<1x8x32xbf16>
    %49 = vector.shape_cast %48 : vector<1x8x32xbf16> to vector<8x32xbf16>
    %cst_31 = arith.constant dense<0.000000e+00> : vector<8x32xf32>
    %50 = tpu.matmul %47, %49, %cst_31 {dimension_numbers = #tpu.dot_dimension_numbers<[1], [0], [0], [1], [0, 0, 1, 1], [], []>} : vector<8x8xbf16>, vector<8x32xbf16>, vector<8x32xf32> -> vector<8x32xf32>
    %51 = vector.extract_strided_slice %11 {offsets = [0, 8], sizes = [8, 8], strides = [1, 1]} : vector<8x32xf32> to vector<8x8xf32>
    %cst_32 = arith.constant 0.353553385 : f32
    %52 = vector.broadcast %cst_32 : f32 to vector<8x8xf32>
    %53 = arith.mulf %51, %52 : vector<8x8xf32>
    %54 = arith.truncf %53 : vector<8x8xf32> to vector<8x8xbf16>
    %55 = vector.extract_strided_slice %18 {offsets = [0, 8], sizes = [8, 8], strides = [1, 1]} : vector<8x32xf32> to vector<8x8xf32>
    %56 = arith.truncf %55 : vector<8x8xf32> to vector<8x8xbf16>
    %57 = vector.extract_strided_slice %25 {offsets = [0, 8], sizes = [8, 8], strides = [1, 1]} : vector<8x32xf32> to vector<8x8xf32>
    %58 = arith.truncf %57 : vector<8x8xf32> to vector<8x8xbf16>
    %cst_33 = arith.constant dense<0.000000e+00> : vector<8x8xf32>
    %59 = tpu.matmul %54, %56, %cst_33 {dimension_numbers = #tpu.dot_dimension_numbers<[1], [1], [0], [0], [0, 0, 1, 0], [], []>} : vector<8x8xbf16>, vector<8x8xbf16>, vector<8x8xf32> -> vector<8x8xf32>
    %cst_34 = arith.constant dense<0xFF800000> : vector<8xf32>
    %60 = vector.multi_reduction <maximumf>, %59, %cst_34 [1] : vector<8x8xf32> to vector<8xf32>
    %61 = vector.shape_cast %60 : vector<8xf32> to vector<8x1xf32>
    %62 = vector.broadcast %61 : vector<8x1xf32> to vector<8x8xf32>
    %63 = arith.subf %59, %62 : vector<8x8xf32>
    %64 = math.exp %63 : vector<8x8xf32>
    %cst_35 = arith.constant dense<0.000000e+00> : vector<8xf32>
    %65 = vector.multi_reduction <add>, %64, %cst_35 [1] : vector<8x8xf32> to vector<8xf32>
    %66 = vector.shape_cast %65 : vector<8xf32> to vector<8x1xf32>
    %67 = tpu.reciprocal %66 {approx = true} : vector<8x1xf32> -> vector<8x1xf32>
    %68 = vector.broadcast %67 : vector<8x1xf32> to vector<8x8xf32>
    %69 = arith.mulf %64, %68 : vector<8x8xf32>
    %70 = arith.truncf %69 : vector<8x8xf32> to vector<8x8xbf16>
    %cst_36 = arith.constant dense<0.000000e+00> : vector<8x8xf32>
    %71 = tpu.matmul %70, %58, %cst_36 {dimension_numbers = #tpu.dot_dimension_numbers<[1], [0], [0], [1], [0, 0, 1, 1], [], []>} : vector<8x8xbf16>, vector<8x8xbf16>, vector<8x8xf32> -> vector<8x8xf32>
    %72 = arith.truncf %71 : vector<8x8xf32> to vector<8x8xbf16>
    %c1_37 = arith.constant 1 : index
    %c0_38 = arith.constant 0 : index
    %c0_39 = arith.constant 0 : index
    %73 = vector.load %arg5[%c1_37, %c0_38, %c0_39] : memref<4x8x32xbf16, #tpu.memory_space<vmem>>, vector<1x8x32xbf16>
    %74 = vector.shape_cast %73 : vector<1x8x32xbf16> to vector<8x32xbf16>
    %cst_40 = arith.constant dense<0.000000e+00> : vector<8x32xf32>
    %75 = tpu.matmul %72, %74, %cst_40 {dimension_numbers = #tpu.dot_dimension_numbers<[1], [0], [0], [1], [0, 0, 1, 1], [], []>} : vector<8x8xbf16>, vector<8x32xbf16>, vector<8x32xf32> -> vector<8x32xf32>
    %76 = arith.addf %50, %75 : vector<8x32xf32>
    %77 = vector.extract_strided_slice %11 {offsets = [0, 16], sizes = [8, 8], strides = [1, 1]} : vector<8x32xf32> to vector<8x8xf32>
    %cst_41 = arith.constant 0.353553385 : f32
    %78 = vector.broadcast %cst_41 : f32 to vector<8x8xf32>
    %79 = arith.mulf %77, %78 : vector<8x8xf32>
    %80 = arith.truncf %79 : vector<8x8xf32> to vector<8x8xbf16>
    %81 = vector.extract_strided_slice %18 {offsets = [0, 16], sizes = [8, 8], strides = [1, 1]} : vector<8x32xf32> to vector<8x8xf32>
    %82 = arith.truncf %81 : vector<8x8xf32> to vector<8x8xbf16>
    %83 = vector.extract_strided_slice %25 {offsets = [0, 16], sizes = [8, 8], strides = [1, 1]} : vector<8x32xf32> to vector<8x8xf32>
    %84 = arith.truncf %83 : vector<8x8xf32> to vector<8x8xbf16>
    %cst_42 = arith.constant dense<0.000000e+00> : vector<8x8xf32>
    %85 = tpu.matmul %80, %82, %cst_42 {dimension_numbers = #tpu.dot_dimension_numbers<[1], [1], [0], [0], [0, 0, 1, 0], [], []>} : vector<8x8xbf16>, vector<8x8xbf16>, vector<8x8xf32> -> vector<8x8xf32>
    %cst_43 = arith.constant dense<0xFF800000> : vector<8xf32>
    %86 = vector.multi_reduction <maximumf>, %85, %cst_43 [1] : vector<8x8xf32> to vector<8xf32>
    %87 = vector.shape_cast %86 : vector<8xf32> to vector<8x1xf32>
    %88 = vector.broadcast %87 : vector<8x1xf32> to vector<8x8xf32>
    %89 = arith.subf %85, %88 : vector<8x8xf32>
    %90 = math.exp %89 : vector<8x8xf32>
    %cst_44 = arith.constant dense<0.000000e+00> : vector<8xf32>
    %91 = vector.multi_reduction <add>, %90, %cst_44 [1] : vector<8x8xf32> to vector<8xf32>
    %92 = vector.shape_cast %91 : vector<8xf32> to vector<8x1xf32>
    %93 = tpu.reciprocal %92 {approx = true} : vector<8x1xf32> -> vector<8x1xf32>
    %94 = vector.broadcast %93 : vector<8x1xf32> to vector<8x8xf32>
    %95 = arith.mulf %90, %94 : vector<8x8xf32>
    %96 = arith.truncf %95 : vector<8x8xf32> to vector<8x8xbf16>
    %cst_45 = arith.constant dense<0.000000e+00> : vector<8x8xf32>
    %97 = tpu.matmul %96, %84, %cst_45 {dimension_numbers = #tpu.dot_dimension_numbers<[1], [0], [0], [1], [0, 0, 1, 1], [], []>} : vector<8x8xbf16>, vector<8x8xbf16>, vector<8x8xf32> -> vector<8x8xf32>
    %98 = arith.truncf %97 : vector<8x8xf32> to vector<8x8xbf16>
    %c2_46 = arith.constant 2 : index
    %c0_47 = arith.constant 0 : index
    %c0_48 = arith.constant 0 : index
    %99 = vector.load %arg5[%c2_46, %c0_47, %c0_48] : memref<4x8x32xbf16, #tpu.memory_space<vmem>>, vector<1x8x32xbf16>
    %100 = vector.shape_cast %99 : vector<1x8x32xbf16> to vector<8x32xbf16>
    %cst_49 = arith.constant dense<0.000000e+00> : vector<8x32xf32>
    %101 = tpu.matmul %98, %100, %cst_49 {dimension_numbers = #tpu.dot_dimension_numbers<[1], [0], [0], [1], [0, 0, 1, 1], [], []>} : vector<8x8xbf16>, vector<8x32xbf16>, vector<8x32xf32> -> vector<8x32xf32>
    %102 = arith.addf %76, %101 : vector<8x32xf32>
    %103 = vector.extract_strided_slice %11 {offsets = [0, 24], sizes = [8, 8], strides = [1, 1]} : vector<8x32xf32> to vector<8x8xf32>
    %cst_50 = arith.constant 0.353553385 : f32
    %104 = vector.broadcast %cst_50 : f32 to vector<8x8xf32>
    %105 = arith.mulf %103, %104 : vector<8x8xf32>
    %106 = arith.truncf %105 : vector<8x8xf32> to vector<8x8xbf16>
    %107 = vector.extract_strided_slice %18 {offsets = [0, 24], sizes = [8, 8], strides = [1, 1]} : vector<8x32xf32> to vector<8x8xf32>
    %108 = arith.truncf %107 : vector<8x8xf32> to vector<8x8xbf16>
    %109 = vector.extract_strided_slice %25 {offsets = [0, 24], sizes = [8, 8], strides = [1, 1]} : vector<8x32xf32> to vector<8x8xf32>
    %110 = arith.truncf %109 : vector<8x8xf32> to vector<8x8xbf16>
    %cst_51 = arith.constant dense<0.000000e+00> : vector<8x8xf32>
    %111 = tpu.matmul %106, %108, %cst_51 {dimension_numbers = #tpu.dot_dimension_numbers<[1], [1], [0], [0], [0, 0, 1, 0], [], []>} : vector<8x8xbf16>, vector<8x8xbf16>, vector<8x8xf32> -> vector<8x8xf32>
    %cst_52 = arith.constant dense<0xFF800000> : vector<8xf32>
    %112 = vector.multi_reduction <maximumf>, %111, %cst_52 [1] : vector<8x8xf32> to vector<8xf32>
    %113 = vector.shape_cast %112 : vector<8xf32> to vector<8x1xf32>
    %114 = vector.broadcast %113 : vector<8x1xf32> to vector<8x8xf32>
    %115 = arith.subf %111, %114 : vector<8x8xf32>
    %116 = math.exp %115 : vector<8x8xf32>
    %cst_53 = arith.constant dense<0.000000e+00> : vector<8xf32>
    %117 = vector.multi_reduction <add>, %116, %cst_53 [1] : vector<8x8xf32> to vector<8xf32>
    %118 = vector.shape_cast %117 : vector<8xf32> to vector<8x1xf32>
    %119 = tpu.reciprocal %118 {approx = true} : vector<8x1xf32> -> vector<8x1xf32>
    %120 = vector.broadcast %119 : vector<8x1xf32> to vector<8x8xf32>
    %121 = arith.mulf %116, %120 : vector<8x8xf32>
    %122 = arith.truncf %121 : vector<8x8xf32> to vector<8x8xbf16>
    %cst_54 = arith.constant dense<0.000000e+00> : vector<8x8xf32>
    %123 = tpu.matmul %122, %110, %cst_54 {dimension_numbers = #tpu.dot_dimension_numbers<[1], [0], [0], [1], [0, 0, 1, 1], [], []>} : vector<8x8xbf16>, vector<8x8xbf16>, vector<8x8xf32> -> vector<8x8xf32>
    %124 = arith.truncf %123 : vector<8x8xf32> to vector<8x8xbf16>
    %c3 = arith.constant 3 : index
    %c0_55 = arith.constant 0 : index
    %c0_56 = arith.constant 0 : index
    %125 = vector.load %arg5[%c3, %c0_55, %c0_56] : memref<4x8x32xbf16, #tpu.memory_space<vmem>>, vector<1x8x32xbf16>
    %126 = vector.shape_cast %125 : vector<1x8x32xbf16> to vector<8x32xbf16>
    %cst_57 = arith.constant dense<0.000000e+00> : vector<8x32xf32>
    %127 = tpu.matmul %124, %126, %cst_57 {dimension_numbers = #tpu.dot_dimension_numbers<[1], [0], [0], [1], [0, 0, 1, 1], [], []>} : vector<8x8xbf16>, vector<8x32xbf16>, vector<8x32xf32> -> vector<8x32xf32>
    %128 = arith.addf %102, %127 : vector<8x32xf32>
    %c0_58 = arith.constant 0 : index
    %c0_59 = arith.constant 0 : index
    %129 = vector.load %arg6[%c0_58, %c0_59] : memref<1x32xf32, #tpu.memory_space<vmem>>, vector<1x32xf32>
    %130 = vector.broadcast %129 : vector<1x32xf32> to vector<8x32xf32>
    %131 = arith.addf %128, %130 : vector<8x32xf32>
    %c0_60 = arith.constant 0 : index
    %c0_61 = arith.constant 0 : index
    %132 = vector.load %arg7[%c0_60, %c0_61] : memref<1x32xf32, #tpu.memory_space<vmem>>, vector<1x32xf32>
    %c0_62 = arith.constant 0 : index
    %c0_63 = arith.constant 0 : index
    %133 = vector.load %arg8[%c0_62, %c0_63] : memref<1x32xf32, #tpu.memory_space<vmem>>, vector<1x32xf32>
    %134 = arith.addf %1, %131 : vector<8x32xf32>
    %cst_64 = arith.constant dense<0.000000e+00> : vector<8xf32>
    %135 = vector.multi_reduction <add>, %134, %cst_64 [1] : vector<8x32xf32> to vector<8xf32>
    %136 = vector.shape_cast %135 : vector<8xf32> to vector<8x1xf32>
    %cst_65 = arith.constant 3.200000e+01 : f32
    %137 = vector.broadcast %cst_65 : f32 to vector<8x1xf32>
    %138 = arith.divf %136, %137 : vector<8x1xf32>
    %139 = vector.broadcast %138 : vector<8x1xf32> to vector<8x32xf32>
    %140 = arith.subf %134, %139 : vector<8x32xf32>
    %141 = arith.mulf %140, %140 : vector<8x32xf32>
    %cst_66 = arith.constant dense<0.000000e+00> : vector<8xf32>
    %142 = vector.multi_reduction <add>, %141, %cst_66 [1] : vector<8x32xf32> to vector<8xf32>
    %143 = vector.shape_cast %142 : vector<8xf32> to vector<8x1xf32>
    %cst_67 = arith.constant 3.200000e+01 : f32
    %144 = vector.broadcast %cst_67 : f32 to vector<8x1xf32>
    %145 = arith.divf %143, %144 : vector<8x1xf32>
    %cst_68 = arith.constant 9.99999974E-6 : f32
    %146 = vector.broadcast %cst_68 : f32 to vector<8x1xf32>
    %147 = arith.addf %145, %146 : vector<8x1xf32>
    %148 = math.rsqrt %147 : vector<8x1xf32>
    %149 = vector.broadcast %148 : vector<8x1xf32> to vector<8x32xf32>
    %150 = arith.mulf %140, %149 : vector<8x32xf32>
    %151 = vector.broadcast %132 : vector<1x32xf32> to vector<8x32xf32>
    %152 = arith.mulf %150, %151 : vector<8x32xf32>
    %153 = vector.broadcast %133 : vector<1x32xf32> to vector<8x32xf32>
    %154 = arith.addf %152, %153 : vector<8x32xf32>
    %155 = arith.truncf %154 : vector<8x32xf32> to vector<8x32xbf16>
    %156 = arith.truncf %3 : vector<10x32xf32> to vector<10x32xbf16>
    %c0_69 = arith.constant 0 : index
    %c0_70 = arith.constant 0 : index
    %c0_71 = arith.constant 0 : index
    %157 = vector.load %arg9[%c0_69, %c0_70, %c0_71] : memref<3x32x32xbf16, #tpu.memory_space<vmem>>, vector<1x32x32xbf16>
    %158 = vector.shape_cast %157 : vector<1x32x32xbf16> to vector<32x32xbf16>
    %cst_72 = arith.constant dense<0.000000e+00> : vector<8x32xf32>
    %159 = tpu.matmul %155, %158, %cst_72 {dimension_numbers = #tpu.dot_dimension_numbers<[1], [0], [0], [1], [0, 0, 1, 1], [], []>} : vector<8x32xbf16>, vector<32x32xbf16>, vector<8x32xf32> -> vector<8x32xf32>
    %c0_73 = arith.constant 0 : index
    %c0_74 = arith.constant 0 : index
    %c0_75 = arith.constant 0 : index
    %160 = vector.load %arg10[%c0_73, %c0_74, %c0_75] : memref<3x1x32xf32, #tpu.memory_space<vmem>>, vector<1x1x32xf32>
    %161 = vector.shape_cast %160 : vector<1x1x32xf32> to vector<1x32xf32>
    %162 = vector.broadcast %161 : vector<1x32xf32> to vector<8x32xf32>
    %163 = arith.addf %159, %162 : vector<8x32xf32>
    %c1_76 = arith.constant 1 : index
    %c0_77 = arith.constant 0 : index
    %c0_78 = arith.constant 0 : index
    %164 = vector.load %arg9[%c1_76, %c0_77, %c0_78] : memref<3x32x32xbf16, #tpu.memory_space<vmem>>, vector<1x32x32xbf16>
    %165 = vector.shape_cast %164 : vector<1x32x32xbf16> to vector<32x32xbf16>
    %cst_79 = arith.constant dense<0.000000e+00> : vector<10x32xf32>
    %166 = tpu.matmul %156, %165, %cst_79 {dimension_numbers = #tpu.dot_dimension_numbers<[1], [0], [0], [1], [0, 0, 1, 1], [], []>} : vector<10x32xbf16>, vector<32x32xbf16>, vector<10x32xf32> -> vector<10x32xf32>
    %c1_80 = arith.constant 1 : index
    %c0_81 = arith.constant 0 : index
    %c0_82 = arith.constant 0 : index
    %167 = vector.load %arg10[%c1_80, %c0_81, %c0_82] : memref<3x1x32xf32, #tpu.memory_space<vmem>>, vector<1x1x32xf32>
    %168 = vector.shape_cast %167 : vector<1x1x32xf32> to vector<1x32xf32>
    %169 = vector.broadcast %168 : vector<1x32xf32> to vector<10x32xf32>
    %170 = arith.addf %166, %169 : vector<10x32xf32>
    %c2_83 = arith.constant 2 : index
    %c0_84 = arith.constant 0 : index
    %c0_85 = arith.constant 0 : index
    %171 = vector.load %arg9[%c2_83, %c0_84, %c0_85] : memref<3x32x32xbf16, #tpu.memory_space<vmem>>, vector<1x32x32xbf16>
    %172 = vector.shape_cast %171 : vector<1x32x32xbf16> to vector<32x32xbf16>
    %cst_86 = arith.constant dense<0.000000e+00> : vector<10x32xf32>
    %173 = tpu.matmul %156, %172, %cst_86 {dimension_numbers = #tpu.dot_dimension_numbers<[1], [0], [0], [1], [0, 0, 1, 1], [], []>} : vector<10x32xbf16>, vector<32x32xbf16>, vector<10x32xf32> -> vector<10x32xf32>
    %c2_87 = arith.constant 2 : index
    %c0_88 = arith.constant 0 : index
    %c0_89 = arith.constant 0 : index
    %174 = vector.load %arg10[%c2_87, %c0_88, %c0_89] : memref<3x1x32xf32, #tpu.memory_space<vmem>>, vector<1x1x32xf32>
    %175 = vector.shape_cast %174 : vector<1x1x32xf32> to vector<1x32xf32>
    %176 = vector.broadcast %175 : vector<1x32xf32> to vector<10x32xf32>
    %177 = arith.addf %173, %176 : vector<10x32xf32>
    %178 = vector.extract_strided_slice %163 {offsets = [0, 0], sizes = [8, 8], strides = [1, 1]} : vector<8x32xf32> to vector<8x8xf32>
    %cst_90 = arith.constant 0.353553385 : f32
    %179 = vector.broadcast %cst_90 : f32 to vector<8x8xf32>
    %180 = arith.mulf %178, %179 : vector<8x8xf32>
    %181 = arith.truncf %180 : vector<8x8xf32> to vector<8x8xbf16>
    %182 = vector.extract_strided_slice %170 {offsets = [0, 0], sizes = [10, 8], strides = [1, 1]} : vector<10x32xf32> to vector<10x8xf32>
    %183 = arith.truncf %182 : vector<10x8xf32> to vector<10x8xbf16>
    %184 = vector.extract_strided_slice %177 {offsets = [0, 0], sizes = [10, 8], strides = [1, 1]} : vector<10x32xf32> to vector<10x8xf32>
    %185 = arith.truncf %184 : vector<10x8xf32> to vector<10x8xbf16>
    %cst_91 = arith.constant dense<0.000000e+00> : vector<8x10xf32>
    %186 = tpu.matmul %181, %183, %cst_91 {dimension_numbers = #tpu.dot_dimension_numbers<[1], [1], [0], [0], [0, 0, 1, 0], [], []>} : vector<8x8xbf16>, vector<10x8xbf16>, vector<8x10xf32> -> vector<8x10xf32>
    %cst_92 = arith.constant dense<0xFF800000> : vector<8xf32>
    %187 = vector.multi_reduction <maximumf>, %186, %cst_92 [1] : vector<8x10xf32> to vector<8xf32>
    %188 = vector.shape_cast %187 : vector<8xf32> to vector<8x1xf32>
    %189 = vector.broadcast %188 : vector<8x1xf32> to vector<8x10xf32>
    %190 = arith.subf %186, %189 : vector<8x10xf32>
    %191 = math.exp %190 : vector<8x10xf32>
    %cst_93 = arith.constant dense<0.000000e+00> : vector<8xf32>
    %192 = vector.multi_reduction <add>, %191, %cst_93 [1] : vector<8x10xf32> to vector<8xf32>
    %193 = vector.shape_cast %192 : vector<8xf32> to vector<8x1xf32>
    %194 = tpu.reciprocal %193 {approx = true} : vector<8x1xf32> -> vector<8x1xf32>
    %195 = vector.broadcast %194 : vector<8x1xf32> to vector<8x10xf32>
    %196 = arith.mulf %191, %195 : vector<8x10xf32>
    %197 = arith.truncf %196 : vector<8x10xf32> to vector<8x10xbf16>
    %cst_94 = arith.constant dense<0.000000e+00> : vector<8x8xf32>
    %198 = tpu.matmul %197, %185, %cst_94 {dimension_numbers = #tpu.dot_dimension_numbers<[1], [0], [0], [1], [0, 0, 1, 1], [], []>} : vector<8x10xbf16>, vector<10x8xbf16>, vector<8x8xf32> -> vector<8x8xf32>
    %199 = arith.truncf %198 : vector<8x8xf32> to vector<8x8xbf16>
    %c0_95 = arith.constant 0 : index
    %c0_96 = arith.constant 0 : index
    %c0_97 = arith.constant 0 : index
    %200 = vector.load %arg11[%c0_95, %c0_96, %c0_97] : memref<4x8x32xbf16, #tpu.memory_space<vmem>>, vector<1x8x32xbf16>
    %201 = vector.shape_cast %200 : vector<1x8x32xbf16> to vector<8x32xbf16>
    %cst_98 = arith.constant dense<0.000000e+00> : vector<8x32xf32>
    %202 = tpu.matmul %199, %201, %cst_98 {dimension_numbers = #tpu.dot_dimension_numbers<[1], [0], [0], [1], [0, 0, 1, 1], [], []>} : vector<8x8xbf16>, vector<8x32xbf16>, vector<8x32xf32> -> vector<8x32xf32>
    %203 = vector.extract_strided_slice %163 {offsets = [0, 8], sizes = [8, 8], strides = [1, 1]} : vector<8x32xf32> to vector<8x8xf32>
    %cst_99 = arith.constant 0.353553385 : f32
    %204 = vector.broadcast %cst_99 : f32 to vector<8x8xf32>
    %205 = arith.mulf %203, %204 : vector<8x8xf32>
    %206 = arith.truncf %205 : vector<8x8xf32> to vector<8x8xbf16>
    %207 = vector.extract_strided_slice %170 {offsets = [0, 8], sizes = [10, 8], strides = [1, 1]} : vector<10x32xf32> to vector<10x8xf32>
    %208 = arith.truncf %207 : vector<10x8xf32> to vector<10x8xbf16>
    %209 = vector.extract_strided_slice %177 {offsets = [0, 8], sizes = [10, 8], strides = [1, 1]} : vector<10x32xf32> to vector<10x8xf32>
    %210 = arith.truncf %209 : vector<10x8xf32> to vector<10x8xbf16>
    %cst_100 = arith.constant dense<0.000000e+00> : vector<8x10xf32>
    %211 = tpu.matmul %206, %208, %cst_100 {dimension_numbers = #tpu.dot_dimension_numbers<[1], [1], [0], [0], [0, 0, 1, 0], [], []>} : vector<8x8xbf16>, vector<10x8xbf16>, vector<8x10xf32> -> vector<8x10xf32>
    %cst_101 = arith.constant dense<0xFF800000> : vector<8xf32>
    %212 = vector.multi_reduction <maximumf>, %211, %cst_101 [1] : vector<8x10xf32> to vector<8xf32>
    %213 = vector.shape_cast %212 : vector<8xf32> to vector<8x1xf32>
    %214 = vector.broadcast %213 : vector<8x1xf32> to vector<8x10xf32>
    %215 = arith.subf %211, %214 : vector<8x10xf32>
    %216 = math.exp %215 : vector<8x10xf32>
    %cst_102 = arith.constant dense<0.000000e+00> : vector<8xf32>
    %217 = vector.multi_reduction <add>, %216, %cst_102 [1] : vector<8x10xf32> to vector<8xf32>
    %218 = vector.shape_cast %217 : vector<8xf32> to vector<8x1xf32>
    %219 = tpu.reciprocal %218 {approx = true} : vector<8x1xf32> -> vector<8x1xf32>
    %220 = vector.broadcast %219 : vector<8x1xf32> to vector<8x10xf32>
    %221 = arith.mulf %216, %220 : vector<8x10xf32>
    %222 = arith.truncf %221 : vector<8x10xf32> to vector<8x10xbf16>
    %cst_103 = arith.constant dense<0.000000e+00> : vector<8x8xf32>
    %223 = tpu.matmul %222, %210, %cst_103 {dimension_numbers = #tpu.dot_dimension_numbers<[1], [0], [0], [1], [0, 0, 1, 1], [], []>} : vector<8x10xbf16>, vector<10x8xbf16>, vector<8x8xf32> -> vector<8x8xf32>
    %224 = arith.truncf %223 : vector<8x8xf32> to vector<8x8xbf16>
    %c1_104 = arith.constant 1 : index
    %c0_105 = arith.constant 0 : index
    %c0_106 = arith.constant 0 : index
    %225 = vector.load %arg11[%c1_104, %c0_105, %c0_106] : memref<4x8x32xbf16, #tpu.memory_space<vmem>>, vector<1x8x32xbf16>
    %226 = vector.shape_cast %225 : vector<1x8x32xbf16> to vector<8x32xbf16>
    %cst_107 = arith.constant dense<0.000000e+00> : vector<8x32xf32>
    %227 = tpu.matmul %224, %226, %cst_107 {dimension_numbers = #tpu.dot_dimension_numbers<[1], [0], [0], [1], [0, 0, 1, 1], [], []>} : vector<8x8xbf16>, vector<8x32xbf16>, vector<8x32xf32> -> vector<8x32xf32>
    %228 = arith.addf %202, %227 : vector<8x32xf32>
    %229 = vector.extract_strided_slice %163 {offsets = [0, 16], sizes = [8, 8], strides = [1, 1]} : vector<8x32xf32> to vector<8x8xf32>
    %cst_108 = arith.constant 0.353553385 : f32
    %230 = vector.broadcast %cst_108 : f32 to vector<8x8xf32>
    %231 = arith.mulf %229, %230 : vector<8x8xf32>
    %232 = arith.truncf %231 : vector<8x8xf32> to vector<8x8xbf16>
    %233 = vector.extract_strided_slice %170 {offsets = [0, 16], sizes = [10, 8], strides = [1, 1]} : vector<10x32xf32> to vector<10x8xf32>
    %234 = arith.truncf %233 : vector<10x8xf32> to vector<10x8xbf16>
    %235 = vector.extract_strided_slice %177 {offsets = [0, 16], sizes = [10, 8], strides = [1, 1]} : vector<10x32xf32> to vector<10x8xf32>
    %236 = arith.truncf %235 : vector<10x8xf32> to vector<10x8xbf16>
    %cst_109 = arith.constant dense<0.000000e+00> : vector<8x10xf32>
    %237 = tpu.matmul %232, %234, %cst_109 {dimension_numbers = #tpu.dot_dimension_numbers<[1], [1], [0], [0], [0, 0, 1, 0], [], []>} : vector<8x8xbf16>, vector<10x8xbf16>, vector<8x10xf32> -> vector<8x10xf32>
    %cst_110 = arith.constant dense<0xFF800000> : vector<8xf32>
    %238 = vector.multi_reduction <maximumf>, %237, %cst_110 [1] : vector<8x10xf32> to vector<8xf32>
    %239 = vector.shape_cast %238 : vector<8xf32> to vector<8x1xf32>
    %240 = vector.broadcast %239 : vector<8x1xf32> to vector<8x10xf32>
    %241 = arith.subf %237, %240 : vector<8x10xf32>
    %242 = math.exp %241 : vector<8x10xf32>
    %cst_111 = arith.constant dense<0.000000e+00> : vector<8xf32>
    %243 = vector.multi_reduction <add>, %242, %cst_111 [1] : vector<8x10xf32> to vector<8xf32>
    %244 = vector.shape_cast %243 : vector<8xf32> to vector<8x1xf32>
    %245 = tpu.reciprocal %244 {approx = true} : vector<8x1xf32> -> vector<8x1xf32>
    %246 = vector.broadcast %245 : vector<8x1xf32> to vector<8x10xf32>
    %247 = arith.mulf %242, %246 : vector<8x10xf32>
    %248 = arith.truncf %247 : vector<8x10xf32> to vector<8x10xbf16>
    %cst_112 = arith.constant dense<0.000000e+00> : vector<8x8xf32>
    %249 = tpu.matmul %248, %236, %cst_112 {dimension_numbers = #tpu.dot_dimension_numbers<[1], [0], [0], [1], [0, 0, 1, 1], [], []>} : vector<8x10xbf16>, vector<10x8xbf16>, vector<8x8xf32> -> vector<8x8xf32>
    %250 = arith.truncf %249 : vector<8x8xf32> to vector<8x8xbf16>
    %c2_113 = arith.constant 2 : index
    %c0_114 = arith.constant 0 : index
    %c0_115 = arith.constant 0 : index
    %251 = vector.load %arg11[%c2_113, %c0_114, %c0_115] : memref<4x8x32xbf16, #tpu.memory_space<vmem>>, vector<1x8x32xbf16>
    %252 = vector.shape_cast %251 : vector<1x8x32xbf16> to vector<8x32xbf16>
    %cst_116 = arith.constant dense<0.000000e+00> : vector<8x32xf32>
    %253 = tpu.matmul %250, %252, %cst_116 {dimension_numbers = #tpu.dot_dimension_numbers<[1], [0], [0], [1], [0, 0, 1, 1], [], []>} : vector<8x8xbf16>, vector<8x32xbf16>, vector<8x32xf32> -> vector<8x32xf32>
    %254 = arith.addf %228, %253 : vector<8x32xf32>
    %255 = vector.extract_strided_slice %163 {offsets = [0, 24], sizes = [8, 8], strides = [1, 1]} : vector<8x32xf32> to vector<8x8xf32>
    %cst_117 = arith.constant 0.353553385 : f32
    %256 = vector.broadcast %cst_117 : f32 to vector<8x8xf32>
    %257 = arith.mulf %255, %256 : vector<8x8xf32>
    %258 = arith.truncf %257 : vector<8x8xf32> to vector<8x8xbf16>
    %259 = vector.extract_strided_slice %170 {offsets = [0, 24], sizes = [10, 8], strides = [1, 1]} : vector<10x32xf32> to vector<10x8xf32>
    %260 = arith.truncf %259 : vector<10x8xf32> to vector<10x8xbf16>
    %261 = vector.extract_strided_slice %177 {offsets = [0, 24], sizes = [10, 8], strides = [1, 1]} : vector<10x32xf32> to vector<10x8xf32>
    %262 = arith.truncf %261 : vector<10x8xf32> to vector<10x8xbf16>
    %cst_118 = arith.constant dense<0.000000e+00> : vector<8x10xf32>
    %263 = tpu.matmul %258, %260, %cst_118 {dimension_numbers = #tpu.dot_dimension_numbers<[1], [1], [0], [0], [0, 0, 1, 0], [], []>} : vector<8x8xbf16>, vector<10x8xbf16>, vector<8x10xf32> -> vector<8x10xf32>
    %cst_119 = arith.constant dense<0xFF800000> : vector<8xf32>
    %264 = vector.multi_reduction <maximumf>, %263, %cst_119 [1] : vector<8x10xf32> to vector<8xf32>
    %265 = vector.shape_cast %264 : vector<8xf32> to vector<8x1xf32>
    %266 = vector.broadcast %265 : vector<8x1xf32> to vector<8x10xf32>
    %267 = arith.subf %263, %266 : vector<8x10xf32>
    %268 = math.exp %267 : vector<8x10xf32>
    %cst_120 = arith.constant dense<0.000000e+00> : vector<8xf32>
    %269 = vector.multi_reduction <add>, %268, %cst_120 [1] : vector<8x10xf32> to vector<8xf32>
    %270 = vector.shape_cast %269 : vector<8xf32> to vector<8x1xf32>
    %271 = tpu.reciprocal %270 {approx = true} : vector<8x1xf32> -> vector<8x1xf32>
    %272 = vector.broadcast %271 : vector<8x1xf32> to vector<8x10xf32>
    %273 = arith.mulf %268, %272 : vector<8x10xf32>
    %274 = arith.truncf %273 : vector<8x10xf32> to vector<8x10xbf16>
    %cst_121 = arith.constant dense<0.000000e+00> : vector<8x8xf32>
    %275 = tpu.matmul %274, %262, %cst_121 {dimension_numbers = #tpu.dot_dimension_numbers<[1], [0], [0], [1], [0, 0, 1, 1], [], []>} : vector<8x10xbf16>, vector<10x8xbf16>, vector<8x8xf32> -> vector<8x8xf32>
    %276 = arith.truncf %275 : vector<8x8xf32> to vector<8x8xbf16>
    %c3_122 = arith.constant 3 : index
    %c0_123 = arith.constant 0 : index
    %c0_124 = arith.constant 0 : index
    %277 = vector.load %arg11[%c3_122, %c0_123, %c0_124] : memref<4x8x32xbf16, #tpu.memory_space<vmem>>, vector<1x8x32xbf16>
    %278 = vector.shape_cast %277 : vector<1x8x32xbf16> to vector<8x32xbf16>
    %cst_125 = arith.constant dense<0.000000e+00> : vector<8x32xf32>
    %279 = tpu.matmul %276, %278, %cst_125 {dimension_numbers = #tpu.dot_dimension_numbers<[1], [0], [0], [1], [0, 0, 1, 1], [], []>} : vector<8x8xbf16>, vector<8x32xbf16>, vector<8x32xf32> -> vector<8x32xf32>
    %280 = arith.addf %254, %279 : vector<8x32xf32>
    %c0_126 = arith.constant 0 : index
    %c0_127 = arith.constant 0 : index
    %281 = vector.load %arg12[%c0_126, %c0_127] : memref<1x32xf32, #tpu.memory_space<vmem>>, vector<1x32xf32>
    %282 = vector.broadcast %281 : vector<1x32xf32> to vector<8x32xf32>
    %283 = arith.addf %280, %282 : vector<8x32xf32>
    %c0_128 = arith.constant 0 : index
    %c0_129 = arith.constant 0 : index
    %284 = vector.load %arg13[%c0_128, %c0_129] : memref<1x32xf32, #tpu.memory_space<vmem>>, vector<1x32xf32>
    %c0_130 = arith.constant 0 : index
    %c0_131 = arith.constant 0 : index
    %285 = vector.load %arg14[%c0_130, %c0_131] : memref<1x32xf32, #tpu.memory_space<vmem>>, vector<1x32xf32>
    %286 = arith.addf %154, %283 : vector<8x32xf32>
    %cst_132 = arith.constant dense<0.000000e+00> : vector<8xf32>
    %287 = vector.multi_reduction <add>, %286, %cst_132 [1] : vector<8x32xf32> to vector<8xf32>
    %288 = vector.shape_cast %287 : vector<8xf32> to vector<8x1xf32>
    %cst_133 = arith.constant 3.200000e+01 : f32
    %289 = vector.broadcast %cst_133 : f32 to vector<8x1xf32>
    %290 = arith.divf %288, %289 : vector<8x1xf32>
    %291 = vector.broadcast %290 : vector<8x1xf32> to vector<8x32xf32>
    %292 = arith.subf %286, %291 : vector<8x32xf32>
    %293 = arith.mulf %292, %292 : vector<8x32xf32>
    %cst_134 = arith.constant dense<0.000000e+00> : vector<8xf32>
    %294 = vector.multi_reduction <add>, %293, %cst_134 [1] : vector<8x32xf32> to vector<8xf32>
    %295 = vector.shape_cast %294 : vector<8xf32> to vector<8x1xf32>
    %cst_135 = arith.constant 3.200000e+01 : f32
    %296 = vector.broadcast %cst_135 : f32 to vector<8x1xf32>
    %297 = arith.divf %295, %296 : vector<8x1xf32>
    %cst_136 = arith.constant 9.99999974E-6 : f32
    %298 = vector.broadcast %cst_136 : f32 to vector<8x1xf32>
    %299 = arith.addf %297, %298 : vector<8x1xf32>
    %300 = math.rsqrt %299 : vector<8x1xf32>
    %301 = vector.broadcast %300 : vector<8x1xf32> to vector<8x32xf32>
    %302 = arith.mulf %292, %301 : vector<8x32xf32>
    %303 = vector.broadcast %284 : vector<1x32xf32> to vector<8x32xf32>
    %304 = arith.mulf %302, %303 : vector<8x32xf32>
    %305 = vector.broadcast %285 : vector<1x32xf32> to vector<8x32xf32>
    %306 = arith.addf %304, %305 : vector<8x32xf32>
    %307 = arith.truncf %306 : vector<8x32xf32> to vector<8x32xbf16>
    %c0_137 = arith.constant 0 : index
    %c0_138 = arith.constant 0 : index
    %308 = vector.load %arg15[%c0_137, %c0_138] : memref<32x64xbf16, #tpu.memory_space<vmem>>, vector<32x64xbf16>
    %cst_139 = arith.constant dense<0.000000e+00> : vector<8x64xf32>
    %309 = tpu.matmul %307, %308, %cst_139 {dimension_numbers = #tpu.dot_dimension_numbers<[1], [0], [0], [1], [0, 0, 1, 1], [], []>} : vector<8x32xbf16>, vector<32x64xbf16>, vector<8x64xf32> -> vector<8x64xf32>
    %c0_140 = arith.constant 0 : index
    %c0_141 = arith.constant 0 : index
    %310 = vector.load %arg16[%c0_140, %c0_141] : memref<1x64xf32, #tpu.memory_space<vmem>>, vector<1x64xf32>
    %311 = vector.broadcast %310 : vector<1x64xf32> to vector<8x64xf32>
    %312 = arith.addf %309, %311 : vector<8x64xf32>
    %cst_142 = arith.constant 0.000000e+00 : f32
    %313 = vector.broadcast %cst_142 : f32 to vector<8x64xf32>
    %314 = arith.maximumf %312, %313 : vector<8x64xf32>
    %315 = arith.truncf %314 : vector<8x64xf32> to vector<8x64xbf16>
    %c0_143 = arith.constant 0 : index
    %c0_144 = arith.constant 0 : index
    %316 = vector.load %arg17[%c0_143, %c0_144] : memref<64x32xbf16, #tpu.memory_space<vmem>>, vector<64x32xbf16>
    %cst_145 = arith.constant dense<0.000000e+00> : vector<8x32xf32>
    %317 = tpu.matmul %315, %316, %cst_145 {dimension_numbers = #tpu.dot_dimension_numbers<[1], [0], [0], [1], [0, 0, 1, 1], [], []>} : vector<8x64xbf16>, vector<64x32xbf16>, vector<8x32xf32> -> vector<8x32xf32>
    %c0_146 = arith.constant 0 : index
    %c0_147 = arith.constant 0 : index
    %318 = vector.load %arg18[%c0_146, %c0_147] : memref<1x32xf32, #tpu.memory_space<vmem>>, vector<1x32xf32>
    %319 = vector.broadcast %318 : vector<1x32xf32> to vector<8x32xf32>
    %320 = arith.addf %317, %319 : vector<8x32xf32>
    %c0_148 = arith.constant 0 : index
    %c0_149 = arith.constant 0 : index
    %321 = vector.load %arg19[%c0_148, %c0_149] : memref<1x32xf32, #tpu.memory_space<vmem>>, vector<1x32xf32>
    %c0_150 = arith.constant 0 : index
    %c0_151 = arith.constant 0 : index
    %322 = vector.load %arg20[%c0_150, %c0_151] : memref<1x32xf32, #tpu.memory_space<vmem>>, vector<1x32xf32>
    %323 = arith.addf %306, %320 : vector<8x32xf32>
    %cst_152 = arith.constant dense<0.000000e+00> : vector<8xf32>
    %324 = vector.multi_reduction <add>, %323, %cst_152 [1] : vector<8x32xf32> to vector<8xf32>
    %325 = vector.shape_cast %324 : vector<8xf32> to vector<8x1xf32>
    %cst_153 = arith.constant 3.200000e+01 : f32
    %326 = vector.broadcast %cst_153 : f32 to vector<8x1xf32>
    %327 = arith.divf %325, %326 : vector<8x1xf32>
    %328 = vector.broadcast %327 : vector<8x1xf32> to vector<8x32xf32>
    %329 = arith.subf %323, %328 : vector<8x32xf32>
    %330 = arith.mulf %329, %329 : vector<8x32xf32>
    %cst_154 = arith.constant dense<0.000000e+00> : vector<8xf32>
    %331 = vector.multi_reduction <add>, %330, %cst_154 [1] : vector<8x32xf32> to vector<8xf32>
    %332 = vector.shape_cast %331 : vector<8xf32> to vector<8x1xf32>
    %cst_155 = arith.constant 3.200000e+01 : f32
    %333 = vector.broadcast %cst_155 : f32 to vector<8x1xf32>
    %334 = arith.divf %332, %333 : vector<8x1xf32>
    %cst_156 = arith.constant 9.99999974E-6 : f32
    %335 = vector.broadcast %cst_156 : f32 to vector<8x1xf32>
    %336 = arith.addf %334, %335 : vector<8x1xf32>
    %337 = math.rsqrt %336 : vector<8x1xf32>
    %338 = vector.broadcast %337 : vector<8x1xf32> to vector<8x32xf32>
    %339 = arith.mulf %329, %338 : vector<8x32xf32>
    %340 = vector.broadcast %321 : vector<1x32xf32> to vector<8x32xf32>
    %341 = arith.mulf %339, %340 : vector<8x32xf32>
    %342 = vector.broadcast %322 : vector<1x32xf32> to vector<8x32xf32>
    %343 = arith.addf %341, %342 : vector<8x32xf32>
    %c0_157 = arith.constant 0 : index
    %c0_158 = arith.constant 0 : index
    %c0_159 = arith.constant 0 : index
    %344 = vector.load %arg21[%c0_157, %c0_158, %c0_159] : memref<1x8x32xf32, #tpu.memory_space<vmem>>, vector<1x8x32xf32>
    %345 = vector.shape_cast %344 : vector<1x8x32xf32> to vector<8x32xf32>
    %346 = vector.shape_cast %343 : vector<8x32xf32> to vector<1x8x32xf32>
    tpu.vector_store %arg21[%c0_157, %c0_158, %c0_159], %346 {strides = array<i32>} : memref<1x8x32xf32, #tpu.memory_space<vmem>>, vector<1x8x32xf32>,
    return
  }
  func.func @transform_0(%arg0: i32) -> (i32, i32, i32) {
    %c0_i32 = arith.constant 0 : i32
    %c0_i32_0 = arith.constant 0 : i32
    %c0_i32_1 = arith.constant 0 : i32
    return %arg0, %c0_i32, %c0_i32_0 : i32, i32, i32
  }
  func.func @transform_1(%arg0: i32) -> (i32, i32, i32) {
    %c0_i32 = arith.constant 0 : i32
    %c0_i32_0 = arith.constant 0 : i32
    %c0_i32_1 = arith.constant 0 : i32
    return %arg0, %c0_i32, %c0_i32_0 : i32, i32, i32
  }
  func.func @transform_2(%arg0: i32) -> (i32, i32, i32) {
    %c0_i32 = arith.constant 0 : i32
    %c0_i32_0 = arith.constant 0 : i32
    %c0_i32_1 = arith.constant 0 : i32
    %c0_i32_2 = arith.constant 0 : i32
    return %c0_i32, %c0_i32_0, %c0_i32_1 : i32, i32, i32
  }
  func.func @transform_3(%arg0: i32) -> (i32, i32, i32) {
    %c0_i32 = arith.constant 0 : i32
    %c0_i32_0 = arith.constant 0 : i32
    %c0_i32_1 = arith.constant 0 : i32
    %c0_i32_2 = arith.constant 0 : i32
    return %c0_i32, %c0_i32_0, %c0_i32_1 : i32, i32, i32
  }
  func.func @transform_4(%arg0: i32) -> (i32, i32, i32) {
    %c0_i32 = arith.constant 0 : i32
    %c0_i32_0 = arith.constant 0 : i32
    %c0_i32_1 = arith.constant 0 : i32
    %c0_i32_2 = arith.constant 0 : i32
    return %c0_i32, %c0_i32_0, %c0_i32_1 : i32, i32, i32
  }
  func.func @transform_5(%arg0: i32) -> (i32, i32) {
    %c0_i32 = arith.constant 0 : i32
    %c0_i32_0 = arith.constant 0 : i32
    %c0_i32_1 = arith.constant 0 : i32
    return %c0_i32, %c0_i32_0 : i32, i32
  }
  func.func @transform_6(%arg0: i32) -> (i32, i32) {
    %c0_i32 = arith.constant 0 : i32
    %c0_i32_0 = arith.constant 0 : i32
    %c0_i32_1 = arith.constant 0 : i32
    return %c0_i32, %c0_i32_0 : i32, i32
  }
  func.func @transform_7(%arg0: i32) -> (i32, i32) {
    %c0_i32 = arith.constant 0 : i32
    %c0_i32_0 = arith.constant 0 : i32
    %c0_i32_1 = arith.constant 0 : i32
    return %c0_i32, %c0_i32_0 : i32, i32
  }
  func.func @transform_8(%arg0: i32) -> (i32, i32, i32) {
    %c0_i32 = arith.constant 0 : i32
    %c0_i32_0 = arith.constant 0 : i32
    %c0_i32_1 = arith.constant 0 : i32
    %c0_i32_2 = arith.constant 0 : i32
    return %c0_i32, %c0_i32_0, %c0_i32_1 : i32, i32, i32
  }
  func.func @transform_9(%arg0: i32) -> (i32, i32, i32) {
    %c0_i32 = arith.constant 0 : i32
    %c0_i32_0 = arith.constant 0 : i32
    %c0_i32_1 = arith.constant 0 : i32
    %c0_i32_2 = arith.constant 0 : i32
    return %c0_i32, %c0_i32_0, %c0_i32_1 : i32, i32, i32
  }
  func.func @transform_10(%arg0: i32) -> (i32, i32, i32) {
    %c0_i32 = arith.constant 0 : i32
    %c0_i32_0 = arith.constant 0 : i32
    %c0_i32_1 = arith.constant 0 : i32
    %c0_i32_2 = arith.constant 0 : i32
    return %c0_i32, %c0_i32_0, %c0_i32_1 : i32, i32, i32
  }
  func.func @transform_11(%arg0: i32) -> (i32, i32) {
    %c0_i32 = arith.constant 0 : i32
    %c0_i32_0 = arith.constant 0 : i32
    %c0_i32_1 = arith.constant 0 : i32
    return %c0_i32, %c0_i32_0 : i32, i32
  }
  func.func @transform_12(%arg0: i32) -> (i32, i32) {
    %c0_i32 = arith.constant 0 : i32
    %c0_i32_0 = arith.constant 0 : i32
    %c0_i32_1 = arith.constant 0 : i32
    return %c0_i32, %c0_i32_0 : i32, i32
  }
  func.func @transform_13(%arg0: i32) -> (i32, i32) {
    %c0_i32 = arith.constant 0 : i32
    %c0_i32_0 = arith.constant 0 : i32
    %c0_i32_1 = arith.constant 0 : i32
    return %c0_i32, %c0_i32_0 : i32, i32
  }
  func.func @transform_14(%arg0: i32) -> (i32, i32) {
    %c0_i32 = arith.constant 0 : i32
    %c0_i32_0 = arith.constant 0 : i32
    %c0_i32_1 = arith.constant 0 : i32
    return %c0_i32, %c0_i32_0 : i32, i32
  }
  func.func @transform_15(%arg0: i32) -> (i32, i32) {
    %c0_i32 = arith.constant 0 : i32
    %c0_i32_0 = arith.constant 0 : i32
    %c0_i32_1 = arith.constant 0 : i32
    return %c0_i32, %c0_i32_0 : i32, i32
  }
  func.func @transform_16(%arg0: i32) -> (i32, i32) {
    %c0_i32 = arith.constant 0 : i32
    %c0_i32_0 = arith.constant 0 : i32
    %c0_i32_1 = arith.constant 0 : i32
    return %c0_i32, %c0_i32_0 : i32, i32
  }
  func.func @transform_17(%arg0: i32) -> (i32, i32) {
    %c0_i32 = arith.constant 0 : i32
    %c0_i32_0 = arith.constant 0 : i32
    %c0_i32_1 = arith.constant 0 : i32
    return %c0_i32, %c0_i32_0 : i32, i32
  }
  func.func @transform_18(%arg0: i32) -> (i32, i32) {
    %c0_i32 = arith.constant 0 : i32
    %c0_i32_0 = arith.constant 0 : i32
    %c0_i32_1 = arith.constant 0 : i32
    return %c0_i32, %c0_i32_0 : i32, i32
  }
  func.func @transform_19(%arg0: i32) -> (i32, i32) {
    %c0_i32 = arith.constant 0 : i32
    %c0_i32_0 = arith.constant 0 : i32
    %c0_i32_1 = arith.constant 0 : i32
    return %c0_i32, %c0_i32_0 : i32, i32
  }
  func.func @transform_20(%arg0: i32) -> (i32, i32, i32) {
    %c0_i32 = arith.constant 0 : i32
    %c0_i32_0 = arith.constant 0 : i32
    %c0_i32_1 = arith.constant 0 : i32
    return %arg0, %c0_i32, %c0_i32_0 : i32, i32, i32
  }
}

</mosaic_0001>

<bundles_post_ra>
// kernel: transformer_forward.9
= control target key start
LH: loop header
LB: loop body
LE: loop exit
PB: predicated region body
PF: predicated region fallthrough
CT: control target
= control target key end

     0   :  { %s357_s12 = smov 0   ;;  %s383_s0 = inlined_call_operand.vmem [shape: f32[4,8,32], index: 0, kind: input, shape index: {}]   ;;  %s384_s1 = inlined_call_operand.vmem [shape: bf16[32,40], index: 1, kind: input, shape index: {}]   ;;  %s385_s2 = inlined_call_operand.vmem [shape: f32[1,40], index: 2, kind: input, shape index: {}]   ;;  %s386_s3 = inlined_call_operand.vmem [shape: f32[4,8,40], index: 3, kind: output, shape index: {}]  }
   0x1 LB: > { %s291_s13 = sadd.s32 4294967295, %s333_s12   ;;  %p295_p0 = scmp.ge.s32.totalorder %s333_s12, 1  ;;  %s333_s12 = sphi %s357_s12, %s13_s12  }
   0x2   : > { %p136_p1 = scmp.lt.s32.totalorder %s333_s12, 5 }
   0x4   : > { %p137_p2 = pnand %p295_p0, %p136_p1 }
   0x5   : > { %v325_v0 = vld [vmem:[%s384_s1] sm:$0xff] (!%p137_p2)   ;;  %v335_v1 = vmov (!%p137_p2), 0.0   ;;  %v326_v2 = vld [vmem:[%s384_s1 + $0x8] sm:$0xff] (!%p137_p2)   ;;  %vm336_vm0 = vmmov (!%p137_p2), 0   ;;  %p158_p3 = scmp.lt.s32.totalorder (!%p137_p2), %s291_s13, 3  ;;  %vm192_vm1 = vcmask (!%p137_p2), 261120  }
   0x6   : > { %140 = sbr.rel (%p137_p2) target bundleno = 234 (0xea), region = 32  ;;  %307 = vmatprep.subr.bf16.mxu0 (!%p137_p2), %v335_v1  ;;  %311 = vmatprep.mubr.msk.bf16.mxu0 (!%p137_p2), %vm336_vm0, %v335_v1  ;;  %v298_v5 = vld [vmem:[%s385_s2] ss:$0 sm:$0xff] (!%p137_p2)  ;;  %vm236_vm2 = vcmask (!%p137_p2), 326656  }
   0x7   : > { %308 = vmatpush3.bf16.msra.mxu0 (!%p137_p2), %v325_v0 }
   0x8   : > { %309 = vmatprep.subr.bf16.mxu0 (!%p137_p2), %v335_v1 }
   0xb   : > { %310 = vmatpush3.bf16.msra.mxu0 (!%p137_p2), %v326_v2 }
   0xd   : > { %s388_s13 = smov (!%p158_p3, %s291_s13), 3 }
   0xe   : > { %s296_s18 = sshll.u32 %s388_s13, 3 }
   0xf   : > { %s161_s21 = scalar_lea.vmem %s383_s0, %s296_s18  ;;  %s165_s26 = scalar_lea.vmem %s386_s3, %s296_s18 }
  0x10   : > { %v167_v3 = vld [vmem:[%s161_s21] sm:$0xff] }
  0x11   : > { %v168_v4 = vpack.c.bf16 %v167_v3, %v167_v3 }
  0x13   : > { %312 = vmatmul.mubr.msk.bf16.vlgmr.msra.gmra.mrb[0].mxu0 %vm192_vm1, %v168_v4 }
  0xe6   : > { %v230_v6 = vpop.f32.mrb[0].mxu0 }
  0xe7   : > { %v231_v7 = vadd.f32 %v298_v5, %v230_v6  ;;  %v313_v8 = vpop.f32.mrb[1].mxu0 }
  0xe8   : > { %v233_v9 = vpop.f32.mrb[2].mxu0 }
  0xe9   : > { %237 = vst.msk [vmem:[%s165_s26] sm:$0xff] %vm236_vm2, %v231_v7  ;;  %v314_v10 = vpop.f32.mrb[3].mxu0 }
  0xea PF: > { %s13_s12 = sadd.s32 1, %s333_s12  }
  0xeb   : > { %p10_p4 = scmp.ge.s32.totalorder %s13_s12, 6  }
  0xed   :  { %12 = sbr.rel (!%p10_p4) target bundleno = 1 (0x1), region = 62 }

// kernel: transformer_forward.5
= control target key start
LH: loop header
LB: loop body
LE: loop exit
PB: predicated region body
PF: predicated region fallthrough
CT: control target
= control target key end

     0   :  { %s2068_s25 = smov 0   ;;  %s2327_s0 = inlined_call_operand.vmem [shape: f32[4,10,32], index: 0, kind: input, shape index: {}]   ;;  %s2328_s1 = inlined_call_operand.vmem [shape: bf16[3,32,32], index: 1, kind: input, shape index: {}]   ;;  %s2329_s2 = inlined_call_operand.vmem [shape: f32[3,1,32], index: 2, kind: input, shape index: {}]   ;;  %s2330_s3 = inlined_call_operand.vmem [shape: bf16[4,8,32], index: 3, kind: input, shape index: {}]   ;;  %s2331_s4 = inlined_call_operand.vmem [shape: f32[1,32], index: 4, kind: input, shape index: {}]   ;;  %s2332_s5 = inlined_call_operand.vmem [shape: f32[1,32], index: 5, kind: input, shape index: {}]   ;;  %s2333_s6 = inlined_call_operand.vmem [shape: f32[1,32], index: 6, kind: input, shape index: {}]   ;;  %s2334_s7 = inlined_call_operand.vmem [shape: bf16[32,64], index: 7, kind: input, shape index: {}]   ;;  %s2335_s8 = inlined_call_operand.vmem [shape: f32[1,64], index: 8, kind: input, shape index: {}]   ;;  %s2336_s9 = inlined_call_operand.vmem [shape: bf16[64,32], index: 9, kind: input, shape index: {}]   ;;  %s2337_s10 = inlined_call_operand.vmem [shape: f32[1,32], index: 10, kind: input, shape index: {}]   ;;  %s2338_s11 = inlined_call_operand.vmem [shape: f32[1,32], index: 11, kind: input, shape index: {}]   ;;  %s2339_s12 = inlined_call_operand.vmem [shape: f32[1,32], index: 12, kind: input, shape index: {}]   ;;  %s2340_s13 = inlined_call_operand.vmem [shape: f32[4,10,32], index: 13, kind: output, shape index: {}]  }
   0x1 LB: > { %s1694_s26 = sadd.s32 4294967295, %s1991_s25   ;;  %p1698_p0 = scmp.ge.s32.totalorder %s1991_s25, 1  ;;  %s1991_s25 = sphi %s2068_s25, %s23_s25  }
   0x2   : > { %p387_p1 = scmp.lt.s32.totalorder %s1991_s25, 5 }
   0x4   : > { %p388_p2 = pnand %p1698_p0, %p387_p1 }
   0x5   : > { %v1929_v0 = vld [vmem:[%s2328_s1] sm:$0xff] (!%p388_p2)   ;;  %v1993_v1 = vmov (!%p388_p2), 0.0   ;;  %v1930_v2 = vld [vmem:[%s2328_s1 + $0x8] sm:$0xff] (!%p388_p2)   ;;  %vm1994_vm0 = vmmov (!%p388_p2), 0   ;;  %p431_p3 = scmp.lt.s32.totalorder (!%p388_p2), %s1694_s26, 3  ;;  %v1931_v3 = vld [vmem:[%s2328_s1 + $0x10] sm:$0xff] (!%p388_p2)  }
   0x6   : > { %391 = sbr.rel (%p388_p2) target bundleno = 4018 (0xfb2), region = 72  ;;  %1800 = vmatprep.subr.bf16.mxu1 (!%p388_p2), %v1993_v1  ;;  %1816 = vmatprep.subr.bf16.mxu0 (!%p388_p2), %v1993_v1  ;;  %vm468_vm1 = vcmask (!%p388_p2), 261120   ;;  %v1932_v7 = vld [vmem:[%s2328_s1 + $0x18] sm:$0xff] (!%p388_p2)   ;;  %v1703_v8 = vld [vmem:[%s2329_s2] ss:$0 sm:$0xff] (!%p388_p2)  ;;  %vm650_vm2 = vcmask (!%p388_p2), 64512  }
   0x7   : > { %1801 = vmatpush3.bf16.msra.mxu1 (!%p388_p2), %v1929_v0  ;;  %1804 = vmatprep.mubr.msk.bf16.mxu1 (!%p388_p2), %vm1994_vm0, %v1993_v1  ;;  %v1712_v18 = vld [vmem:[%s2329_s2 + $0x1] ss:$0 sm:$0xff] (!%p388_p2)  ;;  %s1995_s28 = smov (!%p388_p2), 120   ;;  %v1934_v28 = vld [vmem:[%s2328_s1 + $0x28] sm:$0xff] (!%p388_p2)   ;;  %vm698_vm3 = vcmask (!%p388_p2), 80896   ;;  %vm702_vm4 = vcmask (!%p388_p2), 74752  }
   0x8   : > { %1802 = vmatprep.subr.bf16.mxu1 (!%p388_p2), %v1993_v1  ;;  %1820 = vmatprep.mubr.msk.bf16.mxu0 (!%p388_p2), %vm1994_vm0, %v1993_v1  ;;  %v1933_v27 = vld [vmem:[%s2328_s1 + $0x20] sm:$0xff] (!%p388_p2)   ;;  %s1996_s17 = smov (!%p388_p2), 112   ;;  %vm726_vm5 = vcmask (!%p388_p2), 1044480   ;;  %vm905_vm6 = vcmask (!%p388_p2), 1043456   ;;  %s1997_s24 = smov (!%p388_p2), 104   ;;  %vm1363_vm7 = vcmask (!%p388_p2), 254976  }
   0x9   : > { %1817 = vmatpush3.bf16.msra.mxu0 (!%p388_p2), %v1933_v27  ;;  %v1721_v50 = vld [vmem:[%s2329_s2 + $0x2] ss:$0 sm:$0xff] (!%p388_p2)  ;;  %vm1546_vm8 = vcmask (!%p388_p2), 523264  }
   0xa   : > { %1818 = vmatprep.subr.bf16.mxu0 (!%p388_p2), %v1993_v1 }
   0xb   : > { %1803 = vmatpush3.bf16.msra.mxu1 (!%p388_p2), %v1930_v2 }
   0xc   : > { %1808 = vmatprep.subr.bf16.mxu1 (!%p388_p2), %v1993_v1 }
   0xd   : > { %s2342_s26 = smov (!%p431_p3, %s1694_s26), 3  ;;  %1819 = vmatpush3.bf16.msra.mxu0 %v1934_v28 }
   0xe   : > { %s1757_s14 = sshll.u32 %s2342_s26, 4  ;;  %1830 = vmatprep.subr.bf16.mxu0 %v1993_v1 }
   0xf   : > { %s435_s19 = scalar_lea.vmem %s2327_s0, %s1757_s14  ;;  %s440_s15 = scalar_lea.vmem %s2340_s13, %s1757_s14 }
  0x10   : > { %v2101_v4 = vld [vmem:[%s435_s19] sm:$0xff]  ;;  %v2103_v5 = vld [vmem:[%s435_s19 + $0x8] sm:$0x3] }
  0x11   : > { %v444_v6 = vpack.c.bf16 %v2103_v5, %v2101_v4 }
  0x13   : > { %1805 = vmatmul.mubr.msk.bf16.vlgmr.msra.gmra.mrb[0].mxu1 %vm468_vm1, %v444_v6  ;;  %1821 = vmatmul.mubr.msk.bf16.vlgmr.msra.gmra.mrb[0].mxu0 %vm468_vm1, %v444_v6 }
  0x14   : > { %1809 = vmatpush3.bf16.msra.mxu1 %v1931_v3  ;;  %1812 = vmatprep.mubr.msk.bf16.mxu1 %vm1994_vm0, %v1993_v1 }
  0x15   : > { %1810 = vmatprep.subr.bf16.mxu1 %v1993_v1  ;;  %1832 = vmatprep.mubr.msk.bf16.mxu0 %vm1994_vm0, %v1993_v1 }
  0x18   : > { %1811 = vmatpush3.bf16.msra.mxu1 %v1932_v7 }
  0x19   : > { %1824 = vmatprep.subr.bf16.mxu1 %v1993_v1 }
  0x1b   : > { %1813 = vmatmul.mubr.msk.bf16.vlgmr.msra.gmra.mrb[4].mxu1 %vm468_vm1, %v444_v6 }
  0x1c   : > { %1826 = vmatprep.mubr.msk.bf16.mxu1 %vm1994_vm0, %v1993_v1 }
  0xe6   : > { %v506_v9 = vpop.f32.mrb[0].mxu1  ;;  %v638_v51 = vpop.f32.mrb[0].mxu0 }
  0xe7   : > { %v507_v10 = vadd.f32 %v1703_v8, %v506_v9  ;;  %v1806_v11 = vpop.f32.mrb[1].mxu1  ;;  %v639_v52 = vadd.f32 %v1721_v50, %v638_v51  ;;  %v1822_v53 = vpop.f32.mrb[1].mxu0 }
  0xe8   : > { %v509_v12 = vpop.f32.mrb[2].mxu1  ;;  %v641_v54 = vpop.f32.mrb[2].mxu0 }
  0xe9   : > { %v510_v13 = vadd.f32 %v1703_v8, %v509_v12  ;;  %v1807_v14 = vpop.f32.mrb[3].mxu1  ;;  %v645_v15 = vmul.f32 0.35355338, %v507_v10  ;;  %v642_v55 = vadd.f32 %v1721_v50, %v641_v54  ;;  %v1823_v56 = vpop.f32.mrb[3].mxu0 }
  0xeb   : > { %v646_v16 = vmul.f32 0.35355338, %v510_v13  ;;  %v2164_v57 = vpack.c.bf16 %v642_v55, %v639_v52 }
  0xed   : > { %v2121_v17 = vpack.c.bf16 %v646_v16, %v645_v15  ;;  %v728_v62 = vsel %vm726_vm5, %v2164_v57, 0 }
  0xee   : > { %v572_v19 = vpop.f32.mrb[4].mxu1  ;;  %1831 = vmatpush3.bf16.msra.mxu0 %v728_v62 }
  0xef   : > { %v1814_v20 = vpop.f32.mrb[5].mxu1  ;;  %v573_v22 = vadd.f32 %v1712_v18, %v572_v19  ;;  %1842 = vmatprep.subr.bf16.mxu0 %v1993_v1 }
  0xf0   : > { %v575_v21 = vpop.f32.mrb[6].mxu1  ;;  %v1729_v20 = vld [vmem:[%s2330_s3 + $0x4] sm:$0xf] }
  0xf1   : > { %v576_v23 = vadd.f32 %v1712_v18, %v575_v21  ;;  %v1815_v24 = vpop.f32.mrb[7].mxu1  ;;  %v907_v21 = vsel %vm905_vm6, %v1729_v20, 0 }
  0xf3   : > { %v2126_v25 = vpack.c.bf16 %v576_v23, %v573_v22 }
  0xf5   : > { %777 = vrot.lane.b32.xlu0 %v2126_v25, %s1995_s28  ;;  %v655_v26 = vsel %vm650_vm2, %v2126_v25, 0 }
  0xf6   : > { %1825 = vmatpush3.bf16.xpose.msra.mxu1 %v655_v26 }
  0xf7   : > { %1836 = vmatprep.subr.bf16.mxu1 %v1993_v1 }
  0xf9   : > { %774 = vrot.lane.b32.xlu0 %v2121_v17, %s1995_s28 }
  0xfd   : > { %1827 = vmatmul.mubr.msk.bf16.vlgmr.msra.gmra.mrb[8].mxu1 %vm650_vm2, %v2121_v17 }
  0xfe   : > { %1838 = vmatprep.mubr.msk.bf16.mxu1 %vm1994_vm0, %v1993_v1 }
 0x167   : > { %v778_v29 = vpop.permute.xlu0 %777 }
 0x168   : > { %v783_v30 = vsel %vm650_vm2, %v778_v29, 0  ;;  %v772_v29 = vld [vmem:[%s2330_s3] sm:$0xf] }
 0x169   : > { %1837 = vmatpush3.bf16.xpose.msra.mxu1 %v783_v30 }
 0x16a   : > { %1848 = vmatprep.subr.bf16.mxu1 %v1993_v1 }
 0x16b   : > { %v775_v31 = vpop.permute.xlu0 %774 }
 0x170   : > { %1839 = vmatmul.mubr.msk.bf16.vlgmr.msra.gmra.mrb[12].mxu1 %vm650_vm2, %v775_v31 }
 0x171   : > { %1850 = vmatprep.mubr.msk.bf16.mxu1 %vm1994_vm0, %v1993_v1  ;;  %1849 = vmatpush3.bf16.msra.mxu1 %v907_v21 }
 0x172   : > { %1860 = vmatprep.subr.bf16.mxu1 %v1993_v1 }
 0x1d0   : > { %v691_v32 = vpop.f32.mrb[8].mxu1 }
 0x1d1   : > { %v1828_v33 = vpop.f32.mrb[9].mxu1  ;;  %v699_v34 = vsel %vm698_vm3, %v691_v32, -inf }
 0x1d2   : > { %700 = vmax.xlane.f32.xlu1 %v699_v34  ;;  %v694_v35 = vpop.f32.mrb[10].mxu1  ;;  %v954_v33 = vsel %vm905_vm6, %v772_v29, 0 }
 0x1d3   : > { %v1829_v36 = vpop.f32.mrb[11].mxu1  ;;  %v703_v37 = vsel %vm702_vm4, %v694_v35, -inf }
 0x1d6   : > { %704 = vmax.xlane.f32.xlu1 %v703_v37 }
 0x243   : > { %v819_v38 = vpop.f32.mrb[12].mxu1 }
 0x244   : > { %v1840_v39 = vpop.f32.mrb[13].mxu1  ;;  %v826_v40 = vsel %vm698_vm3, %v819_v38, -inf }
 0x245   : > { %827 = vmax.xlane.f32.xlu0 %v826_v40  ;;  %v822_v41 = vpop.f32.mrb[14].mxu1 }
 0x246   : > { %v1841_v42 = vpop.f32.mrb[15].mxu1  ;;  %v829_v43 = vsel %vm702_vm4, %v822_v41, -inf }
 0x247   : > { %830 = vmax.xlane.f32.xlu1 %v829_v43 }
 0x25b   : > { %999 = vrot.lane.b32.xlu0 %v2126_v25, %s1996_s17 }
 0x25f   : > { %v701_v44 = vpop.xlane.xlu1 %700 }
 0x260   : > { %v706_v45 = vsub.f32 %v691_v32, %v701_v44 }
 0x262   : > { %v708_v46 = vmul.f32 1.442695, %v706_v45 }
 0x263   : > { %v705_v47 = vpop.xlane.xlu1 %704 }
 0x264   : > { %1941 = vpow2.f32 %v708_v46  ;;  %v707_v48 = vsub.f32 %v694_v35, %v705_v47 }
 0x266   : > { %v710_v49 = vmul.f32 1.442695, %v707_v48 }
 0x268   : > { %1943 = vpow2.f32 %v710_v49 }
 0x26e   : > { %v1942_v58 = vpop.eup %1941 }
 0x26f   : > { %v712_v59 = vsel %vm698_vm3, %v1942_v58, 0.0 }
 0x270   : > { %713 = vadd.xlane.f32.xlu1 %v712_v59 }
 0x272   : > { %v1944_v60 = vpop.eup %1943 }
 0x273   : > { %v715_v61 = vsel %vm702_vm4, %v1944_v60, 0.0 }
 0x274   : > { %716 = vadd.xlane.f32.xlu1 %v715_v61 }
 0x2d2   : > { %v828_v63 = vpop.xlane.xlu0 %827 }
 0x2d3   : > { %v832_v0 = vsub.f32 %v819_v38, %v828_v63 }
 0x2d4   : > { %v831_v2 = vpop.xlane.xlu1 %830 }
 0x2d5   : > { %v834_v3 = vmul.f32 1.442695, %v832_v0  ;;  %v833_v6 = vsub.f32 %v822_v41, %v831_v2 }
 0x2d6   : > { %v1000_v41 = vpop.permute.xlu0 %999 }
 0x2d7   : > { %1945 = vpow2.f32 %v834_v3  ;;  %v836_v7 = vmul.f32 1.442695, %v833_v6  ;;  %v1005_v45 = vsel %vm650_vm2, %v1000_v41, 0 }
 0x2d9   : > { %1947 = vpow2.f32 %v836_v7 }
 0x2e1   : > { %v1946_v8 = vpop.eup %1945 }
 0x2e2   : > { %v838_v9 = vsel %vm698_vm3, %v1946_v8, 0.0 }
 0x2e3   : > { %v1948_v10 = vpop.eup %1947  ;;  %839 = vadd.xlane.f32.xlu1 %v838_v9 }
 0x2e4   : > { %v841_v11 = vsel %vm702_vm4, %v1948_v10, 0.0 }
 0x2e7   : > { %842 = vadd.xlane.f32.xlu1 %v841_v11 }
 0x2f8   : > { %850 = vrot.lane.b32.xlu1 %v2164_v57, %s1995_s28 }
 0x2fc   : > { %997 = vrot.lane.b32.xlu1 %v2121_v17, %s1996_s17 }
 0x2fd   : > { %v714_v12 = vpop.xlane.xlu1 %713 }
 0x2fe   : > { %1949 = vrcp.f32 %v714_v12 }
 0x301   : > { %v717_v13 = vpop.xlane.xlu1 %716 }
 0x302   : > { %1951 = vrcp.f32 %v717_v13 }
 0x308   : > { %v1950_v14 = vpop.eup %1949 }
 0x309   : > { %v720_v16 = vmul.f32 %v1950_v14, %v1942_v58 }
 0x30c   : > { %v1952_v15 = vpop.eup %1951 }
 0x30d   : > { %v721_v18 = vmul.f32 %v1952_v15, %v1944_v60 }
 0x30f   : > { %v722_v19 = vpack.c.bf16 %v721_v18, %v720_v16 }
 0x311   : > { %1833 = vmatmul.mubr.msk.bf16.vlgmr.msra.gmra.mrb[4].mxu0 %vm698_vm3, %v722_v19 }
 0x312   : > { %1844 = vmatprep.mubr.msk.bf16.mxu0 %vm1994_vm0, %v1993_v1 }
 0x370   : > { %v840_v22 = vpop.xlane.xlu1 %839 }
 0x371   : > { %1953 = vrcp.f32 %v840_v22 }
 0x374   : > { %v843_v23 = vpop.xlane.xlu1 %842 }
 0x375   : > { %1955 = vrcp.f32 %v843_v23 }
 0x378   : > { %v851_v24 = vpop.permute.xlu1 %850 }
 0x379   : > { %v856_v26 = vsel %vm726_vm5, %v851_v24, 0 }
 0x37a   : > { %1843 = vmatpush3.bf16.msra.mxu0 %v856_v26 }
 0x37b   : > { %1854 = vmatprep.subr.bf16.mxu0 %v1993_v1  ;;  %v1954_v27 = vpop.eup %1953 }
 0x37c   : > { %v846_v30 = vmul.f32 %v1954_v27, %v1946_v8  ;;  %v998_v46 = vpop.permute.xlu1 %997 }
 0x37f   : > { %v1956_v28 = vpop.eup %1955 }
 0x380   : > { %v847_v31 = vmul.f32 %v1956_v28, %v1948_v10 }
 0x382   : > { %v848_v32 = vpack.c.bf16 %v847_v31, %v846_v30 }
 0x384   : > { %1845 = vmatmul.mubr.msk.bf16.vlgmr.msra.gmra.mrb[8].mxu0 %vm698_vm3, %v848_v32 }
 0x385   : > { %1855 = vmatpush3.bf16.msra.mxu0 %v954_v33  ;;  %1856 = vmatprep.mubr.msk.bf16.mxu0 %vm1994_vm0, %v1993_v1 }
 0x386   : > { %1866 = vmatprep.subr.bf16.mxu0 %v1993_v1 }
 0x3e4   : > { %v764_v34 = vpop.f32.mrb[4].mxu0 }
 0x3e5   : > { %v1834_v35 = vpop.f32.mrb[5].mxu0 }
 0x3e6   : > { %v767_v36 = vpop.f32.mrb[6].mxu0 }
 0x3e7   : > { %v771_v37 = vpack.c.bf16 %v767_v36, %v764_v34  ;;  %v1835_v38 = vpop.f32.mrb[7].mxu0 }
 0x3e9   : > { %1857 = vmatmul.mubr.msk.bf16.vlgmr.msra.gmra.mrb[12].mxu0 %vm650_vm2, %v771_v37 }
 0x3ea   : > { %1868 = vmatprep.mubr.msk.bf16.mxu0 %vm1994_vm0, %v1993_v1 }
 0x457   : > { %v892_v39 = vpop.f32.mrb[8].mxu0 }
 0x458   : > { %v1846_v40 = vpop.f32.mrb[9].mxu0 }
 0x459   : > { %v895_v42 = vpop.f32.mrb[10].mxu0 }
 0x45a   : > { %v899_v43 = vpack.c.bf16 %v895_v42, %v892_v39  ;;  %v1847_v44 = vpop.f32.mrb[11].mxu0 }
 0x45c   : > { %1851 = vmatmul.mubr.msk.bf16.vlgmr.msra.gmra.mrb[16].mxu1 %vm650_vm2, %v899_v43 }
 0x45d   : > { %1861 = vmatpush3.bf16.xpose.msra.mxu1 %v1005_v45  ;;  %1862 = vmatprep.mubr.msk.bf16.mxu1 %vm1994_vm0, %v1993_v1 }
 0x45e   : > { %1872 = vmatprep.subr.bf16.mxu1 %v1993_v1 }
 0x464   : > { %1863 = vmatmul.mubr.msk.bf16.vlgmr.msra.gmra.mrb[20].mxu1 %vm650_vm2, %v998_v46 }
 0x465   : > { %1874 = vmatprep.mubr.msk.bf16.mxu1 %vm1994_vm0, %v1993_v1 }
 0x4bc   : > { %v990_v47 = vpop.f32.mrb[12].mxu0 }
 0x4bd   : > { %v1858_v48 = vpop.f32.mrb[13].mxu0 }
 0x4be   : > { %v993_v49 = vpop.f32.mrb[14].mxu0 }
 0x4bf   : > { %v1859_v50 = vpop.f32.mrb[15].mxu0 }
 0x52f   : > { %v943_v51 = vpop.f32.mrb[16].mxu1 }
 0x530   : > { %v2206_v52 = vadd.f32 %v990_v47, %v943_v51  ;;  %v1852_v53 = vpop.f32.mrb[17].mxu1 }
 0x531   : > { %v946_v54 = vpop.f32.mrb[18].mxu1 }
 0x532   : > { %v2208_v55 = vadd.f32 %v993_v49, %v946_v54  ;;  %v1853_v56 = vpop.f32.mrb[19].mxu1  ;;  %v1738_v49 = vld [vmem:[%s2330_s3 + $0xc] sm:$0xf] }
 0x533   : > { %v1302_v50 = vsel %vm905_vm6, %v1738_v49, 0 }
 0x537   : > { %v1041_v58 = vpop.f32.mrb[20].mxu1 }
 0x538   : > { %v1864_v59 = vpop.f32.mrb[21].mxu1  ;;  %v1048_v60 = vsel %vm698_vm3, %v1041_v58, -inf }
 0x539   : > { %1049 = vmax.xlane.f32.xlu1 %v1048_v60  ;;  %v1044_v61 = vpop.f32.mrb[22].mxu1 }
 0x53a   : > { %v1865_v62 = vpop.f32.mrb[23].mxu1  ;;  %v1051_v63 = vsel %vm702_vm4, %v1044_v61, -inf }
 0x53b   : > { %1052 = vmax.xlane.f32.xlu0 %v1051_v63 }
 0x551   : > { %1071 = vrot.lane.b32.xlu0 %v2164_v57, %s1996_s17 }
 0x5c6   : > { %v1050_v0 = vpop.xlane.xlu1 %1049 }
 0x5c7   : > { %v1054_v2 = vsub.f32 %v1041_v58, %v1050_v0 }
 0x5c8   : > { %v1053_v3 = vpop.xlane.xlu0 %1052 }
 0x5c9   : > { %v1056_v6 = vmul.f32 1.442695, %v1054_v2  ;;  %v1055_v7 = vsub.f32 %v1044_v61, %v1053_v3 }
 0x5cb   : > { %1957 = vpow2.f32 %v1056_v6  ;;  %v1058_v8 = vmul.f32 1.442695, %v1055_v7 }
 0x5cc   : > { %v1072_v9 = vpop.permute.xlu0 %1071 }
 0x5cd   : > { %1959 = vpow2.f32 %v1058_v8  ;;  %v1077_v10 = vsel %vm726_vm5, %v1072_v9, 0 }
 0x5ce   : > { %1867 = vmatpush3.bf16.msra.mxu0 %v1077_v10  ;;  %v1740_v10 = vld [vmem:[%s2331_s4] ss:$0 sm:$0xff] }
 0x5cf   : > { %1878 = vmatprep.subr.bf16.mxu0 %v1993_v1 }
 0x5d5   : > { %v1958_v11 = vpop.eup %1957 }
 0x5d6   : > { %v1060_v12 = vsel %vm698_vm3, %v1958_v11, 0.0 }
 0x5d7   : > { %v1960_v13 = vpop.eup %1959  ;;  %1061 = vadd.xlane.f32.xlu1 %v1060_v12 }
 0x5d8   : > { %v1063_v14 = vsel %vm702_vm4, %v1960_v13, 0.0 }
 0x5db   : > { %1064 = vadd.xlane.f32.xlu1 %v1063_v14 }
 0x5ec   : > { %1174 = vrot.lane.b32.xlu1 %v2126_v25, %s1997_s24  ;;  %v1734_v25 = vld [vmem:[%s2330_s3 + $0x8] sm:$0xf] }
 0x5ed   : > { %v1127_v26 = vsel %vm905_vm6, %v1734_v25, 0 }
 0x5ee   : > { %1873 = vmatpush3.bf16.msra.mxu1 %v1127_v26 }
 0x5ef   : > { %1884 = vmatprep.subr.bf16.mxu1 %v1993_v1 }
 0x5f0   : > { %1172 = vrot.lane.b32.xlu1 %v2121_v17, %s1997_s24 }
 0x664   : > { %v1062_v15 = vpop.xlane.xlu1 %1061 }
 0x665   : > { %1961 = vrcp.f32 %v1062_v15 }
 0x668   : > { %v1065_v16 = vpop.xlane.xlu1 %1064 }
 0x669   : > { %1963 = vrcp.f32 %v1065_v16 }
 0x66c   : > { %v1175_v22 = vpop.permute.xlu1 %1174 }
 0x66d   : > { %v1180_v24 = vsel %vm650_vm2, %v1175_v22, 0 }
 0x66f   : > { %v1962_v18 = vpop.eup %1961 }
 0x670   : > { %v1068_v20 = vmul.f32 %v1962_v18, %v1958_v11  ;;  %v1173_v17 = vpop.permute.xlu1 %1172 }
 0x673   : > { %v1964_v19 = vpop.eup %1963 }
 0x674   : > { %v1069_v21 = vmul.f32 %v1964_v19, %v1960_v13 }
 0x676   : > { %v1070_v23 = vpack.c.bf16 %v1069_v21, %v1068_v20 }
 0x678   : > { %1869 = vmatmul.mubr.msk.bf16.vlgmr.msra.gmra.mrb[16].mxu0 %vm698_vm3, %v1070_v23 }
 0x679   : > { %1879 = vmatpush3.bf16.xpose.msra.mxu0 %v1180_v24  ;;  %1880 = vmatprep.mubr.msk.bf16.mxu0 %vm1994_vm0, %v1993_v1 }
 0x67a   : > { %1890 = vmatprep.subr.bf16.mxu0 %v1993_v1 }
 0x680   : > { %1881 = vmatmul.mubr.msk.bf16.vlgmr.msra.gmra.mrb[20].mxu0 %vm650_vm2, %v1173_v17 }
 0x681   : > { %1892 = vmatprep.mubr.msk.bf16.mxu0 %vm1994_vm0, %v1993_v1  ;;  %1891 = vmatpush3.bf16.msra.mxu0 %v1302_v50 }
 0x682   : > { %1904 = vmatprep.subr.bf16.mxu0 %v1993_v1 }
 0x74b   : > { %v1113_v27 = vpop.f32.mrb[16].mxu0 }
 0x74c   : > { %v1870_v28 = vpop.f32.mrb[17].mxu0 }
 0x74d   : > { %v1116_v29 = vpop.f32.mrb[18].mxu0 }
 0x74e   : > { %v1120_v30 = vpack.c.bf16 %v1116_v29, %v1113_v27  ;;  %v1871_v31 = vpop.f32.mrb[19].mxu0 }
 0x750   : > { %1875 = vmatmul.mubr.msk.bf16.vlgmr.msra.gmra.mrb[24].mxu1 %vm650_vm2, %v1120_v30 }
 0x751   : > { %1886 = vmatprep.mubr.msk.bf16.mxu1 %vm1994_vm0, %v1993_v1 }
 0x753   : > { %v1216_v32 = vpop.f32.mrb[20].mxu0 }
 0x754   : > { %v1882_v33 = vpop.f32.mrb[21].mxu0  ;;  %v1223_v34 = vsel %vm698_vm3, %v1216_v32, -inf }
 0x755   : > { %1224 = vmax.xlane.f32.xlu0 %v1223_v34  ;;  %v1219_v35 = vpop.f32.mrb[22].mxu0 }
 0x756   : > { %v1883_v36 = vpop.f32.mrb[23].mxu0  ;;  %v1226_v37 = vsel %vm702_vm4, %v1219_v35, -inf }
 0x757   : > { %1227 = vmax.xlane.f32.xlu1 %v1226_v37  ;;  %v1741_v37 = vld [vmem:[%s2332_s5] ss:$0 sm:$0xff] }
 0x768   : > { %1246 = vrot.lane.b32.xlu1 %v2164_v57, %s1997_s24 }
 0x7e2   : > { %v1225_v38 = vpop.xlane.xlu0 %1224 }
 0x7e3   : > { %v1229_v39 = vsub.f32 %v1216_v32, %v1225_v38 }
 0x7e4   : > { %v1228_v40 = vpop.xlane.xlu1 %1227 }
 0x7e5   : > { %v1231_v41 = vmul.f32 1.442695, %v1229_v39  ;;  %v1230_v42 = vsub.f32 %v1219_v35, %v1228_v40  ;;  %v1742_v39 = vld [vmem:[%s2333_s6] ss:$0 sm:$0xff] }
 0x7e7   : > { %1965 = vpow2.f32 %v1231_v41  ;;  %v1233_v43 = vmul.f32 1.442695, %v1230_v42 }
 0x7e8   : > { %v1247_v44 = vpop.permute.xlu1 %1246 }
 0x7e9   : > { %1967 = vpow2.f32 %v1233_v43  ;;  %v1252_v45 = vsel %vm726_vm5, %v1247_v44, 0 }
 0x7ea   : > { %1885 = vmatpush3.bf16.msra.mxu1 %v1252_v45 }
 0x7eb   : > { %1896 = vmatprep.subr.bf16.mxu1 %v1993_v1 }
 0x7f1   : > { %v1966_v46 = vpop.eup %1965 }
 0x7f2   : > { %v1235_v47 = vsel %vm698_vm3, %v1966_v46, 0.0 }
 0x7f3   : > { %v1968_v48 = vpop.eup %1967  ;;  %1236 = vadd.xlane.f32.xlu0 %v1235_v47 }
 0x7f4   : > { %v1238_v57 = vsel %vm702_vm4, %v1968_v48, 0.0 }
 0x7f7   : > { %1239 = vadd.xlane.f32.xlu0 %v1238_v57 }
 0x823   : > { %v1163_v51 = vpop.f32.mrb[24].mxu1 }
 0x824   : > { %v1170_v53 = vadd.f32 %v1163_v51, %v2206_v52  ;;  %v1876_v54 = vpop.f32.mrb[25].mxu1 }
 0x825   : > { %v1166_v56 = vpop.f32.mrb[26].mxu1 }
 0x826   : > { %v1171_v58 = vadd.f32 %v1166_v56, %v2208_v55  ;;  %v1877_v59 = vpop.f32.mrb[27].mxu1 }
 0x880   : > { %v1237_v60 = vpop.xlane.xlu0 %1236 }
 0x881   : > { %1969 = vrcp.f32 %v1237_v60 }
 0x884   : > { %v1240_v61 = vpop.xlane.xlu0 %1239 }
 0x885   : > { %1971 = vrcp.f32 %v1240_v61 }
 0x88b   : > { %v1970_v62 = vpop.eup %1969 }
 0x88c   : > { %v1243_v0 = vmul.f32 %v1970_v62, %v1966_v46  ;;  %v1935_v62 = vld [vmem:[%s2334_s7] sm:$0xff]  }
 0x88f   : > { %v1972_v63 = vpop.eup %1971 }
 0x890   : > { %v1244_v2 = vmul.f32 %v1972_v63, %v1968_v48  ;;  %v1936_v63 = vld [vmem:[%s2334_s7 + $0x8] sm:$0xff]  }
 0x892   : > { %v1245_v3 = vpack.c.bf16 %v1244_v2, %v1243_v0  ;;  %v1937_v0 = vld [vmem:[%s2336_s9] sm:$0xff]   ;;  %v1938_v2 = vld [vmem:[%s2336_s9 + $0x8] sm:$0xff]  }
 0x894   : > { %1887 = vmatmul.mubr.msk.bf16.vlgmr.msra.gmra.mrb[28].mxu1 %vm698_vm3, %v1245_v3 }
 0x895   : > { %1900 = vmatprep.mubr.msk.bf16.mxu1 %vm1994_vm0, %v1993_v1  ;;  %1897 = vmatpush3.bf16.msra.mxu1 %v1935_v62 }
 0x896   : > { %1898 = vmatprep.subr.bf16.mxu1 %v1993_v1 }
 0x899   : > { %1899 = vmatpush3.bf16.msra.mxu1 %v1936_v63 }
 0x967   : > { %v1288_v52 = vpop.f32.mrb[28].mxu1 }
 0x968   : > { %v1888_v6 = vpop.f32.mrb[29].mxu1 }
 0x969   : > { %v1291_v7 = vpop.f32.mrb[30].mxu1 }
 0x96a   : > { %v1295_v8 = vpack.c.bf16 %v1291_v7, %v1288_v52  ;;  %v1889_v55 = vpop.f32.mrb[31].mxu1 }
 0x96c   : > { %1893 = vmatmul.mubr.msk.bf16.vlgmr.msra.gmra.mrb[24].mxu0 %vm650_vm2, %v1295_v8 }
 0x96d   : > { %1912 = vmatprep.mubr.msk.bf16.mxu0 %vm1994_vm0, %v1993_v1  ;;  %1905 = vmatpush3.bf16.msra.mxu0 %v1937_v0 }
 0x96e   : > { %1906 = vmatprep.subr.bf16.mxu0 %v1993_v1 }
 0x971   : > { %1907 = vmatpush3.bf16.msra.mxu0 %v1938_v2 }
 0x972   : > { %1908 = vmatprep.subr.bf16.mxu0 %v1993_v1 }
 0xa3f   : > { %v1338_v9 = vpop.f32.mrb[24].mxu0 }
 0xa40   : > { %v1345_v11 = vadd.f32 %v1338_v9, %v1170_v53  ;;  %v1894_v12 = vpop.f32.mrb[25].mxu0 }
 0xa41   : > { %v1341_v13 = vpop.f32.mrb[26].mxu0 }
 0xa42   : > { %v1354_v14 = vadd.f32 %v1740_v10, %v1345_v11  ;;  %v1346_v15 = vadd.f32 %v1341_v13, %v1171_v58  ;;  %v1895_v16 = vpop.f32.mrb[27].mxu0 }
 0xa44   : > { %v1355_v18 = vadd.f32 %v1740_v10, %v1346_v15  ;;  %v1358_v19 = vadd.f32 %v1354_v14, %v2101_v4 }
 0xa46   : > { %v1360_v20 = vsel %vm468_vm1, %v1358_v19, 0.0  ;;  %v1359_v21 = vadd.f32 %v1355_v18, %v2103_v5 }
 0xa47   : > { %1361 = vadd.xlane.f32.xlu0 %v1360_v20  ;;  %v1940_v20 = vld [vmem:[%s2336_s9 + $0x18] sm:$0xff]  }
 0xa48   : > { %v1364_v22 = vsel %vm1363_vm7, %v1359_v21, 0.0 }
 0xa4b   : > { %1365 = vadd.xlane.f32.xlu0 %v1364_v22 }
 0xad4   : > { %v1362_v23 = vpop.xlane.xlu0 %1361 }
 0xad5   : > { %v1368_v24 = vmul.f32 0.03125, %v1362_v23 }
 0xad7   : > { %v1370_v17 = vsub.f32 %v1358_v19, %v1368_v24  ;;  %v1939_v19 = vld [vmem:[%s2336_s9 + $0x10] sm:$0xff]  }
 0xad8   : > { %v1366_v25 = vpop.xlane.xlu0 %1365  ;;  %1909 = vmatpush3.bf16.msra.mxu0 %v1939_v19 }
 0xad9   : > { %v1369_v26 = vmul.f32 0.03125, %v1366_v25  ;;  %v1372_v27 = vmul.f32 %v1370_v17, %v1370_v17  ;;  %1910 = vmatprep.subr.bf16.mxu0 %v1993_v1  ;;  %v1747_v1 = vld [vmem:[%s2337_s10] ss:$0 sm:$0xff] }
 0xadb   : > { %v1371_v28 = vsub.f32 %v1359_v21, %v1369_v26  ;;  %v1374_v29 = vsel %vm468_vm1, %v1372_v27, 0.0  ;;  %v1743_v21 = vld [vmem:[%s2335_s8] ss:$0 sm:$0xff] }
 0xadc   : > { %1375 = vadd.xlane.f32.xlu0 %v1374_v29  ;;  %1911 = vmatpush3.bf16.msra.mxu0 %v1940_v20 }
 0xadd   : > { %v1373_v4 = vmul.f32 %v1371_v28, %v1371_v28 }
 0xadf   : > { %v1377_v30 = vsel %vm1363_vm7, %v1373_v4, 0.0 }
 0xae0   : > { %1378 = vadd.xlane.f32.xlu0 %v1377_v30 }
 0xb69   : > { %v1376_v5 = vpop.xlane.xlu0 %1375 }
 0xb6a   : > { %v1380_v31 = vmul.f32 0.03125, %v1376_v5 }
 0xb6c   : > { %v1382_v32 = vadd.f32 1e-05, %v1380_v31 }
 0xb6d   : > { %v1379_v33 = vpop.xlane.xlu0 %1378 }
 0xb6e   : > { %1973 = vrsqrt.f32 %v1382_v32  ;;  %v1381_v34 = vmul.f32 0.03125, %v1379_v33 }
 0xb70   : > { %v1383_v35 = vadd.f32 1e-05, %v1381_v34 }
 0xb72   : > { %1975 = vrsqrt.f32 %v1383_v35 }
 0xb78   : > { %v1974_v36 = vpop.eup %1973 }
 0xb79   : > { %v1386_v38 = vmul.f32 %v1974_v36, %v1370_v17 }
 0xb7b   : > { %v1394_v40 = vmul.f32 %v1741_v37, %v1386_v38 }
 0xb7c   : > { %v1976_v41 = vpop.eup %1975 }
 0xb7d   : > { %v1402_v42 = vadd.f32 %v1742_v39, %v1394_v40  ;;  %v1387_v43 = vmul.f32 %v1976_v41, %v1371_v28 }
 0xb7f   : > { %v1404_v44 = vadd.f32 %v1402_v42, %v1354_v14  ;;  %v1395_v45 = vmul.f32 %v1741_v37, %v1387_v43 }
 0xb81   : > { %v1406_v46 = vsel %vm468_vm1, %v1404_v44, 0.0  ;;  %v1403_v47 = vadd.f32 %v1742_v39, %v1395_v45 }
 0xb82   : > { %1407 = vadd.xlane.f32.xlu1 %v1406_v46 }
 0xb83   : > { %v1405_v48 = vadd.f32 %v1403_v47, %v1355_v18 }
 0xb85   : > { %v1409_v57 = vsel %vm1363_vm7, %v1405_v48, 0.0 }
 0xb86   : > { %1410 = vadd.xlane.f32.xlu0 %v1409_v57 }
 0xc0f   : > { %v1408_v49 = vpop.xlane.xlu1 %1407 }
 0xc10   : > { %v1412_v50 = vmul.f32 0.03125, %v1408_v49 }
 0xc12   : > { %v1414_v51 = vsub.f32 %v1404_v44, %v1412_v50 }
 0xc13   : > { %v1411_v53 = vpop.xlane.xlu0 %1410 }
 0xc14   : > { %v1413_v54 = vmul.f32 0.03125, %v1411_v53  ;;  %v1416_v56 = vmul.f32 %v1414_v51, %v1414_v51 }
 0xc16   : > { %v1415_v58 = vsub.f32 %v1405_v48, %v1413_v54  ;;  %v1418_v59 = vsel %vm468_vm1, %v1416_v56, 0.0  ;;  %v1753_v56 = vld [vmem:[%s2338_s11] ss:$0 sm:$0xff] }
 0xc17   : > { %1419 = vadd.xlane.f32.xlu0 %v1418_v59  ;;  %v1754_v59 = vld [vmem:[%s2339_s12] ss:$0 sm:$0xff] }
 0xc18   : > { %v1417_v60 = vmul.f32 %v1415_v58, %v1415_v58 }
 0xc1a   : > { %v1421_v61 = vsel %vm1363_vm7, %v1417_v60, 0.0 }
 0xc1b   : > { %1422 = vadd.xlane.f32.xlu0 %v1421_v61 }
 0xca4   : > { %v1420_v3 = vpop.xlane.xlu0 %1419 }
 0xca5   : > { %v1424_v52 = vmul.f32 0.03125, %v1420_v3 }
 0xca7   : > { %v1426_v6 = vadd.f32 1e-05, %v1424_v52 }
 0xca8   : > { %v1423_v7 = vpop.xlane.xlu0 %1422 }
 0xca9   : > { %1977 = vrsqrt.f32 %v1426_v6  ;;  %v1425_v8 = vmul.f32 0.03125, %v1423_v7 }
 0xcab   : > { %v1427_v55 = vadd.f32 1e-05, %v1425_v8 }
 0xcad   : > { %1979 = vrsqrt.f32 %v1427_v55 }
 0xcb3   : > { %v1978_v9 = vpop.eup %1977 }
 0xcb4   : > { %v1430_v10 = vmul.f32 %v1978_v9, %v1414_v51 }
 0xcb6   : > { %v1432_v12 = vmul.f32 %v1741_v37, %v1430_v10 }
 0xcb7   : > { %v1980_v11 = vpop.eup %1979 }
 0xcb8   : > { %v1431_v13 = vmul.f32 %v1980_v11, %v1415_v58  ;;  %v1434_v15 = vadd.f32 %v1742_v39, %v1432_v12 }
 0xcba   : > { %v1433_v14 = vmul.f32 %v1741_v37, %v1431_v13 }
 0xcbc   : > { %v1435_v16 = vadd.f32 %v1742_v39, %v1433_v14 }
 0xcbe   : > { %v1436_v18 = vpack.c.bf16 %v1435_v16, %v1434_v15 }
 0xcc0   : > { %1901 = vmatmul.mubr.msk.bf16.vlgmr.msra.gmra.mrb[32].mxu1 %vm468_vm1, %v1436_v18 }
 0xd93   : > { %v1497_v22 = vpop.f32.mrb[32].mxu1 }
 0xd94   : > { %v1498_v23 = vadd.f32 %v1743_v21, %v1497_v22  ;;  %v1902_v24 = vpop.f32.mrb[33].mxu1 }
 0xd95   : > { %v1500_v17 = vpop.f32.mrb[34].mxu1 }
 0xd96   : > { %v1501_v25 = vadd.f32 %v1743_v21, %v1500_v17  ;;  %v1903_v26 = vpop.f32.mrb[35].mxu1  ;;  %v1504_v27 = vmax.f32 %v1498_v23, 0.0 }
 0xd98   : > { %v1505_v28 = vmax.f32 %v1501_v25, 0.0 }
 0xd9a   : > { %v1506_v29 = vpack.c.bf16 %v1505_v28, %v1504_v27 }
 0xd9c   : > { %1913 = vmatmul.mubr.msk.bf16.vlgmr.msra.gmra.mrb[28].mxu0 %vm1546_vm8, %v1506_v29 }
 0xe6f   : > { %v1584_v4 = vpop.f32.mrb[28].mxu0 }
 0xe70   : > { %v1585_v30 = vadd.f32 %v1747_v1, %v1584_v4  ;;  %v1914_v5 = vpop.f32.mrb[29].mxu0 }
 0xe71   : > { %v1587_v31 = vpop.f32.mrb[30].mxu0 }
 0xe72   : > { %v1588_v32 = vadd.f32 %v1747_v1, %v1587_v31  ;;  %v1915_v33 = vpop.f32.mrb[31].mxu0  ;;  %v1593_v34 = vadd.f32 %v1585_v30, %v1434_v15 }
 0xe74   : > { %v1595_v35 = vsel %vm468_vm1, %v1593_v34, 0.0  ;;  %v1594_v36 = vadd.f32 %v1588_v32, %v1435_v16 }
 0xe75   : > { %1596 = vadd.xlane.f32.xlu0 %v1595_v35 }
 0xe76   : > { %v1598_v37 = vsel %vm1363_vm7, %v1594_v36, 0.0 }
 0xe79   : > { %1599 = vadd.xlane.f32.xlu0 %v1598_v37 }
 0xf02   : > { %v1597_v38 = vpop.xlane.xlu0 %1596 }
 0xf03   : > { %v1601_v39 = vmul.f32 0.03125, %v1597_v38 }
 0xf05   : > { %v1603_v40 = vsub.f32 %v1593_v34, %v1601_v39 }
 0xf06   : > { %v1600_v41 = vpop.xlane.xlu0 %1599 }
 0xf07   : > { %v1602_v42 = vmul.f32 0.03125, %v1600_v41  ;;  %v1605_v43 = vmul.f32 %v1603_v40, %v1603_v40 }
 0xf09   : > { %v1604_v44 = vsub.f32 %v1594_v36, %v1602_v42  ;;  %v1607_v45 = vsel %vm468_vm1, %v1605_v43, 0.0 }
 0xf0a   : > { %1608 = vadd.xlane.f32.xlu0 %v1607_v45 }
 0xf0b   : > { %v1606_v46 = vmul.f32 %v1604_v44, %v1604_v44 }
 0xf0d   : > { %v1610_v47 = vsel %vm1363_vm7, %v1606_v46, 0.0 }
 0xf0e   : > { %1611 = vadd.xlane.f32.xlu0 %v1610_v47 }
 0xf97   : > { %v1609_v48 = vpop.xlane.xlu0 %1608 }
 0xf98   : > { %v1613_v57 = vmul.f32 0.03125, %v1609_v48 }
 0xf9a   : > { %v1615_v49 = vadd.f32 1e-05, %v1613_v57 }
 0xf9b   : > { %v1612_v50 = vpop.xlane.xlu0 %1611 }
 0xf9c   : > { %1981 = vrsqrt.f32 %v1615_v49  ;;  %v1614_v51 = vmul.f32 0.03125, %v1612_v50 }
 0xf9e   : > { %v1616_v53 = vadd.f32 1e-05, %v1614_v51 }
 0xfa0   : > { %1983 = vrsqrt.f32 %v1616_v53 }
 0xfa6   : > { %v1982_v54 = vpop.eup %1981 }
 0xfa7   : > { %v1619_v58 = vmul.f32 %v1982_v54, %v1603_v40 }
 0xfa9   : > { %v1627_v60 = vmul.f32 %v1753_v56, %v1619_v58 }
 0xfaa   : > { %v1984_v61 = vpop.eup %1983 }
 0xfab   : > { %v1635_v62 = vadd.f32 %v1754_v59, %v1627_v60  ;;  %v1620_v63 = vmul.f32 %v1984_v61, %v1604_v44 }
 0xfad   : > { %1637 = vst.msk [vmem:[%s440_s15] sm:$0xff] %vm468_vm1, %v1635_v62  ;;  %v1628_v0 = vmul.f32 %v1753_v56, %v1620_v63 }
 0xfaf   : > { %v1636_v2 = vadd.f32 %v1754_v59, %v1628_v0 }
 0xfb1   : > { %1638 = vst.msk [vmem:[%s440_s15 + $0x8] sm:$0x3] %vm1363_vm7, %v1636_v2 }
 0xfb2 PF: > { %s23_s25 = sadd.s32 1, %s1991_s25  }
 0xfb3   : > { %p20_p4 = scmp.ge.s32.totalorder %s23_s25, 6  }
 0xfb5   :  { %22 = sbr.rel (!%p20_p4) target bundleno = 1 (0x1), region = 109 }

// kernel: transformer_forward.7
= control target key start
LH: loop header
LB: loop body
LE: loop exit
PB: predicated region body
PF: predicated region fallthrough
CT: control target
= control target key end

     0   :  { %s3640_s0 = inlined_call_operand.vmem [shape: f32[4,8,32], index: 0, kind: input, shape index: {}]   ;;  %s3641_s1 = inlined_call_operand.vmem [shape: f32[4,10,32], index: 1, kind: input, shape index: {}]   ;;  %s3642_s2 = inlined_call_operand.vmem [shape: bf16[3,32,32], index: 2, kind: input, shape index: {}]   ;;  %s3643_s3 = inlined_call_operand.vmem [shape: f32[3,1,32], index: 3, kind: input, shape index: {}]   ;;  %s3644_s4 = inlined_call_operand.vmem [shape: bf16[4,8,32], index: 4, kind: input, shape index: {}]   ;;  %s3645_s5 = inlined_call_operand.vmem [shape: f32[1,32], index: 5, kind: input, shape index: {}]   ;;  %s3646_s6 = inlined_call_operand.vmem [shape: f32[1,32], index: 6, kind: input, shape index: {}]   ;;  %s3647_s7 = inlined_call_operand.vmem [shape: f32[1,32], index: 7, kind: input, shape index: {}]   ;;  %s3648_s8 = inlined_call_operand.vmem [shape: bf16[3,32,32], index: 8, kind: input, shape index: {}]   ;;  %s3649_s9 = inlined_call_operand.vmem [shape: f32[3,1,32], index: 9, kind: input, shape index: {}]   ;;  %s3650_s10 = inlined_call_operand.vmem [shape: bf16[4,8,32], index: 10, kind: input, shape index: {}]   ;;  %s3651_s11 = inlined_call_operand.vmem [shape: f32[1,32], index: 11, kind: input, shape index: {}]   ;;  %s3652_s12 = inlined_call_operand.vmem [shape: f32[1,32], index: 12, kind: input, shape index: {}]   ;;  %s3653_s13 = inlined_call_operand.vmem [shape: f32[1,32], index: 13, kind: input, shape index: {}]   ;;  %s3654_s14 = inlined_call_operand.vmem [shape: bf16[32,64], index: 14, kind: input, shape index: {}]   ;;  %s3655_s15 = inlined_call_operand.vmem [shape: f32[1,64], index: 15, kind: input, shape index: {}]   ;;  %s3656_s16 = inlined_call_operand.vmem [shape: bf16[64,32], index: 16, kind: input, shape index: {}]   ;;  %s3657_s17 = inlined_call_operand.vmem [shape: f32[1,32], index: 17, kind: input, shape index: {}]   ;;  %s3658_s18 = inlined_call_operand.vmem [shape: f32[1,32], index: 18, kind: input, shape index: {}]   ;;  %s3659_s19 = inlined_call_operand.vmem [shape: f32[1,32], index: 19, kind: input, shape index: {}]   ;;  %s3660_s20 = inlined_call_operand.vmem [shape: f32[4,8,32], index: 20, kind: output, shape index: {}]  }
   0x1   :  { %3669 = sst [smem:[#allocation2_spill]] %s3640_s0 }
   0x2   :  { %3670 = sst [smem:[#allocation3_spill]] %s3641_s1  ;;  %s3232_s1 = smov 0  }
   0x3   :  { %3671 = sst [smem:[#allocation4_spill]] %s3642_s2 }
   0x4   :  { %3672 = sst [smem:[#allocation5_spill]] %s3643_s3 }
   0x5   :  { %3673 = sst [smem:[#allocation6_spill]] %s3644_s4 }
   0x6 LB: > { %s2655_s22 = sadd.s32 4294967295, %s3120_s1   ;;  %p2659_p0 = scmp.ge.s32.totalorder %s3120_s1, 1  ;;  %s3120_s1 = sphi %s3232_s1, %s30_s1  }
   0x7   : > { %p571_p1 = scmp.lt.s32.totalorder %s3120_s1, 5 }
   0x9   : > { %p572_p2 = pnand %p2659_p0, %p571_p1 }
   0xa   : > { %s3674_s2 = sld [smem:[#allocation4_spill]] (!%p572_p2)  ;;  %v3122_v1 = vmov (!%p572_p2), 0.0   ;;  %vm3123_vm0 = vmmov (!%p572_p2), 0   ;;  %p632_p3 = scmp.lt.s32.totalorder (!%p572_p2), %s2655_s22, 3  ;;  %vm673_vm1 = vcmask (!%p572_p2), 261120   ;;  %vm851_vm2 = vcmask (!%p572_p2), 64512  }
   0xb   : > { %575 = sbr.rel (%p572_p2) target bundleno = 6566 (0x19a6), region = 100  ;;  %2841 = vmatprep.subr.bf16.mxu1 (!%p572_p2), %v3122_v1  ;;  %2833 = vmatprep.subr.bf16.mxu0 (!%p572_p2), %v3122_v1  ;;  %s3675_s21 = sld [smem:[#allocation2_spill]] (!%p572_p2)  ;;  %vm913_vm3 = vcmask (!%p572_p2), 1043456   ;;  %vm1779_vm4 = vcmask (!%p572_p2), 80896   ;;  %vm1795_vm5 = vcmask (!%p572_p2), 1044480   ;;  %vm2515_vm6 = vcmask (!%p572_p2), 523264  }
   0xc   : > { %2845 = vmatprep.mubr.msk.bf16.mxu1 (!%p572_p2), %vm3123_vm0, %v3122_v1  ;;  %2837 = vmatprep.mubr.msk.bf16.mxu0 (!%p572_p2), %vm3123_vm0, %v3122_v1  ;;  %s3676_s3 = sld [smem:[#allocation5_spill]] (!%p572_p2)  ;;  %s3124_s28 = smov (!%p572_p2), 120  }
   0xd   : > { %s3667_s25 = smov (!%p572_p2), 112   ;;  %s3677_s4 = sld [smem:[#allocation6_spill]] (!%p572_p2) }
  0x10   : > { %v3058_v0 = vld [vmem:[%s3674_s2 + $0x10] sm:$0xff] (!%p572_p2)   ;;  %v3059_v2 = vld [vmem:[%s3674_s2] sm:$0xff] (!%p572_p2)   ;;  %v3060_v3 = vld [vmem:[%s3674_s2 + $0x18] sm:$0xff] (!%p572_p2)  }
  0x11   : > { %2842 = vmatpush3.bf16.msra.mxu1 (!%p572_p2), %v3058_v0  ;;  %2834 = vmatpush3.bf16.msra.mxu0 (!%p572_p2), %v3059_v2  ;;  %v3061_v4 = vld [vmem:[%s3674_s2 + $0x8] sm:$0xff] (!%p572_p2)   ;;  %v3062_v23 = vld [vmem:[%s3674_s2 + $0x20] sm:$0xff] (!%p572_p2)  }
  0x12   : > { %2843 = vmatprep.subr.bf16.mxu1 %v3122_v1  ;;  %2835 = vmatprep.subr.bf16.mxu0 %v3122_v1  ;;  %s3683_s22 = smov (!%p632_p3, %s2655_s22), 3  ;;  %v2673_v7 = vld [vmem:[%s3676_s3 + $0x1] ss:$0 sm:$0xff]  ;;  %v2664_v8 = vld [vmem:[%s3676_s3] ss:$0 sm:$0xff]  ;;  %v3063_v24 = vld [vmem:[%s3674_s2 + $0x28] sm:$0xff]  }
  0x13   : > { %s3664_s29 = sshll.u32 %s3683_s22, 3  ;;  %v2682_v47 = vld [vmem:[%s3676_s3 + $0x2] ss:$0 sm:$0xff]  ;;  %v2690_v60 = vld [vmem:[%s3677_s4 + $0x4] sm:$0xf]  ;;  %s2758_s26 = sshll.u32 %s3683_s22, 4 }
  0x14   : > { %s635_s23 = scalar_lea.vmem %s3675_s21, %s3664_s29  ;;  %v1079_v61 = vsel %vm913_vm3, %v2690_v60, 0  ;;  %s3665_s21 = smov 104  }
  0x15   : > { %2844 = vmatpush3.bf16.msra.mxu1 %v3060_v3  ;;  %2836 = vmatpush3.bf16.msra.mxu0 %v3061_v4  ;;  %v3269_v5 = vld [vmem:[%s635_s23] sm:$0xff]  ;;  %s3679_s23 = smov 112   ;;  %s3680_s29 = smov 104  }
  0x16   : > { %2857 = vmatprep.subr.bf16.mxu1 %v3122_v1  ;;  %2849 = vmatprep.subr.bf16.mxu0 %v3122_v1  ;;  %v649_v6 = vpack.c.bf16 %v3269_v5, %v3269_v5  ;;  %v958_v3 = vld [vmem:[%s3677_s4] sm:$0xf] }
  0x18   : > { %2846 = vmatmul.mubr.msk.bf16.vlgmr.msra.gmra.mrb[0].mxu1 %vm673_vm1, %v649_v6  ;;  %2838 = vmatmul.mubr.msk.bf16.vlgmr.msra.gmra.mrb[0].mxu0 %vm673_vm1, %v649_v6 }
  0x19   : > { %2859 = vmatprep.mubr.msk.bf16.mxu1 %vm3123_vm0, %v3122_v1  ;;  %2853 = vmatprep.mubr.msk.bf16.mxu0 %vm3123_vm0, %v3122_v1 }
  0x1a   : > { %2850 = vmatpush3.bf16.msra.mxu0 %v3062_v23 }
  0x1b   : > { %2851 = vmatprep.subr.bf16.mxu0 %v3122_v1 }
  0x1e   : > { %2852 = vmatpush3.bf16.msra.mxu0 %v3063_v24 }
  0x1f   : > { %2863 = vmatprep.subr.bf16.mxu0 %v3122_v1 }
  0x21   : > { %2854 = vmatmul.mubr.msk.bf16.vlgmr.msra.gmra.mrb[4].mxu0 %vm673_vm1, %v649_v6 }
  0x22   : > { %2865 = vmatprep.mubr.msk.bf16.mxu0 %vm3123_vm0, %v3122_v1 }
  0xeb   : > { %v776_v9 = vpop.f32.mrb[0].mxu1  ;;  %v711_v10 = vpop.f32.mrb[0].mxu0 }
  0xec   : > { %v777_v11 = vadd.f32 %v2673_v7, %v776_v9  ;;  %v2847_v12 = vpop.f32.mrb[1].mxu1  ;;  %v712_v13 = vadd.f32 %v2664_v8, %v711_v10  ;;  %v2839_v14 = vpop.f32.mrb[1].mxu0  ;;  %v1125_v7 = vsel %vm913_vm3, %v958_v3, 0 }
  0xed   : > { %v779_v15 = vpop.f32.mrb[2].mxu1  ;;  %v714_v16 = vpop.f32.mrb[2].mxu0 }
  0xee   : > { %v3286_v17 = vpack.c.bf16 %v777_v11, %v777_v11  ;;  %v2848_v18 = vpop.f32.mrb[3].mxu1  ;;  %v847_v19 = vmul.f32 0.35355338, %v712_v13  ;;  %v2840_v20 = vpop.f32.mrb[3].mxu0 }
  0xf0   : > { %v3288_v21 = vpack.c.bf16 %v847_v19, %v847_v19  ;;  %963 = vrot.lane.b32.xlu0 %v3286_v17, %s3124_s28  ;;  %v856_v22 = vsel %vm851_vm2, %v3286_v17, 0 }
  0xf1   : > { %2858 = vmatpush3.bf16.xpose.msra.mxu1 %v856_v22 }
  0xf2   : > { %2869 = vmatprep.subr.bf16.mxu1 %v3122_v1 }
  0xf4   : > { %960 = vrot.lane.b32.xlu0 %v3288_v21, %s3124_s28  ;;  %v841_v41 = vpop.f32.mrb[4].mxu0 }
  0xf5   : > { %v2855_v42 = vpop.f32.mrb[5].mxu0  ;;  %v842_v48 = vadd.f32 %v2682_v47, %v841_v41 }
  0xf6   : > { %v844_v43 = vpop.f32.mrb[6].mxu0 }
  0xf7   : > { %v2856_v44 = vpop.f32.mrb[7].mxu0  ;;  %v3323_v49 = vpack.c.bf16 %v842_v48, %v842_v48 }
  0xf8   : > { %2860 = vmatmul.mubr.msk.bf16.vlgmr.msra.gmra.mrb[4].mxu1 %vm851_vm2, %v3288_v21 }
  0xf9   : > { %2871 = vmatprep.mubr.msk.bf16.mxu1 %vm3123_vm0, %v3122_v1  ;;  %v915_v50 = vsel %vm913_vm3, %v3323_v49, 0 }
  0xfa   : > { %2864 = vmatpush3.bf16.msra.mxu0 %v915_v50 }
  0xfb   : > { %2875 = vmatprep.subr.bf16.mxu0 %v3122_v1 }
 0x162   : > { %v964_v25 = vpop.permute.xlu0 %963 }
 0x163   : > { %v969_v26 = vsel %vm851_vm2, %v964_v25, 0 }
 0x164   : > { %2870 = vmatpush3.bf16.xpose.msra.mxu1 %v969_v26 }
 0x165   : > { %2881 = vmatprep.subr.bf16.mxu1 %v3122_v1 }
 0x166   : > { %v961_v27 = vpop.permute.xlu0 %960 }
 0x16b   : > { %2872 = vmatmul.mubr.msk.bf16.vlgmr.msra.gmra.mrb[8].mxu1 %vm851_vm2, %v961_v27 }
 0x16c   : > { %2883 = vmatprep.mubr.msk.bf16.mxu1 %vm3123_vm0, %v3122_v1  ;;  %2882 = vmatpush3.bf16.msra.mxu1 %v1079_v61 }
 0x16d   : > { %2893 = vmatprep.subr.bf16.mxu1 %v3122_v1 }
 0x1cb   : > { %v892_v28 = vpop.f32.mrb[4].mxu1 }
 0x1cc   : > { %v2861_v29 = vpop.f32.mrb[5].mxu1  ;;  %v898_v30 = vsel %vm851_vm2, %v892_v28, -inf }
 0x1cd   : > { %899 = vmax.xlane.f32.xlu1 %v898_v30  ;;  %v895_v31 = vpop.f32.mrb[6].mxu1 }
 0x1ce   : > { %v2862_v32 = vpop.f32.mrb[7].mxu1 }
 0x23e   : > { %v1005_v33 = vpop.f32.mrb[8].mxu1 }
 0x23f   : > { %v2873_v34 = vpop.f32.mrb[9].mxu1  ;;  %v1011_v35 = vsel %vm851_vm2, %v1005_v33, -inf }
 0x240   : > { %1012 = vmax.xlane.f32.xlu1 %v1011_v35  ;;  %v1008_v36 = vpop.f32.mrb[10].mxu1 }
 0x241   : > { %v2874_v37 = vpop.f32.mrb[11].mxu1 }
 0x25a   : > { %v900_v38 = vpop.xlane.xlu1 %899 }
 0x25b   : > { %v901_v39 = vsub.f32 %v892_v28, %v900_v38 }
 0x25d   : > { %v902_v40 = vmul.f32 1.442695, %v901_v39 }
 0x25f   : > { %3076 = vpow2.f32 %v902_v40 }
 0x269   : > { %v3077_v45 = vpop.eup %3076 }
 0x26a   : > { %v904_v46 = vsel %vm851_vm2, %v3077_v45, 0.0 }
 0x26b   : > { %905 = vadd.xlane.f32.xlu0 %v904_v46 }
 0x281   : > { %1229 = vrot.lane.b32.xlu0 %v3323_v49, %s3667_s25 }
 0x2cd   : > { %v1013_v51 = vpop.xlane.xlu1 %1012 }
 0x2ce   : > { %v1014_v52 = vsub.f32 %v1005_v33, %v1013_v51 }
 0x2d0   : > { %v1015_v53 = vmul.f32 1.442695, %v1014_v52 }
 0x2d2   : > { %3078 = vpow2.f32 %v1015_v53 }
 0x2dc   : > { %v3079_v54 = vpop.eup %3078 }
 0x2dd   : > { %v1017_v55 = vsel %vm851_vm2, %v3079_v54, 0.0 }
 0x2de   : > { %1018 = vadd.xlane.f32.xlu1 %v1017_v55 }
 0x2ef   : > { %1024 = vrot.lane.b32.xlu1 %v3323_v49, %s3124_s28 }
 0x2f3   : > { %1169 = vrot.lane.b32.xlu1 %v3286_v17, %s3667_s25 }
 0x2f7   : > { %1167 = vrot.lane.b32.xlu1 %v3288_v21, %s3667_s25 }
 0x2f8   : > { %v906_v56 = vpop.xlane.xlu0 %905 }
 0x2f9   : > { %3080 = vrcp.f32 %v906_v56 }
 0x2fc   : > { %v1230_v8 = vpop.permute.xlu0 %1229 }
 0x2fd   : > { %v1235_v13 = vsel %vm913_vm3, %v1230_v8, 0 }
 0x303   : > { %v3081_v57 = vpop.eup %3080 }
 0x304   : > { %v908_v58 = vmul.f32 %v3081_v57, %v3077_v45 }
 0x306   : > { %v909_v59 = vpack.c.bf16 %v908_v58, %v908_v58 }
 0x308   : > { %2866 = vmatmul.mubr.msk.bf16.vlgmr.msra.gmra.mrb[8].mxu0 %vm851_vm2, %v909_v59 }
 0x309   : > { %2877 = vmatprep.mubr.msk.bf16.mxu0 %vm3123_vm0, %v3122_v1 }
 0x36b   : > { %v1019_v62 = vpop.xlane.xlu1 %1018 }
 0x36c   : > { %3082 = vrcp.f32 %v1019_v62 }
 0x36f   : > { %v1025_v63 = vpop.permute.xlu1 %1024 }
 0x370   : > { %v1030_v0 = vsel %vm913_vm3, %v1025_v63, 0 }
 0x371   : > { %2876 = vmatpush3.bf16.msra.mxu0 %v1030_v0 }
 0x372   : > { %2887 = vmatprep.subr.bf16.mxu0 %v3122_v1 }
 0x373   : > { %v1170_v15 = vpop.permute.xlu1 %1169 }
 0x374   : > { %v1175_v22 = vsel %vm851_vm2, %v1170_v15, 0 }
 0x376   : > { %v3083_v2 = vpop.eup %3082 }
 0x377   : > { %v1021_v4 = vmul.f32 %v3083_v2, %v3079_v54  ;;  %v1168_v24 = vpop.permute.xlu1 %1167 }
 0x379   : > { %v1022_v6 = vpack.c.bf16 %v1021_v4, %v1021_v4  ;;  %v2699_v4 = vld [vmem:[%s3677_s4 + $0xc] sm:$0xf] }
 0x37b   : > { %2878 = vmatmul.mubr.msk.bf16.vlgmr.msra.gmra.mrb[12].mxu0 %vm851_vm2, %v1022_v6  ;;  %v1444_v6 = vsel %vm913_vm3, %v2699_v4, 0 }
 0x37c   : > { %2888 = vmatpush3.bf16.msra.mxu0 %v1125_v7  ;;  %2889 = vmatprep.mubr.msk.bf16.mxu0 %vm3123_vm0, %v3122_v1 }
 0x37d   : > { %2899 = vmatprep.subr.bf16.mxu0 %v3122_v1 }
 0x3db   : > { %v951_v9 = vpop.f32.mrb[8].mxu0 }
 0x3dc   : > { %v957_v10 = vpack.c.bf16 %v951_v9, %v951_v9  ;;  %v2867_v11 = vpop.f32.mrb[9].mxu0 }
 0x3dd   : > { %v954_v12 = vpop.f32.mrb[10].mxu0 }
 0x3de   : > { %v2868_v14 = vpop.f32.mrb[11].mxu0  ;;  %2890 = vmatmul.mubr.msk.bf16.vlgmr.msra.gmra.mrb[16].mxu0 %vm851_vm2, %v957_v10 }
 0x3df   : > { %2900 = vmatpush3.bf16.msra.mxu0 %v1235_v13  ;;  %2901 = vmatprep.mubr.msk.bf16.mxu0 %vm3123_vm0, %v3122_v1 }
 0x3e0   : > { %2911 = vmatprep.subr.bf16.mxu0 %v3122_v1 }
 0x44e   : > { %v1066_v16 = vpop.f32.mrb[12].mxu0 }
 0x44f   : > { %v1072_v18 = vpack.c.bf16 %v1066_v16, %v1066_v16  ;;  %v2879_v19 = vpop.f32.mrb[13].mxu0 }
 0x450   : > { %v1069_v20 = vpop.f32.mrb[14].mxu0 }
 0x451   : > { %v2880_v23 = vpop.f32.mrb[15].mxu0  ;;  %2884 = vmatmul.mubr.msk.bf16.vlgmr.msra.gmra.mrb[12].mxu1 %vm851_vm2, %v1072_v18 }
 0x452   : > { %2894 = vmatpush3.bf16.xpose.msra.mxu1 %v1175_v22  ;;  %2895 = vmatprep.mubr.msk.bf16.mxu1 %vm3123_vm0, %v3122_v1 }
 0x453   : > { %2905 = vmatprep.subr.bf16.mxu1 %v3122_v1 }
 0x459   : > { %2896 = vmatmul.mubr.msk.bf16.vlgmr.msra.gmra.mrb[16].mxu1 %vm851_vm2, %v1168_v24 }
 0x45a   : > { %2907 = vmatprep.mubr.msk.bf16.mxu1 %vm3123_vm0, %v3122_v1 }
 0x4b1   : > { %v1161_v25 = vpop.f32.mrb[16].mxu0 }
 0x4b2   : > { %v2891_v26 = vpop.f32.mrb[17].mxu0 }
 0x4b3   : > { %v1164_v27 = vpop.f32.mrb[18].mxu0 }
 0x4b4   : > { %v2892_v28 = vpop.f32.mrb[19].mxu0 }
 0x524   : > { %v1115_v29 = vpop.f32.mrb[12].mxu1 }
 0x525   : > { %v3368_v30 = vadd.f32 %v1161_v25, %v1115_v29  ;;  %v2885_v31 = vpop.f32.mrb[13].mxu1  ;;  %v2701_v25 = vld [vmem:[%s3645_s5] ss:$0 sm:$0xff] }
 0x526   : > { %v1118_v32 = vpop.f32.mrb[14].mxu1 }
 0x527   : > { %v2886_v33 = vpop.f32.mrb[15].mxu1 }
 0x52c   : > { %v1211_v34 = vpop.f32.mrb[16].mxu1 }
 0x52d   : > { %v2897_v35 = vpop.f32.mrb[17].mxu1  ;;  %v1217_v36 = vsel %vm851_vm2, %v1211_v34, -inf }
 0x52e   : > { %1218 = vmax.xlane.f32.xlu1 %v1217_v36  ;;  %v1214_v37 = vpop.f32.mrb[18].mxu1 }
 0x52f   : > { %v2898_v38 = vpop.f32.mrb[19].mxu1 }
 0x530   : > { %v3064_v38 = vld [vmem:[%s3648_s8 + $0x10] sm:$0xff]  }
 0x5bb   : > { %v1219_v39 = vpop.xlane.xlu1 %1218 }
 0x5bc   : > { %v1220_v40 = vsub.f32 %v1211_v34, %v1219_v39 }
 0x5be   : > { %v1221_v41 = vmul.f32 1.442695, %v1220_v40 }
 0x5c0   : > { %3084 = vpow2.f32 %v1221_v41 }
 0x5ca   : > { %v3085_v42 = vpop.eup %3084 }
 0x5cb   : > { %v1223_v43 = vsel %vm851_vm2, %v3085_v42, 0.0 }
 0x5cc   : > { %1224 = vadd.xlane.f32.xlu0 %v1223_v43  ;;  %v3067_v43 = vld [vmem:[%s3648_s8 + $0x8] sm:$0xff]  }
 0x5e2   : > { %1329 = vrot.lane.b32.xlu0 %v3286_v17, %s3665_s21 }
 0x5e6   : > { %1327 = vrot.lane.b32.xlu0 %v3288_v21, %s3665_s21  ;;  %v2695_v21 = vld [vmem:[%s3677_s4 + $0x8] sm:$0xf] }
 0x5e7   : > { %v1284_v51 = vsel %vm913_vm3, %v2695_v21, 0 }
 0x5e8   : > { %2906 = vmatpush3.bf16.msra.mxu1 %v1284_v51 }
 0x5e9   : > { %2917 = vmatprep.subr.bf16.mxu1 %v3122_v1 }
 0x659   : > { %v1225_v44 = vpop.xlane.xlu0 %1224 }
 0x65a   : > { %3086 = vrcp.f32 %v1225_v44 }
 0x65d   : > { %v1330_v47 = vpop.permute.xlu0 %1329 }
 0x65e   : > { %v1335_v50 = vsel %vm851_vm2, %v1330_v47, 0 }
 0x661   : > { %v1328_v17 = vpop.permute.xlu0 %1327 }
 0x664   : > { %v3087_v45 = vpop.eup %3086 }
 0x665   : > { %v1227_v46 = vmul.f32 %v3087_v45, %v3085_v42  ;;  %v3066_v42 = vld [vmem:[%s3648_s8] sm:$0xff]  }
 0x667   : > { %v1228_v48 = vpack.c.bf16 %v1227_v46, %v1227_v46 }
 0x669   : > { %2902 = vmatmul.mubr.msk.bf16.vlgmr.msra.gmra.mrb[20].mxu0 %vm851_vm2, %v1228_v48  ;;  %v2702_v48 = vld [vmem:[%s3646_s6] ss:$0 sm:$0xff] }
 0x66a   : > { %2912 = vmatpush3.bf16.xpose.msra.mxu0 %v1335_v50  ;;  %2913 = vmatprep.mubr.msk.bf16.mxu0 %vm3123_vm0, %v3122_v1 }
 0x66b   : > { %2923 = vmatprep.subr.bf16.mxu0 %v3122_v1 }
 0x671   : > { %2914 = vmatmul.mubr.msk.bf16.vlgmr.msra.gmra.mrb[24].mxu0 %vm851_vm2, %v1328_v17  ;;  %v2703_v17 = vld [vmem:[%s3647_s7] ss:$0 sm:$0xff] }
 0x672   : > { %2925 = vmatprep.mubr.msk.bf16.mxu0 %vm3123_vm0, %v3122_v1  ;;  %2924 = vmatpush3.bf16.msra.mxu0 %v1444_v6 }
 0x673   : > { %2937 = vmatprep.subr.bf16.mxu0 %v3122_v1 }
 0x73c   : > { %v1271_v52 = vpop.f32.mrb[20].mxu0 }
 0x73d   : > { %v1277_v53 = vpack.c.bf16 %v1271_v52, %v1271_v52  ;;  %v2903_v54 = vpop.f32.mrb[21].mxu0 }
 0x73e   : > { %v1274_v55 = vpop.f32.mrb[22].mxu0 }
 0x73f   : > { %v2904_v56 = vpop.f32.mrb[23].mxu0  ;;  %2908 = vmatmul.mubr.msk.bf16.vlgmr.msra.gmra.mrb[20].mxu1 %vm851_vm2, %v1277_v53  ;;  %v2713_v53 = vld [vmem:[%s3649_s9 + $0x1] ss:$0 sm:$0xff] }
 0x740   : > { %2919 = vmatprep.mubr.msk.bf16.mxu1 %vm3123_vm0, %v3122_v1 }
 0x744   : > { %v1371_v57 = vpop.f32.mrb[24].mxu0 }
 0x745   : > { %v2915_v58 = vpop.f32.mrb[25].mxu0  ;;  %v1377_v59 = vsel %vm851_vm2, %v1371_v57, -inf }
 0x746   : > { %1378 = vmax.xlane.f32.xlu0 %v1377_v59  ;;  %v1374_v60 = vpop.f32.mrb[26].mxu0 }
 0x747   : > { %v2916_v61 = vpop.f32.mrb[27].mxu0 }
 0x7d3   : > { %v1379_v62 = vpop.xlane.xlu0 %1378 }
 0x7d4   : > { %v1380_v63 = vsub.f32 %v1371_v57, %v1379_v62  ;;  %v2704_v62 = vld [vmem:[%s3649_s9] ss:$0 sm:$0xff] }
 0x7d6   : > { %v1381_v0 = vmul.f32 1.442695, %v1380_v63 }
 0x7d8   : > { %3088 = vpow2.f32 %v1381_v0 }
 0x7e2   : > { %v3089_v2 = vpop.eup %3088 }
 0x7e3   : > { %v1383_v3 = vsel %vm851_vm2, %v3089_v2, 0.0 }
 0x7e4   : > { %1384 = vadd.xlane.f32.xlu1 %v1383_v3 }
 0x7f5   : > { %1389 = vrot.lane.b32.xlu1 %v3323_v49, %s3665_s21  ;;  %s3678_s21 = sld [smem:[#allocation3_spill]] }
 0x7fb   : > { %s640_s25 = scalar_lea.vmem %s3678_s21, %s2758_s26 }
 0x7fc   : > { %v647_v39 = vld [vmem:[%s640_s25] sm:$0xff]  ;;  %v648_v40 = vld [vmem:[%s640_s25 + $0x8] sm:$0x3]  ;;  %s3681_s25 = sshll.u32 %s3683_s22, 3 }
 0x7fd   : > { %v1527_v41 = vpack.c.bf16 %v648_v40, %v647_v39  ;;  %s644_s0 = scalar_lea.vmem %s3660_s20, %s3681_s25 }
 0x812   : > { %v1320_v7 = vpop.f32.mrb[20].mxu1 }
 0x813   : > { %v1326_v8 = vadd.f32 %v1320_v7, %v3368_v30  ;;  %v2909_v9 = vpop.f32.mrb[21].mxu1 }
 0x814   : > { %v1323_v10 = vpop.f32.mrb[22].mxu1 }
 0x815   : > { %v2910_v11 = vpop.f32.mrb[23].mxu1  ;;  %v3068_v10 = vld [vmem:[%s3648_s8 + $0x20] sm:$0xff]  }
 0x816   : > { %v3069_v11 = vld [vmem:[%s3648_s8 + $0x28] sm:$0xff]  }
 0x871   : > { %v1385_v12 = vpop.xlane.xlu1 %1384 }
 0x872   : > { %3090 = vrcp.f32 %v1385_v12 }
 0x875   : > { %v1390_v13 = vpop.permute.xlu1 %1389 }
 0x876   : > { %v1395_v49 = vsel %vm913_vm3, %v1390_v13, 0 }
 0x877   : > { %2918 = vmatpush3.bf16.msra.mxu1 %v1395_v49 }
 0x878   : > { %2929 = vmatprep.subr.bf16.mxu1 %v3122_v1 }
 0x87c   : > { %v3091_v14 = vpop.eup %3090 }
 0x87d   : > { %v1387_v15 = vmul.f32 %v3091_v14, %v3089_v2 }
 0x87f   : > { %v1388_v16 = vpack.c.bf16 %v1387_v15, %v1387_v15 }
 0x881   : > { %2920 = vmatmul.mubr.msk.bf16.vlgmr.msra.gmra.mrb[24].mxu1 %vm851_vm2, %v1388_v16 }
 0x882   : > { %2933 = vmatprep.mubr.msk.bf16.mxu1 %vm3123_vm0, %v3122_v1  ;;  %2930 = vmatpush3.bf16.msra.mxu1 %v3066_v42 }
 0x883   : > { %2931 = vmatprep.subr.bf16.mxu1 %v3122_v1 }
 0x886   : > { %2932 = vmatpush3.bf16.msra.mxu1 %v3067_v43 }
 0x887   : > { %2945 = vmatprep.subr.bf16.mxu1 %v3122_v1 }
 0x954   : > { %v1431_v18 = vpop.f32.mrb[24].mxu1 }
 0x955   : > { %v1437_v19 = vpack.c.bf16 %v1431_v18, %v1431_v18  ;;  %v2921_v20 = vpop.f32.mrb[25].mxu1 }
 0x956   : > { %v1434_v22 = vpop.f32.mrb[26].mxu1 }
 0x957   : > { %v2922_v23 = vpop.f32.mrb[27].mxu1  ;;  %2926 = vmatmul.mubr.msk.bf16.vlgmr.msra.gmra.mrb[28].mxu0 %vm851_vm2, %v1437_v19 }
 0x958   : > { %2941 = vmatprep.mubr.msk.bf16.mxu0 %vm3123_vm0, %v3122_v1  ;;  %2938 = vmatpush3.bf16.msra.mxu0 %v3064_v38 }
 0x959   : > { %2939 = vmatprep.subr.bf16.mxu0 %v3122_v1 }
 0xa2a   : > { %v1480_v24 = vpop.f32.mrb[28].mxu0 }
 0xa2b   : > { %v1486_v26 = vadd.f32 %v1480_v24, %v1326_v8  ;;  %v2927_v27 = vpop.f32.mrb[29].mxu0 }
 0xa2c   : > { %v1483_v28 = vpop.f32.mrb[30].mxu0  ;;  %v2722_v27 = vld [vmem:[%s3649_s9 + $0x2] ss:$0 sm:$0xff] }
 0xa2d   : > { %v1494_v29 = vadd.f32 %v2701_v25, %v1486_v26  ;;  %v2928_v30 = vpop.f32.mrb[31].mxu0 }
 0xa2f   : > { %v1497_v31 = vadd.f32 %v1494_v29, %v3269_v5  ;;  %v3065_v5 = vld [vmem:[%s3648_s8 + $0x18] sm:$0xff]  }
 0xa30   : > { %2940 = vmatpush3.bf16.msra.mxu0 %v3065_v5 }
 0xa31   : > { %v1498_v32 = vsel %vm673_vm1, %v1497_v31, 0.0  ;;  %2953 = vmatprep.subr.bf16.mxu0 %v3122_v1 }
 0xa32   : > { %1499 = vadd.xlane.f32.xlu1 %v1498_v32 }
 0xa33   : > { %2942 = vmatmul.mubr.msk.bf16.vlgmr.msra.gmra.mrb[32].mxu0 %vm673_vm1, %v1527_v41 }
 0xa34   : > { %2955 = vmatprep.mubr.msk.bf16.mxu0 %vm3123_vm0, %v3122_v1 }
 0xabf   : > { %v1500_v33 = vpop.xlane.xlu1 %1499 }
 0xac0   : > { %v1502_v34 = vmul.f32 0.03125, %v1500_v33 }
 0xac2   : > { %v1503_v35 = vsub.f32 %v1497_v31, %v1502_v34 }
 0xac4   : > { %v1504_v36 = vmul.f32 %v1503_v35, %v1503_v35 }
 0xac6   : > { %v1505_v37 = vsel %vm673_vm1, %v1504_v36, 0.0 }
 0xac7   : > { %1506 = vadd.xlane.f32.xlu0 %v1505_v37 }
 0xb06   : > { %v1656_v54 = vpop.f32.mrb[32].mxu0 }
 0xb07   : > { %v1657_v55 = vadd.f32 %v2713_v53, %v1656_v54  ;;  %v2943_v56 = vpop.f32.mrb[33].mxu0 }
 0xb08   : > { %v1659_v57 = vpop.f32.mrb[34].mxu0 }
 0xb09   : > { %v1660_v58 = vadd.f32 %v2713_v53, %v1659_v57  ;;  %v2944_v59 = vpop.f32.mrb[35].mxu0 }
 0xb0b   : > { %v3455_v60 = vpack.c.bf16 %v1660_v58, %v1657_v55 }
 0xb0d   : > { %1845 = vrot.lane.b32.xlu0 %v3455_v60, %s3124_s28  ;;  %v1737_v61 = vsel %vm851_vm2, %v3455_v60, 0 }
 0xb0e   : > { %2954 = vmatpush3.bf16.xpose.msra.mxu0 %v1737_v61 }
 0xb0f   : > { %2965 = vmatprep.subr.bf16.mxu0 %v3122_v1 }
 0xb54   : > { %v1507_v44 = vpop.xlane.xlu0 %1506 }
 0xb55   : > { %v1508_v45 = vmul.f32 0.03125, %v1507_v44 }
 0xb57   : > { %v1509_v46 = vadd.f32 1e-05, %v1508_v45 }
 0xb59   : > { %3092 = vrsqrt.f32 %v1509_v46  ;;  %v2730_v46 = vld [vmem:[%s3650_s10 + $0x4] sm:$0xf] }
 0xb63   : > { %v3093_v47 = vpop.eup %3092 }
 0xb64   : > { %v1511_v50 = vmul.f32 %v3093_v47, %v1503_v35  ;;  %v1961_v47 = vsel %vm913_vm3, %v2730_v46, 0 }
 0xb66   : > { %v1518_v21 = vmul.f32 %v2702_v48, %v1511_v50 }
 0xb68   : > { %v3445_v51 = vadd.f32 %v2703_v17, %v1518_v21 }
 0xb6a   : > { %v1526_v52 = vpack.c.bf16 %v3445_v51, %v3445_v51 }
 0xb6c   : > { %2934 = vmatmul.mubr.msk.bf16.vlgmr.msra.gmra.mrb[28].mxu1 %vm673_vm1, %v1526_v52  ;;  %v1840_v52 = vld [vmem:[%s3650_s10] sm:$0xf] }
 0xb6d   : > { %2949 = vmatprep.mubr.msk.bf16.mxu1 %vm3123_vm0, %v3122_v1  ;;  %2946 = vmatpush3.bf16.msra.mxu1 %v3068_v10  ;;  %v2007_v55 = vsel %vm913_vm3, %v1840_v52, 0 }
 0xb6e   : > { %2947 = vmatprep.subr.bf16.mxu1 %v3122_v1 }
 0xb71   : > { %2948 = vmatpush3.bf16.msra.mxu1 %v3069_v11 }
 0xb72   : > { %2959 = vmatprep.subr.bf16.mxu1 %v3122_v1 }
 0xb74   : > { %2950 = vmatmul.mubr.msk.bf16.vlgmr.msra.gmra.mrb[32].mxu1 %vm673_vm1, %v1527_v41 }
 0xb75   : > { %2961 = vmatprep.mubr.msk.bf16.mxu1 %vm3123_vm0, %v3122_v1 }
 0xb7f   : > { %v1846_v4 = vpop.permute.xlu0 %1845 }
 0xb80   : > { %v1851_v9 = vsel %vm851_vm2, %v1846_v4, 0 }
 0xc3f   : > { %v1588_v63 = vpop.f32.mrb[28].mxu1 }
 0xc40   : > { %v1589_v0 = vadd.f32 %v2704_v62, %v1588_v63  ;;  %v2935_v2 = vpop.f32.mrb[29].mxu1 }
 0xc41   : > { %v1591_v3 = vpop.f32.mrb[30].mxu1 }
 0xc42   : > { %v1729_v6 = vmul.f32 0.35355338, %v1589_v0  ;;  %v2936_v7 = vpop.f32.mrb[31].mxu1 }
 0xc44   : > { %v3465_v8 = vpack.c.bf16 %v1729_v6, %v1729_v6 }
 0xc46   : > { %1842 = vrot.lane.b32.xlu0 %v3465_v8, %s3124_s28  ;;  %2956 = vmatmul.mubr.msk.bf16.vlgmr.msra.gmra.mrb[36].mxu0 %vm851_vm2, %v3465_v8 }
 0xc47   : > { %2966 = vmatpush3.bf16.xpose.msra.mxu0 %v1851_v9  ;;  %2967 = vmatprep.mubr.msk.bf16.mxu0 %vm3123_vm0, %v3122_v1  ;;  %v1722_v28 = vpop.f32.mrb[32].mxu1 }
 0xc48   : > { %2977 = vmatprep.subr.bf16.mxu0 %v3122_v1  ;;  %v1723_v29 = vadd.f32 %v2722_v27, %v1722_v28  ;;  %v2951_v30 = vpop.f32.mrb[33].mxu1 }
 0xc49   : > { %v1725_v31 = vpop.f32.mrb[34].mxu1 }
 0xc4a   : > { %v1726_v32 = vadd.f32 %v2722_v27, %v1725_v31  ;;  %v2952_v33 = vpop.f32.mrb[35].mxu1 }
 0xc4c   : > { %v3494_v34 = vpack.c.bf16 %v1726_v32, %v1723_v29 }
 0xc4e   : > { %v1797_v37 = vsel %vm1795_vm5, %v3494_v34, 0 }
 0xc4f   : > { %2960 = vmatpush3.bf16.msra.mxu1 %v1797_v37  ;;  %v2735_v37 = vld [vmem:[%s3650_s10 + $0x8] sm:$0xf] }
 0xc50   : > { %2971 = vmatprep.subr.bf16.mxu1 %v3122_v1 }
 0xcb8   : > { %v1843_v12 = vpop.permute.xlu0 %1842 }
 0xcb9   : > { %2968 = vmatmul.mubr.msk.bf16.vlgmr.msra.gmra.mrb[40].mxu0 %vm851_vm2, %v1843_v12 }
 0xcba   : > { %2979 = vmatprep.mubr.msk.bf16.mxu0 %vm3123_vm0, %v3122_v1  ;;  %2978 = vmatpush3.bf16.msra.mxu0 %v1961_v47 }
 0xcbb   : > { %2989 = vmatprep.subr.bf16.mxu0 %v3122_v1 }
 0xd19   : > { %v1773_v13 = vpop.f32.mrb[36].mxu0 }
 0xd1a   : > { %v2957_v49 = vpop.f32.mrb[37].mxu0  ;;  %v1780_v14 = vsel %vm1779_vm4, %v1773_v13, -inf }
 0xd1b   : > { %1781 = vmax.xlane.f32.xlu1 %v1780_v14  ;;  %v1776_v15 = vpop.f32.mrb[38].mxu0 }
 0xd1c   : > { %v2958_v16 = vpop.f32.mrb[39].mxu0 }
 0xd8c   : > { %v1887_v18 = vpop.f32.mrb[40].mxu0 }
 0xd8d   : > { %v2969_v19 = vpop.f32.mrb[41].mxu0  ;;  %v1893_v20 = vsel %vm1779_vm4, %v1887_v18, -inf }
 0xd8e   : > { %1894 = vmax.xlane.f32.xlu0 %v1893_v20  ;;  %v1890_v22 = vpop.f32.mrb[42].mxu0 }
 0xd8f   : > { %v2970_v23 = vpop.f32.mrb[43].mxu0 }
 0xda8   : > { %v1782_v24 = vpop.xlane.xlu1 %1781 }
 0xda9   : > { %v1783_v25 = vsub.f32 %v1773_v13, %v1782_v24 }
 0xdab   : > { %v1784_v26 = vmul.f32 1.442695, %v1783_v25 }
 0xdad   : > { %3094 = vpow2.f32 %v1784_v26 }
 0xdb7   : > { %v3095_v35 = vpop.eup %3094 }
 0xdb8   : > { %v1786_v36 = vsel %vm1779_vm4, %v3095_v35, 0.0 }
 0xdb9   : > { %1787 = vadd.xlane.f32.xlu1 %v1786_v36 }
 0xe1b   : > { %v1895_v38 = vpop.xlane.xlu0 %1894 }
 0xe1c   : > { %v1896_v5 = vsub.f32 %v1887_v18, %v1895_v38  ;;  %v2166_v38 = vsel %vm913_vm3, %v2735_v37, 0  ;;  %v3074_v37 = vld [vmem:[%s3656_s16 + $0x10] sm:$0xff]  }
 0xe1e   : > { %v1897_v39 = vmul.f32 1.442695, %v1896_v5 }
 0xe20   : > { %3096 = vpow2.f32 %v1897_v39 }
 0xe2a   : > { %v3097_v40 = vpop.eup %3096 }
 0xe2b   : > { %v1899_v41 = vsel %vm1779_vm4, %v3097_v40, 0.0 }
 0xe2c   : > { %1900 = vadd.xlane.f32.xlu1 %v1899_v41 }
 0xe3d   : > { %1906 = vrot.lane.b32.xlu1 %v3494_v34, %s3124_s28 }
 0xe41   : > { %2051 = vrot.lane.b32.xlu1 %v3455_v60, %s3679_s23 }
 0xe45   : > { %2049 = vrot.lane.b32.xlu1 %v3465_v8, %s3679_s23 }
 0xe46   : > { %v1788_v42 = vpop.xlane.xlu1 %1787 }
 0xe47   : > { %3098 = vrcp.f32 %v1788_v42 }
 0xe51   : > { %v3099_v43 = vpop.eup %3098 }
 0xe52   : > { %v1790_v44 = vmul.f32 %v3099_v43, %v3095_v35 }
 0xe54   : > { %v1791_v45 = vpack.c.bf16 %v1790_v44, %v1790_v44 }
 0xe56   : > { %2962 = vmatmul.mubr.msk.bf16.vlgmr.msra.gmra.mrb[36].mxu1 %vm1779_vm4, %v1791_v45 }
 0xe57   : > { %2973 = vmatprep.mubr.msk.bf16.mxu1 %vm3123_vm0, %v3122_v1 }
 0xeb9   : > { %v1901_v48 = vpop.xlane.xlu1 %1900 }
 0xeba   : > { %3100 = vrcp.f32 %v1901_v48 }
 0xebd   : > { %v1907_v50 = vpop.permute.xlu1 %1906 }
 0xebe   : > { %v1912_v17 = vsel %vm1795_vm5, %v1907_v50, 0 }
 0xebf   : > { %2972 = vmatpush3.bf16.msra.mxu1 %v1912_v17 }
 0xec0   : > { %2983 = vmatprep.subr.bf16.mxu1 %v3122_v1 }
 0xec1   : > { %v2052_v62 = vpop.permute.xlu1 %2051 }
 0xec2   : > { %v2057_v4 = vsel %vm851_vm2, %v2052_v62, 0 }
 0xec4   : > { %v3101_v21 = vpop.eup %3100 }
 0xec5   : > { %v1903_v53 = vmul.f32 %v3101_v21, %v3097_v40  ;;  %v2050_v7 = vpop.permute.xlu1 %2049 }
 0xec7   : > { %v1904_v54 = vpack.c.bf16 %v1903_v53, %v1903_v53  ;;  %v2739_v53 = vld [vmem:[%s3650_s10 + $0xc] sm:$0xf] }
 0xec9   : > { %2974 = vmatmul.mubr.msk.bf16.vlgmr.msra.gmra.mrb[40].mxu1 %vm1779_vm4, %v1904_v54  ;;  %v2326_v54 = vsel %vm913_vm3, %v2739_v53, 0 }
 0xeca   : > { %2984 = vmatpush3.bf16.msra.mxu1 %v2007_v55  ;;  %2985 = vmatprep.mubr.msk.bf16.mxu1 %vm3123_vm0, %v3122_v1 }
 0xecb   : > { %2995 = vmatprep.subr.bf16.mxu1 %v3122_v1 }
 0xf29   : > { %v1833_v56 = vpop.f32.mrb[36].mxu1 }
 0xf2a   : > { %v1839_v57 = vpack.c.bf16 %v1833_v56, %v1833_v56  ;;  %v2963_v58 = vpop.f32.mrb[37].mxu1 }
 0xf2b   : > { %v1836_v59 = vpop.f32.mrb[38].mxu1 }
 0xf2c   : > { %v2964_v61 = vpop.f32.mrb[39].mxu1  ;;  %2986 = vmatmul.mubr.msk.bf16.vlgmr.msra.gmra.mrb[44].mxu1 %vm851_vm2, %v1839_v57 }
 0xf2d   : > { %2997 = vmatprep.mubr.msk.bf16.mxu1 %vm3123_vm0, %v3122_v1 }
 0xf9c   : > { %v1948_v63 = vpop.f32.mrb[40].mxu1 }
 0xf9d   : > { %v1954_v0 = vpack.c.bf16 %v1948_v63, %v1948_v63  ;;  %v2975_v2 = vpop.f32.mrb[41].mxu1 }
 0xf9e   : > { %v1951_v3 = vpop.f32.mrb[42].mxu1 }
 0xf9f   : > { %v2976_v6 = vpop.f32.mrb[43].mxu1  ;;  %2980 = vmatmul.mubr.msk.bf16.vlgmr.msra.gmra.mrb[44].mxu0 %vm851_vm2, %v1954_v0 }
 0xfa0   : > { %2990 = vmatpush3.bf16.xpose.msra.mxu0 %v2057_v4  ;;  %2991 = vmatprep.mubr.msk.bf16.mxu0 %vm3123_vm0, %v3122_v1 }
 0xfa1   : > { %3001 = vmatprep.subr.bf16.mxu0 %v3122_v1 }
 0xfa7   : > { %2992 = vmatmul.mubr.msk.bf16.vlgmr.msra.gmra.mrb[48].mxu0 %vm851_vm2, %v2050_v7 }
 0xfa8   : > { %3003 = vmatprep.mubr.msk.bf16.mxu0 %vm3123_vm0, %v3122_v1  ;;  %3002 = vmatpush3.bf16.msra.mxu0 %v2166_v38  ;;  %v3075_v38 = vld [vmem:[%s3656_s16 + $0x18] sm:$0xff]  }
 0xfa9   : > { %3013 = vmatprep.subr.bf16.mxu0 %v3122_v1 }
 0xfff   : > { %v2043_v9 = vpop.f32.mrb[44].mxu1 }
0x1000   : > { %v2987_v10 = vpop.f32.mrb[45].mxu1 }
0x1001   : > { %v2046_v11 = vpop.f32.mrb[46].mxu1 }
0x1002   : > { %v2988_v12 = vpop.f32.mrb[47].mxu1  ;;  %v2741_v11 = vld [vmem:[%s3651_s11] ss:$0 sm:$0xff] }
0x1072   : > { %v1997_v13 = vpop.f32.mrb[44].mxu0 }
0x1073   : > { %v3536_v49 = vadd.f32 %v2043_v9, %v1997_v13  ;;  %v2981_v14 = vpop.f32.mrb[45].mxu0 }
0x1074   : > { %v2000_v15 = vpop.f32.mrb[46].mxu0 }
0x1075   : > { %v2982_v16 = vpop.f32.mrb[47].mxu0 }
0x107a   : > { %v2093_v18 = vpop.f32.mrb[48].mxu0 }
0x107b   : > { %v2993_v19 = vpop.f32.mrb[49].mxu0  ;;  %v2099_v20 = vsel %vm1779_vm4, %v2093_v18, -inf }
0x107c   : > { %2100 = vmax.xlane.f32.xlu0 %v2099_v20  ;;  %v2096_v22 = vpop.f32.mrb[50].mxu0 }
0x107d   : > { %v2994_v23 = vpop.f32.mrb[51].mxu0 }
0x1092   : > { %2111 = vrot.lane.b32.xlu0 %v3494_v34, %s3679_s23 }
0x1096   : > { %2211 = vrot.lane.b32.xlu0 %v3455_v60, %s3680_s29 }
0x109a   : > { %2209 = vrot.lane.b32.xlu0 %v3465_v8, %s3680_s29 }
0x1109   : > { %v2101_v24 = vpop.xlane.xlu0 %2100 }
0x110a   : > { %v2102_v25 = vsub.f32 %v2093_v18, %v2101_v24 }
0x110c   : > { %v2103_v26 = vmul.f32 1.442695, %v2102_v25  ;;  %v3070_v25 = vld [vmem:[%s3654_s14] sm:$0xff]  }
0x110d   : > { %v2112_v27 = vpop.permute.xlu0 %2111 }
0x110e   : > { %3102 = vpow2.f32 %v2103_v26  ;;  %v2117_v28 = vsel %vm1795_vm5, %v2112_v27, 0  ;;  %v3071_v26 = vld [vmem:[%s3654_s14 + $0x8] sm:$0xff]  }
0x110f   : > { %2996 = vmatpush3.bf16.msra.mxu1 %v2117_v28  ;;  %v3073_v27 = vld [vmem:[%s3656_s16 + $0x8] sm:$0xff]  }
0x1110   : > { %3007 = vmatprep.subr.bf16.mxu1 %v3122_v1 }
0x1111   : > { %v2212_v33 = vpop.permute.xlu0 %2211 }
0x1112   : > { %v2217_v35 = vsel %vm851_vm2, %v2212_v33, 0  ;;  %v2743_v33 = vld [vmem:[%s3653_s13] ss:$0 sm:$0xff] }
0x1115   : > { %v2210_v36 = vpop.permute.xlu0 %2209 }
0x1118   : > { %v3103_v29 = vpop.eup %3102 }
0x1119   : > { %v2105_v30 = vsel %vm1779_vm4, %v3103_v29, 0.0 }
0x111a   : > { %2106 = vadd.xlane.f32.xlu1 %v2105_v30 }
0x11a7   : > { %v2107_v31 = vpop.xlane.xlu1 %2106 }
0x11a8   : > { %3104 = vrcp.f32 %v2107_v31 }
0x11b2   : > { %v3105_v60 = vpop.eup %3104 }
0x11b3   : > { %v2109_v32 = vmul.f32 %v3105_v60, %v3103_v29  ;;  %v2742_v60 = vld [vmem:[%s3652_s12] ss:$0 sm:$0xff] }
0x11b5   : > { %v2110_v8 = vpack.c.bf16 %v2109_v32, %v2109_v32 }
0x11b7   : > { %2998 = vmatmul.mubr.msk.bf16.vlgmr.msra.gmra.mrb[48].mxu1 %vm1779_vm4, %v2110_v8 }
0x11b8   : > { %3008 = vmatpush3.bf16.xpose.msra.mxu1 %v2217_v35  ;;  %3009 = vmatprep.mubr.msk.bf16.mxu1 %vm3123_vm0, %v3122_v1 }
0x11b9   : > { %3019 = vmatprep.subr.bf16.mxu1 %v3122_v1 }
0x11bf   : > { %3010 = vmatmul.mubr.msk.bf16.vlgmr.msra.gmra.mrb[52].mxu1 %vm851_vm2, %v2210_v36 }
0x11c0   : > { %3021 = vmatprep.mubr.msk.bf16.mxu1 %vm3123_vm0, %v3122_v1  ;;  %3020 = vmatpush3.bf16.msra.mxu1 %v2326_v54 }
0x11c1   : > { %3033 = vmatprep.subr.bf16.mxu1 %v3122_v1 }
0x128a   : > { %v2153_v5 = vpop.f32.mrb[48].mxu1 }
0x128b   : > { %v2159_v39 = vpack.c.bf16 %v2153_v5, %v2153_v5  ;;  %v2999_v40 = vpop.f32.mrb[49].mxu1  ;;  %v2744_v5 = vld [vmem:[%s3655_s15] ss:$0 sm:$0xff] }
0x128c   : > { %v2156_v41 = vpop.f32.mrb[50].mxu1 }
0x128d   : > { %v3000_v42 = vpop.f32.mrb[51].mxu1  ;;  %3004 = vmatmul.mubr.msk.bf16.vlgmr.msra.gmra.mrb[52].mxu0 %vm851_vm2, %v2159_v39 }
0x128e   : > { %3015 = vmatprep.mubr.msk.bf16.mxu0 %vm3123_vm0, %v3122_v1 }
0x1292   : > { %v2253_v43 = vpop.f32.mrb[52].mxu1 }
0x1293   : > { %v3011_v44 = vpop.f32.mrb[53].mxu1  ;;  %v2259_v45 = vsel %vm1779_vm4, %v2253_v43, -inf }
0x1294   : > { %2260 = vmax.xlane.f32.xlu0 %v2259_v45  ;;  %v2256_v46 = vpop.f32.mrb[54].mxu1 }
0x1295   : > { %v3012_v47 = vpop.f32.mrb[55].mxu1 }
0x1321   : > { %v2261_v48 = vpop.xlane.xlu0 %2260 }
0x1322   : > { %v2262_v50 = vsub.f32 %v2253_v43, %v2261_v48 }
0x1324   : > { %v2263_v17 = vmul.f32 1.442695, %v2262_v50 }
0x1326   : > { %3106 = vpow2.f32 %v2263_v17 }
0x1330   : > { %v3107_v21 = vpop.eup %3106 }
0x1331   : > { %v2265_v52 = vsel %vm1779_vm4, %v3107_v21, 0.0 }
0x1332   : > { %2266 = vadd.xlane.f32.xlu1 %v2265_v52 }
0x1343   : > { %2271 = vrot.lane.b32.xlu1 %v3494_v34, %s3680_s29 }
0x1360   : > { %v2202_v55 = vpop.f32.mrb[52].mxu0 }
0x1361   : > { %v2208_v56 = vadd.f32 %v2202_v55, %v3536_v49  ;;  %v3005_v57 = vpop.f32.mrb[53].mxu0 }
0x1362   : > { %v2205_v58 = vpop.f32.mrb[54].mxu0 }
0x1363   : > { %v3006_v59 = vpop.f32.mrb[55].mxu0 }
0x13bf   : > { %v2267_v61 = vpop.xlane.xlu1 %2266 }
0x13c0   : > { %3108 = vrcp.f32 %v2267_v61 }
0x13c3   : > { %v2272_v62 = vpop.permute.xlu1 %2271 }
0x13c4   : > { %v2277_v34 = vsel %vm1795_vm5, %v2272_v62, 0 }
0x13c5   : > { %3014 = vmatpush3.bf16.msra.mxu0 %v2277_v34  ;;  %v2754_v34 = vld [vmem:[%s3658_s18] ss:$0 sm:$0xff] }
0x13c6   : > { %3025 = vmatprep.subr.bf16.mxu0 %v3122_v1 }
0x13ca   : > { %v3109_v63 = vpop.eup %3108 }
0x13cb   : > { %v2269_v0 = vmul.f32 %v3109_v63, %v3107_v21 }
0x13cd   : > { %v2270_v2 = vpack.c.bf16 %v2269_v0, %v2269_v0  ;;  %v2755_v0 = vld [vmem:[%s3659_s19] ss:$0 sm:$0xff] }
0x13cf   : > { %3016 = vmatmul.mubr.msk.bf16.vlgmr.msra.gmra.mrb[56].mxu0 %vm1779_vm4, %v2270_v2 }
0x13d0   : > { %3029 = vmatprep.mubr.msk.bf16.mxu0 %vm3123_vm0, %v3122_v1  ;;  %3026 = vmatpush3.bf16.msra.mxu0 %v3070_v25 }
0x13d1   : > { %3027 = vmatprep.subr.bf16.mxu0 %v3122_v1 }
0x13d4   : > { %3028 = vmatpush3.bf16.msra.mxu0 %v3071_v26 }
0x14a2   : > { %v2313_v3 = vpop.f32.mrb[56].mxu0 }
0x14a3   : > { %v2319_v4 = vpack.c.bf16 %v2313_v3, %v2313_v3  ;;  %v3017_v6 = vpop.f32.mrb[57].mxu0 }
0x14a4   : > { %v2316_v7 = vpop.f32.mrb[58].mxu0 }
0x14a5   : > { %v3018_v9 = vpop.f32.mrb[59].mxu0  ;;  %3022 = vmatmul.mubr.msk.bf16.vlgmr.msra.gmra.mrb[56].mxu1 %vm851_vm2, %v2319_v4 }
0x14a6   : > { %3041 = vmatprep.mubr.msk.bf16.mxu1 %vm3123_vm0, %v3122_v1 }
0x1578   : > { %v2362_v10 = vpop.f32.mrb[56].mxu1 }
0x1579   : > { %v2368_v12 = vadd.f32 %v2362_v10, %v2208_v56  ;;  %v3023_v13 = vpop.f32.mrb[57].mxu1 }
0x157a   : > { %v2365_v49 = vpop.f32.mrb[58].mxu1 }
0x157b   : > { %v2376_v14 = vadd.f32 %v2741_v11, %v2368_v12  ;;  %v3024_v15 = vpop.f32.mrb[59].mxu1 }
0x157d   : > { %v2379_v16 = vadd.f32 %v2376_v14, %v3445_v51  ;;  %v3072_v51 = vld [vmem:[%s3656_s16] sm:$0xff]  }
0x157e   : > { %3034 = vmatpush3.bf16.msra.mxu1 %v3072_v51 }
0x157f   : > { %v2380_v18 = vsel %vm673_vm1, %v2379_v16, 0.0  ;;  %3035 = vmatprep.subr.bf16.mxu1 %v3122_v1 }
0x1580   : > { %2381 = vadd.xlane.f32.xlu1 %v2380_v18 }
0x1582   : > { %3036 = vmatpush3.bf16.msra.mxu1 %v3073_v27 }
0x1583   : > { %3037 = vmatprep.subr.bf16.mxu1 %v3122_v1 }
0x1586   : > { %3038 = vmatpush3.bf16.msra.mxu1 %v3074_v37 }
0x1587   : > { %3039 = vmatprep.subr.bf16.mxu1 %v3122_v1  ;;  %v2748_v1 = vld [vmem:[%s3657_s17] ss:$0 sm:$0xff] }
0x158a   : > { %3040 = vmatpush3.bf16.msra.mxu1 %v3075_v38 }
0x160d   : > { %v2382_v19 = vpop.xlane.xlu1 %2381 }
0x160e   : > { %v2383_v20 = vmul.f32 0.03125, %v2382_v19 }
0x1610   : > { %v2384_v22 = vsub.f32 %v2379_v16, %v2383_v20 }
0x1612   : > { %v2385_v23 = vmul.f32 %v2384_v22, %v2384_v22 }
0x1614   : > { %v2386_v24 = vsel %vm673_vm1, %v2385_v23, 0.0 }
0x1615   : > { %2387 = vadd.xlane.f32.xlu0 %v2386_v24 }
0x16a2   : > { %v2388_v28 = vpop.xlane.xlu0 %2387 }
0x16a3   : > { %v2389_v29 = vmul.f32 0.03125, %v2388_v28 }
0x16a5   : > { %v2390_v30 = vadd.f32 1e-05, %v2389_v29 }
0x16a7   : > { %3110 = vrsqrt.f32 %v2390_v30 }
0x16b1   : > { %v3111_v31 = vpop.eup %3110 }
0x16b2   : > { %v2392_v32 = vmul.f32 %v3111_v31, %v2384_v22 }
0x16b4   : > { %v2399_v8 = vmul.f32 %v2742_v60, %v2392_v32 }
0x16b6   : > { %v2406_v35 = vadd.f32 %v2743_v33, %v2399_v8 }
0x16b8   : > { %v2407_v36 = vpack.c.bf16 %v2406_v35, %v2406_v35 }
0x16ba   : > { %3030 = vmatmul.mubr.msk.bf16.vlgmr.msra.gmra.mrb[60].mxu0 %vm673_vm1, %v2407_v36 }
0x178d   : > { %v2468_v39 = vpop.f32.mrb[60].mxu0 }
0x178e   : > { %v2469_v40 = vadd.f32 %v2744_v5, %v2468_v39  ;;  %v3031_v41 = vpop.f32.mrb[61].mxu0 }
0x178f   : > { %v2471_v42 = vpop.f32.mrb[62].mxu0 }
0x1790   : > { %v2474_v43 = vmax.f32 %v2469_v40, 0.0  ;;  %v3032_v44 = vpop.f32.mrb[63].mxu0 }
0x1792   : > { %v2475_v45 = vpack.c.bf16 %v2474_v43, %v2474_v43 }
0x1794   : > { %3042 = vmatmul.mubr.msk.bf16.vlgmr.msra.gmra.mrb[60].mxu1 %vm2515_vm6, %v2475_v45 }
0x1867   : > { %v2553_v46 = vpop.f32.mrb[60].mxu1 }
0x1868   : > { %v2554_v47 = vadd.f32 %v2748_v1, %v2553_v46  ;;  %v3043_v48 = vpop.f32.mrb[61].mxu1 }
0x1869   : > { %v2556_v50 = vpop.f32.mrb[62].mxu1 }
0x186a   : > { %v3044_v17 = vpop.f32.mrb[63].mxu1  ;;  %v2561_v21 = vadd.f32 %v2554_v47, %v2406_v35 }
0x186c   : > { %v2562_v52 = vsel %vm673_vm1, %v2561_v21, 0.0 }
0x186d   : > { %2563 = vadd.xlane.f32.xlu0 %v2562_v52 }
0x18fa   : > { %v2564_v53 = vpop.xlane.xlu0 %2563 }
0x18fb   : > { %v2565_v54 = vmul.f32 0.03125, %v2564_v53 }
0x18fd   : > { %v2566_v55 = vsub.f32 %v2561_v21, %v2565_v54 }
0x18ff   : > { %v2567_v56 = vmul.f32 %v2566_v55, %v2566_v55 }
0x1901   : > { %v2568_v57 = vsel %vm673_vm1, %v2567_v56, 0.0 }
0x1902   : > { %2569 = vadd.xlane.f32.xlu0 %v2568_v57 }
0x198f   : > { %v2570_v58 = vpop.xlane.xlu0 %2569 }
0x1990   : > { %v2571_v59 = vmul.f32 0.03125, %v2570_v58 }
0x1992   : > { %v2572_v61 = vadd.f32 1e-05, %v2571_v59 }
0x1994   : > { %3112 = vrsqrt.f32 %v2572_v61 }
0x199e   : > { %v3113_v62 = vpop.eup %3112 }
0x199f   : > { %v2574_v63 = vmul.f32 %v3113_v62, %v2566_v55 }
0x19a1   : > { %v2581_v2 = vmul.f32 %v2754_v34, %v2574_v63 }
0x19a3   : > { %v2588_v3 = vadd.f32 %v2755_v0, %v2581_v2 }
0x19a5   : > { %2589 = vst.msk [vmem:[%s644_s0] sm:$0xff] %vm673_vm1, %v2588_v3 }
0x19a6 PF: > { %s30_s1 = sadd.s32 1, %s3120_s1  }
0x19a7   : > { %p27_p4 = scmp.ge.s32.totalorder %s30_s1, 6  }
0x19a9   :  { %29 = sbr.rel (!%p27_p4) target bundleno = 6 (0x6), region = 147 }

</bundles_post_ra>
